<compile_context>
chip_gen: v7x
topology: tpu7x:2x2x1
jax: 0.10.0
libtpu: 0.0.40
codegen_flags: <defaults>
</compile_context>

<pallas_src>
import jax
import jax.numpy as jnp
from jax.experimental import pallas as pl
from jax.experimental.pallas import tpu as pltpu


def _upsample_conv_kernel(x_ref, wv_ref, sx_ref, b_ref, o_ref):
    """One (batch, row-tile) step of the fused upsample+conv.

    x_ref : (1, C, H+2, W+2) zero-padded source image (VMEM, resident per batch)
    wv_ref: (16*C*C, W)      merged subpixel weights; row k = one scalar
                             broadcast along W lanes (VMEM, resident)
    sx_ref: (2, W, 2W)       column parity-interleave 0/1 matrices (VMEM, resident)
    b_ref : (C,)             conv bias (SMEM)
    o_ref : (1, C, Ht, 4W)   output row tile; lane q = 2W*py + (2j+px)
    """
    C = o_ref.shape[1]
    ht = o_ref.shape[2]
    w = o_ref.shape[3] // 4
    f32 = jnp.float32

    row0 = pl.program_id(1) * ht
    if ht % 8 == 0:
        row0 = pl.multiple_of(row0, 8)

    # Constant interleave matrices, loaded once per step (hoisted out of loops).
    sx0 = sx_ref[0].astype(f32)          # (w, 2w)
    sx1 = sx_ref[1].astype(f32)

    for py in range(2):
        # Phase accumulators for this row parity only: [px][co], each (ht, w).
        acc = [[jnp.zeros((ht, w), f32) for _ in range(C)] for _ in range(2)]

        for ci in range(C):
            # Two padded row blocks (dynamic sublane offset, full lane width).
            rows = [x_ref[0, ci, pl.ds(row0 + py + ry, ht), :].astype(f32)
                    for ry in range(2)]
            # 2x3 shifted windows via static lane slices (no select matmuls).
            win = [[rows[ry][:, dx:dx + w] for dx in range(3)] for ry in range(2)]

            for ry in range(2):
                for px in range(2):
                    for rx in range(2):
                        tap = win[ry][px + rx]
                        for co in range(C):
                            idx = co + C * (ci + C * (rx + 2 * (ry + 2 * (px + 2 * py))))
                            wrow = wv_ref[pl.ds(idx, 1), :]          # (1, w) vector load
                            acc[px][co] = acc[px][co] + wrow * tap   # VPU FMA

        # Column-parity interleave, batched over output channels on sublanes:
        # one 0/1 matmul per px (4 small MXU matmuls per grid step in total).
        stack0 = jnp.concatenate(acc[0], axis=0)                     # (C*ht, w)
        stack1 = jnp.concatenate(acc[1], axis=0)
        zc = (jnp.dot(stack0, sx0, preferred_element_type=f32)
              + jnp.dot(stack1, sx1, preferred_element_type=f32))    # (C*ht, 2w)

        # Row-parity interleave is free: it is the output memory layout.
        for co in range(C):
            out_tile = zc[co * ht:(co + 1) * ht, :] + b_ref[co]
            o_ref[0, co, :, pl.ds(2 * w * py, 2 * w)] = out_tile.astype(o_ref.dtype)


def _pick_row_tile(H, C, B):
    """Largest row tile that keeps the 2*C live (Ht, W) phase accumulators well
    inside the vreg budget and leaves >= 2 grid steps for v7x's two cores."""
    cap = max(8, 64 // max(C, 1))
    if B == 1:
        cap = min(cap, max(H // 2, 1))
    best = 0
    t = 8
    while t <= min(cap, H):
        if H % t == 0:
            best = t
        t += 8
    return best if best > 0 else H


@jax.jit
def upsample_forward(x_nchw, w_oihw, bias):
    """Forward pass of UpSample: nearest 2x upsample then 3x3 conv (pad=1).

    x_nchw : (B, C, H, W) float32
    w_oihw : (C, C, 3, 3) float32 (PyTorch Conv2d weight layout)
    bias   : (C,)         float32
    returns (B, C, 2H, 2W) float32
    """
    B, C, H, W = x_nchw.shape
    Ht = _pick_row_tile(H, C, B)

    # Cheap glue on the SMALL source: zero-pad by 1 (no upsampled intermediate).
    x_pad = jnp.pad(x_nchw, ((0, 0), (0, 0), (1, 1), (1, 1)))

    # Merged subpixel weights: 3x3 taps that land on the same source pixel (per
    # output parity) are pre-summed into 2x2 taps.  sel[p, r, k] merges tap k
    # into relative source offset r for parity p.
    sel = jnp.array([[[1, 0, 0], [0, 1, 1]],
                     [[1, 1, 0], [0, 0, 1]]], dtype=jnp.float32)   # [parity, r, k]
    wm = jnp.einsum("ayk,bxl,oikl->abyxio", sel, sel, w_oihw.astype(jnp.float32),
                    precision=jax.lax.Precision.HIGHEST)            # (2,2,2,2,C,C)
    # (16*C*C, W): one scalar per row, pre-broadcast along lanes so the kernel
    # reads weights with plain vector loads (no per-step SMEM scalar traffic).
    wv = jnp.tile(wm.reshape(16 * C * C, 1), (1, W))

    # Constant 0/1 column-interleave matrices, hoisted out of the kernel body.
    j = jnp.arange(W, dtype=jnp.int32)[:, None]
    q = jnp.arange(2 * W, dtype=jnp.int32)[None, :]
    sx = jnp.stack([(q == 2 * j).astype(jnp.float32),
                    (q == 2 * j + 1).astype(jnp.float32)])           # (2, W, 2W)

    # VMEM budget (double-buffered blocks); raise the scoped cap only if needed
    # (v5e default is 16 MiB), staying under v7x's 64 MiB physical VMEM.
    vmem_bytes = 4 * (2 * C * (H + 2) * (W + 2) + 2 * C * Ht * 4 * W
                      + 2 * 16 * C * C * W + 2 * 2 * W * 2 * W) + (1 << 20)
    compiler_kwargs = dict(dimension_semantics=("parallel", "parallel"))
    if vmem_bytes > (16 << 20):
        compiler_kwargs["vmem_limit_bytes"] = int(min(vmem_bytes, 60 << 20))

    out_packed = pl.pallas_call(
        _upsample_conv_kernel,
        out_shape=jax.ShapeDtypeStruct((B, C, H, 4 * W), x_nchw.dtype),
        grid=(B, H // Ht),
        in_specs=[
            # Whole padded source image resident per batch; the kernel row-tiles
            # it with dynamic slices (halo handled in-kernel).
            pl.BlockSpec((1, C, H + 2, W + 2), lambda b, h: (b, 0, 0, 0)),
            pl.BlockSpec((16 * C * C, W), lambda b, h: (0, 0)),      # merged weights
            pl.BlockSpec((2, W, 2 * W), lambda b, h: (0, 0, 0)),     # interleave consts
            pl.BlockSpec(memory_space=pltpu.MemorySpace.SMEM),       # bias
        ],
        out_specs=pl.BlockSpec((1, C, Ht, 4 * W), lambda b, h: (b, 0, h, 0)),
        compiler_params=pltpu.CompilerParams(**compiler_kwargs),
    )(x_pad, wv, sx, bias.astype(jnp.float32))

    # Pure contiguous reshape (free): (b,co,i, 2W*py + 2j+px) -> (b,co,2i+py, 2j+px).
    return out_packed.reshape(B, C, 2 * H, 2 * W)


def _reference_forward(x_nchw, w_oihw, bias):
    """Pure-JAX reference replicating the PyTorch forward (for verification)."""
    u = jnp.repeat(jnp.repeat(x_nchw, 2, axis=2), 2, axis=3)
    y = jax.lax.conv_general_dilated(
        u, w_oihw, window_strides=(1, 1), padding=((1, 1), (1, 1)),
        dimension_numbers=("NCHW", "OIHW", "NCHW"),
        precision=jax.lax.Precision.HIGHEST)
    return y + bias[None, :, None, None]


if __name__ == "__main__":
    B, C, H, W = 2, 4, 16, 16

    key = jax.random.PRNGKey(0)
    kx, kw, kb = jax.random.split(key, 3)
    x = jax.random.normal(kx, (B, C, H, W), dtype=jnp.float32)

    # Deterministic parameter init (Conv2d(C, C, 3, 3) shapes), PyTorch-like
    # uniform in [-1/sqrt(fan_in), 1/sqrt(fan_in)].
    fan_in = C * 3 * 3
    bound = 1.0 / jnp.sqrt(float(fan_in))
    w = jax.random.uniform(kw, (C, C, 3, 3), jnp.float32, -bound, bound)
    b = jax.random.uniform(kb, (C,), jnp.float32, -bound, bound)

    y = upsample_forward(x, w, b)
    y = jax.block_until_ready(y)

    assert y.shape == (B, C, 2 * H, 2 * W), y.shape

    y_ref = _reference_forward(x, w, b)
    assert jnp.allclose(y, y_ref, atol=1e-4, rtol=1e-4), "mismatch vs reference"

    print("KERNEL_OK")
</pallas_src>

<mosaic_0001>
module attributes {stable_mosaic.version = 11 : i64} {
  func.func @_upsample_conv_kernel(%arg0: i32, %arg1: i32, %arg2: memref<1x4x18x18xf32, #tpu.memory_space<vmem>>, %arg3: memref<256x16xf32, #tpu.memory_space<vmem>>, %arg4: memref<2x16x32xf32, #tpu.memory_space<vmem>>, %arg5: memref<4xf32, #tpu.memory_space<smem>>, %arg6: memref<1x4x16x64xf32, #tpu.memory_space<vmem>>) attributes {dimension_semantics = [#tpu.dimension_semantics<parallel>, #tpu.dimension_semantics<parallel>], iteration_bounds = array<i64: 2, 1>, scalar_prefetch = 0 : i64, scratch_operands = 0 : i64, tpu.core_type = #tpu.core_type<tc>, window_params = [{transform_indices = @transform_0, window_bounds = array<i64: 1, 4, 18, 18>}, {pipeline_mode = #tpu.pipeline_mode<synchronous>, transform_indices = @transform_1, window_bounds = array<i64: 256, 16>}, {pipeline_mode = #tpu.pipeline_mode<synchronous>, transform_indices = @transform_2, window_bounds = array<i64: 2, 16, 32>}, {transform_indices = @transform_3, window_bounds = array<i64: 4>}, {transform_indices = @transform_4, window_bounds = array<i64: 1, 4, 16, 64>}]} {
    %c16_i32 = arith.constant 16 : i32
    %0 = arith.muli %arg1, %c16_i32 : i32
    %1 = tpu.assume_multiple %0, 8 : i32
    %c0 = arith.constant 0 : index
    %c0_0 = arith.constant 0 : index
    %c0_1 = arith.constant 0 : index
    %2 = vector.load %arg4[%c0, %c0_0, %c0_1] : memref<2x16x32xf32, #tpu.memory_space<vmem>>, vector<1x16x32xf32>
    %3 = vector.shape_cast %2 : vector<1x16x32xf32> to vector<16x32xf32>
    %c1 = arith.constant 1 : index
    %c0_2 = arith.constant 0 : index
    %c0_3 = arith.constant 0 : index
    %4 = vector.load %arg4[%c1, %c0_2, %c0_3] : memref<2x16x32xf32, #tpu.memory_space<vmem>>, vector<1x16x32xf32>
    %5 = vector.shape_cast %4 : vector<1x16x32xf32> to vector<16x32xf32>
    %cst = arith.constant 0.000000e+00 : f32
    %6 = vector.broadcast %cst : f32 to vector<16x16xf32>
    %cst_4 = arith.constant 0.000000e+00 : f32
    %7 = vector.broadcast %cst_4 : f32 to vector<16x16xf32>
    %cst_5 = arith.constant 0.000000e+00 : f32
    %8 = vector.broadcast %cst_5 : f32 to vector<16x16xf32>
    %cst_6 = arith.constant 0.000000e+00 : f32
    %9 = vector.broadcast %cst_6 : f32 to vector<16x16xf32>
    %cst_7 = arith.constant 0.000000e+00 : f32
    %10 = vector.broadcast %cst_7 : f32 to vector<16x16xf32>
    %cst_8 = arith.constant 0.000000e+00 : f32
    %11 = vector.broadcast %cst_8 : f32 to vector<16x16xf32>
    %cst_9 = arith.constant 0.000000e+00 : f32
    %12 = vector.broadcast %cst_9 : f32 to vector<16x16xf32>
    %cst_10 = arith.constant 0.000000e+00 : f32
    %13 = vector.broadcast %cst_10 : f32 to vector<16x16xf32>
    %c0_i32 = arith.constant 0 : i32
    %14 = arith.addi %1, %c0_i32 : i32
    %c0_i32_11 = arith.constant 0 : i32
    %15 = arith.addi %14, %c0_i32_11 : i32
    %c0_12 = arith.constant 0 : index
    %c0_13 = arith.constant 0 : index
    %16 = arith.index_cast %15 : i32 to index
    %c0_14 = arith.constant 0 : index
    %17 = vector.load %arg2[%c0_12, %c0_13, %16, %c0_14] : memref<1x4x18x18xf32, #tpu.memory_space<vmem>>, vector<1x1x16x18xf32>
    %18 = vector.shape_cast %17 : vector<1x1x16x18xf32> to vector<16x18xf32>
    %c0_i32_15 = arith.constant 0 : i32
    %19 = arith.addi %1, %c0_i32_15 : i32
    %c1_i32 = arith.constant 1 : i32
    %20 = arith.addi %19, %c1_i32 : i32
    %c0_16 = arith.constant 0 : index
    %c0_17 = arith.constant 0 : index
    %21 = arith.index_cast %20 : i32 to index
    %c0_18 = arith.constant 0 : index
    %22 = vector.load %arg2[%c0_16, %c0_17, %21, %c0_18] : memref<1x4x18x18xf32, #tpu.memory_space<vmem>>, vector<1x1x16x18xf32>
    %23 = vector.shape_cast %22 : vector<1x1x16x18xf32> to vector<16x18xf32>
    %24 = vector.extract_strided_slice %18 {offsets = [0, 0], sizes = [16, 16], strides = [1, 1]} : vector<16x18xf32> to vector<16x16xf32>
    %25 = vector.extract_strided_slice %18 {offsets = [0, 1], sizes = [16, 16], strides = [1, 1]} : vector<16x18xf32> to vector<16x16xf32>
    %26 = vector.extract_strided_slice %18 {offsets = [0, 2], sizes = [16, 16], strides = [1, 1]} : vector<16x18xf32> to vector<16x16xf32>
    %27 = vector.extract_strided_slice %23 {offsets = [0, 0], sizes = [16, 16], strides = [1, 1]} : vector<16x18xf32> to vector<16x16xf32>
    %28 = vector.extract_strided_slice %23 {offsets = [0, 1], sizes = [16, 16], strides = [1, 1]} : vector<16x18xf32> to vector<16x16xf32>
    %29 = vector.extract_strided_slice %23 {offsets = [0, 2], sizes = [16, 16], strides = [1, 1]} : vector<16x18xf32> to vector<16x16xf32>
    %c0_19 = arith.constant 0 : index
    %c0_20 = arith.constant 0 : index
    %30 = vector.load %arg3[%c0_19, %c0_20] : memref<256x16xf32, #tpu.memory_space<vmem>>, vector<1x16xf32>
    %31 = vector.broadcast %30 : vector<1x16xf32> to vector<16x16xf32>
    %32 = arith.mulf %31, %24 : vector<16x16xf32>
    %33 = arith.addf %6, %32 : vector<16x16xf32>
    %c1_21 = arith.constant 1 : index
    %c0_22 = arith.constant 0 : index
    %34 = vector.load %arg3[%c1_21, %c0_22] : memref<256x16xf32, #tpu.memory_space<vmem>>, vector<1x16xf32>
    %35 = vector.broadcast %34 : vector<1x16xf32> to vector<16x16xf32>
    %36 = arith.mulf %35, %24 : vector<16x16xf32>
    %37 = arith.addf %7, %36 : vector<16x16xf32>
    %c2 = arith.constant 2 : index
    %c0_23 = arith.constant 0 : index
    %38 = vector.load %arg3[%c2, %c0_23] : memref<256x16xf32, #tpu.memory_space<vmem>>, vector<1x16xf32>
    %39 = vector.broadcast %38 : vector<1x16xf32> to vector<16x16xf32>
    %40 = arith.mulf %39, %24 : vector<16x16xf32>
    %41 = arith.addf %8, %40 : vector<16x16xf32>
    %c3 = arith.constant 3 : index
    %c0_24 = arith.constant 0 : index
    %42 = vector.load %arg3[%c3, %c0_24] : memref<256x16xf32, #tpu.memory_space<vmem>>, vector<1x16xf32>
    %43 = vector.broadcast %42 : vector<1x16xf32> to vector<16x16xf32>
    %44 = arith.mulf %43, %24 : vector<16x16xf32>
    %45 = arith.addf %9, %44 : vector<16x16xf32>
    %c16 = arith.constant 16 : index
    %c0_25 = arith.constant 0 : index
    %46 = vector.load %arg3[%c16, %c0_25] : memref<256x16xf32, #tpu.memory_space<vmem>>, vector<1x16xf32>
    %47 = vector.broadcast %46 : vector<1x16xf32> to vector<16x16xf32>
    %48 = arith.mulf %47, %25 : vector<16x16xf32>
    %49 = arith.addf %33, %48 : vector<16x16xf32>
    %c17 = arith.constant 17 : index
    %c0_26 = arith.constant 0 : index
    %50 = vector.load %arg3[%c17, %c0_26] : memref<256x16xf32, #tpu.memory_space<vmem>>, vector<1x16xf32>
    %51 = vector.broadcast %50 : vector<1x16xf32> to vector<16x16xf32>
    %52 = arith.mulf %51, %25 : vector<16x16xf32>
    %53 = arith.addf %37, %52 : vector<16x16xf32>
    %c18 = arith.constant 18 : index
    %c0_27 = arith.constant 0 : index
    %54 = vector.load %arg3[%c18, %c0_27] : memref<256x16xf32, #tpu.memory_space<vmem>>, vector<1x16xf32>
    %55 = vector.broadcast %54 : vector<1x16xf32> to vector<16x16xf32>
    %56 = arith.mulf %55, %25 : vector<16x16xf32>
    %57 = arith.addf %41, %56 : vector<16x16xf32>
    %c19 = arith.constant 19 : index
    %c0_28 = arith.constant 0 : index
    %58 = vector.load %arg3[%c19, %c0_28] : memref<256x16xf32, #tpu.memory_space<vmem>>, vector<1x16xf32>
    %59 = vector.broadcast %58 : vector<1x16xf32> to vector<16x16xf32>
    %60 = arith.mulf %59, %25 : vector<16x16xf32>
    %61 = arith.addf %45, %60 : vector<16x16xf32>
    %c64 = arith.constant 64 : index
    %c0_29 = arith.constant 0 : index
    %62 = vector.load %arg3[%c64, %c0_29] : memref<256x16xf32, #tpu.memory_space<vmem>>, vector<1x16xf32>
    %63 = vector.broadcast %62 : vector<1x16xf32> to vector<16x16xf32>
    %64 = arith.mulf %63, %25 : vector<16x16xf32>
    %65 = arith.addf %10, %64 : vector<16x16xf32>
    %c65 = arith.constant 65 : index
    %c0_30 = arith.constant 0 : index
    %66 = vector.load %arg3[%c65, %c0_30] : memref<256x16xf32, #tpu.memory_space<vmem>>, vector<1x16xf32>
    %67 = vector.broadcast %66 : vector<1x16xf32> to vector<16x16xf32>
    %68 = arith.mulf %67, %25 : vector<16x16xf32>
    %69 = arith.addf %11, %68 : vector<16x16xf32>
    %c66 = arith.constant 66 : index
    %c0_31 = arith.constant 0 : index
    %70 = vector.load %arg3[%c66, %c0_31] : memref<256x16xf32, #tpu.memory_space<vmem>>, vector<1x16xf32>
    %71 = vector.broadcast %70 : vector<1x16xf32> to vector<16x16xf32>
    %72 = arith.mulf %71, %25 : vector<16x16xf32>
    %73 = arith.addf %12, %72 : vector<16x16xf32>
    %c67 = arith.constant 67 : index
    %c0_32 = arith.constant 0 : index
    %74 = vector.load %arg3[%c67, %c0_32] : memref<256x16xf32, #tpu.memory_space<vmem>>, vector<1x16xf32>
    %75 = vector.broadcast %74 : vector<1x16xf32> to vector<16x16xf32>
    %76 = arith.mulf %75, %25 : vector<16x16xf32>
    %77 = arith.addf %13, %76 : vector<16x16xf32>
    %c80 = arith.constant 80 : index
    %c0_33 = arith.constant 0 : index
    %78 = vector.load %arg3[%c80, %c0_33] : memref<256x16xf32, #tpu.memory_space<vmem>>, vector<1x16xf32>
    %79 = vector.broadcast %78 : vector<1x16xf32> to vector<16x16xf32>
    %80 = arith.mulf %79, %26 : vector<16x16xf32>
    %81 = arith.addf %65, %80 : vector<16x16xf32>
    %c81 = arith.constant 81 : index
    %c0_34 = arith.constant 0 : index
    %82 = vector.load %arg3[%c81, %c0_34] : memref<256x16xf32, #tpu.memory_space<vmem>>, vector<1x16xf32>
    %83 = vector.broadcast %82 : vector<1x16xf32> to vector<16x16xf32>
    %84 = arith.mulf %83, %26 : vector<16x16xf32>
    %85 = arith.addf %69, %84 : vector<16x16xf32>
    %c82 = arith.constant 82 : index
    %c0_35 = arith.constant 0 : index
    %86 = vector.load %arg3[%c82, %c0_35] : memref<256x16xf32, #tpu.memory_space<vmem>>, vector<1x16xf32>
    %87 = vector.broadcast %86 : vector<1x16xf32> to vector<16x16xf32>
    %88 = arith.mulf %87, %26 : vector<16x16xf32>
    %89 = arith.addf %73, %88 : vector<16x16xf32>
    %c83 = arith.constant 83 : index
    %c0_36 = arith.constant 0 : index
    %90 = vector.load %arg3[%c83, %c0_36] : memref<256x16xf32, #tpu.memory_space<vmem>>, vector<1x16xf32>
    %91 = vector.broadcast %90 : vector<1x16xf32> to vector<16x16xf32>
    %92 = arith.mulf %91, %26 : vector<16x16xf32>
    %93 = arith.addf %77, %92 : vector<16x16xf32>
    %c32 = arith.constant 32 : index
    %c0_37 = arith.constant 0 : index
    %94 = vector.load %arg3[%c32, %c0_37] : memref<256x16xf32, #tpu.memory_space<vmem>>, vector<1x16xf32>
    %95 = vector.broadcast %94 : vector<1x16xf32> to vector<16x16xf32>
    %96 = arith.mulf %95, %27 : vector<16x16xf32>
    %97 = arith.addf %49, %96 : vector<16x16xf32>
    %c33 = arith.constant 33 : index
    %c0_38 = arith.constant 0 : index
    %98 = vector.load %arg3[%c33, %c0_38] : memref<256x16xf32, #tpu.memory_space<vmem>>, vector<1x16xf32>
    %99 = vector.broadcast %98 : vector<1x16xf32> to vector<16x16xf32>
    %100 = arith.mulf %99, %27 : vector<16x16xf32>
    %101 = arith.addf %53, %100 : vector<16x16xf32>
    %c34 = arith.constant 34 : index
    %c0_39 = arith.constant 0 : index
    %102 = vector.load %arg3[%c34, %c0_39] : memref<256x16xf32, #tpu.memory_space<vmem>>, vector<1x16xf32>
    %103 = vector.broadcast %102 : vector<1x16xf32> to vector<16x16xf32>
    %104 = arith.mulf %103, %27 : vector<16x16xf32>
    %105 = arith.addf %57, %104 : vector<16x16xf32>
    %c35 = arith.constant 35 : index
    %c0_40 = arith.constant 0 : index
    %106 = vector.load %arg3[%c35, %c0_40] : memref<256x16xf32, #tpu.memory_space<vmem>>, vector<1x16xf32>
    %107 = vector.broadcast %106 : vector<1x16xf32> to vector<16x16xf32>
    %108 = arith.mulf %107, %27 : vector<16x16xf32>
    %109 = arith.addf %61, %108 : vector<16x16xf32>
    %c48 = arith.constant 48 : index
    %c0_41 = arith.constant 0 : index
    %110 = vector.load %arg3[%c48, %c0_41] : memref<256x16xf32, #tpu.memory_space<vmem>>, vector<1x16xf32>
    %111 = vector.broadcast %110 : vector<1x16xf32> to vector<16x16xf32>
    %112 = arith.mulf %111, %28 : vector<16x16xf32>
    %113 = arith.addf %97, %112 : vector<16x16xf32>
    %c49 = arith.constant 49 : index
    %c0_42 = arith.constant 0 : index
    %114 = vector.load %arg3[%c49, %c0_42] : memref<256x16xf32, #tpu.memory_space<vmem>>, vector<1x16xf32>
    %115 = vector.broadcast %114 : vector<1x16xf32> to vector<16x16xf32>
    %116 = arith.mulf %115, %28 : vector<16x16xf32>
    %117 = arith.addf %101, %116 : vector<16x16xf32>
    %c50 = arith.constant 50 : index
    %c0_43 = arith.constant 0 : index
    %118 = vector.load %arg3[%c50, %c0_43] : memref<256x16xf32, #tpu.memory_space<vmem>>, vector<1x16xf32>
    %119 = vector.broadcast %118 : vector<1x16xf32> to vector<16x16xf32>
    %120 = arith.mulf %119, %28 : vector<16x16xf32>
    %121 = arith.addf %105, %120 : vector<16x16xf32>
    %c51 = arith.constant 51 : index
    %c0_44 = arith.constant 0 : index
    %122 = vector.load %arg3[%c51, %c0_44] : memref<256x16xf32, #tpu.memory_space<vmem>>, vector<1x16xf32>
    %123 = vector.broadcast %122 : vector<1x16xf32> to vector<16x16xf32>
    %124 = arith.mulf %123, %28 : vector<16x16xf32>
    %125 = arith.addf %109, %124 : vector<16x16xf32>
    %c96 = arith.constant 96 : index
    %c0_45 = arith.constant 0 : index
    %126 = vector.load %arg3[%c96, %c0_45] : memref<256x16xf32, #tpu.memory_space<vmem>>, vector<1x16xf32>
    %127 = vector.broadcast %126 : vector<1x16xf32> to vector<16x16xf32>
    %128 = arith.mulf %127, %28 : vector<16x16xf32>
    %129 = arith.addf %81, %128 : vector<16x16xf32>
    %c97 = arith.constant 97 : index
    %c0_46 = arith.constant 0 : index
    %130 = vector.load %arg3[%c97, %c0_46] : memref<256x16xf32, #tpu.memory_space<vmem>>, vector<1x16xf32>
    %131 = vector.broadcast %130 : vector<1x16xf32> to vector<16x16xf32>
    %132 = arith.mulf %131, %28 : vector<16x16xf32>
    %133 = arith.addf %85, %132 : vector<16x16xf32>
    %c98 = arith.constant 98 : index
    %c0_47 = arith.constant 0 : index
    %134 = vector.load %arg3[%c98, %c0_47] : memref<256x16xf32, #tpu.memory_space<vmem>>, vector<1x16xf32>
    %135 = vector.broadcast %134 : vector<1x16xf32> to vector<16x16xf32>
    %136 = arith.mulf %135, %28 : vector<16x16xf32>
    %137 = arith.addf %89, %136 : vector<16x16xf32>
    %c99 = arith.constant 99 : index
    %c0_48 = arith.constant 0 : index
    %138 = vector.load %arg3[%c99, %c0_48] : memref<256x16xf32, #tpu.memory_space<vmem>>, vector<1x16xf32>
    %139 = vector.broadcast %138 : vector<1x16xf32> to vector<16x16xf32>
    %140 = arith.mulf %139, %28 : vector<16x16xf32>
    %141 = arith.addf %93, %140 : vector<16x16xf32>
    %c112 = arith.constant 112 : index
    %c0_49 = arith.constant 0 : index
    %142 = vector.load %arg3[%c112, %c0_49] : memref<256x16xf32, #tpu.memory_space<vmem>>, vector<1x16xf32>
    %143 = vector.broadcast %142 : vector<1x16xf32> to vector<16x16xf32>
    %144 = arith.mulf %143, %29 : vector<16x16xf32>
    %145 = arith.addf %129, %144 : vector<16x16xf32>
    %c113 = arith.constant 113 : index
    %c0_50 = arith.constant 0 : index
    %146 = vector.load %arg3[%c113, %c0_50] : memref<256x16xf32, #tpu.memory_space<vmem>>, vector<1x16xf32>
    %147 = vector.broadcast %146 : vector<1x16xf32> to vector<16x16xf32>
    %148 = arith.mulf %147, %29 : vector<16x16xf32>
    %149 = arith.addf %133, %148 : vector<16x16xf32>
    %c114 = arith.constant 114 : index
    %c0_51 = arith.constant 0 : index
    %150 = vector.load %arg3[%c114, %c0_51] : memref<256x16xf32, #tpu.memory_space<vmem>>, vector<1x16xf32>
    %151 = vector.broadcast %150 : vector<1x16xf32> to vector<16x16xf32>
    %152 = arith.mulf %151, %29 : vector<16x16xf32>
    %153 = arith.addf %137, %152 : vector<16x16xf32>
    %c115 = arith.constant 115 : index
    %c0_52 = arith.constant 0 : index
    %154 = vector.load %arg3[%c115, %c0_52] : memref<256x16xf32, #tpu.memory_space<vmem>>, vector<1x16xf32>
    %155 = vector.broadcast %154 : vector<1x16xf32> to vector<16x16xf32>
    %156 = arith.mulf %155, %29 : vector<16x16xf32>
    %157 = arith.addf %141, %156 : vector<16x16xf32>
    %c0_i32_53 = arith.constant 0 : i32
    %158 = arith.addi %1, %c0_i32_53 : i32
    %c0_i32_54 = arith.constant 0 : i32
    %159 = arith.addi %158, %c0_i32_54 : i32
    %c0_55 = arith.constant 0 : index
    %c1_56 = arith.constant 1 : index
    %160 = arith.index_cast %159 : i32 to index
    %c0_57 = arith.constant 0 : index
    %161 = vector.load %arg2[%c0_55, %c1_56, %160, %c0_57] : memref<1x4x18x18xf32, #tpu.memory_space<vmem>>, vector<1x1x16x18xf32>
    %162 = vector.shape_cast %161 : vector<1x1x16x18xf32> to vector<16x18xf32>
    %c0_i32_58 = arith.constant 0 : i32
    %163 = arith.addi %1, %c0_i32_58 : i32
    %c1_i32_59 = arith.constant 1 : i32
    %164 = arith.addi %163, %c1_i32_59 : i32
    %c0_60 = arith.constant 0 : index
    %c1_61 = arith.constant 1 : index
    %165 = arith.index_cast %164 : i32 to index
    %c0_62 = arith.constant 0 : index
    %166 = vector.load %arg2[%c0_60, %c1_61, %165, %c0_62] : memref<1x4x18x18xf32, #tpu.memory_space<vmem>>, vector<1x1x16x18xf32>
    %167 = vector.shape_cast %166 : vector<1x1x16x18xf32> to vector<16x18xf32>
    %168 = vector.extract_strided_slice %162 {offsets = [0, 0], sizes = [16, 16], strides = [1, 1]} : vector<16x18xf32> to vector<16x16xf32>
    %169 = vector.extract_strided_slice %162 {offsets = [0, 1], sizes = [16, 16], strides = [1, 1]} : vector<16x18xf32> to vector<16x16xf32>
    %170 = vector.extract_strided_slice %162 {offsets = [0, 2], sizes = [16, 16], strides = [1, 1]} : vector<16x18xf32> to vector<16x16xf32>
    %171 = vector.extract_strided_slice %167 {offsets = [0, 0], sizes = [16, 16], strides = [1, 1]} : vector<16x18xf32> to vector<16x16xf32>
    %172 = vector.extract_strided_slice %167 {offsets = [0, 1], sizes = [16, 16], strides = [1, 1]} : vector<16x18xf32> to vector<16x16xf32>
    %173 = vector.extract_strided_slice %167 {offsets = [0, 2], sizes = [16, 16], strides = [1, 1]} : vector<16x18xf32> to vector<16x16xf32>
    %c4 = arith.constant 4 : index
    %c0_63 = arith.constant 0 : index
    %174 = vector.load %arg3[%c4, %c0_63] : memref<256x16xf32, #tpu.memory_space<vmem>>, vector<1x16xf32>
    %175 = vector.broadcast %174 : vector<1x16xf32> to vector<16x16xf32>
    %176 = arith.mulf %175, %168 : vector<16x16xf32>
    %177 = arith.addf %113, %176 : vector<16x16xf32>
    %c5 = arith.constant 5 : index
    %c0_64 = arith.constant 0 : index
    %178 = vector.load %arg3[%c5, %c0_64] : memref<256x16xf32, #tpu.memory_space<vmem>>, vector<1x16xf32>
    %179 = vector.broadcast %178 : vector<1x16xf32> to vector<16x16xf32>
    %180 = arith.mulf %179, %168 : vector<16x16xf32>
    %181 = arith.addf %117, %180 : vector<16x16xf32>
    %c6 = arith.constant 6 : index
    %c0_65 = arith.constant 0 : index
    %182 = vector.load %arg3[%c6, %c0_65] : memref<256x16xf32, #tpu.memory_space<vmem>>, vector<1x16xf32>
    %183 = vector.broadcast %182 : vector<1x16xf32> to vector<16x16xf32>
    %184 = arith.mulf %183, %168 : vector<16x16xf32>
    %185 = arith.addf %121, %184 : vector<16x16xf32>
    %c7 = arith.constant 7 : index
    %c0_66 = arith.constant 0 : index
    %186 = vector.load %arg3[%c7, %c0_66] : memref<256x16xf32, #tpu.memory_space<vmem>>, vector<1x16xf32>
    %187 = vector.broadcast %186 : vector<1x16xf32> to vector<16x16xf32>
    %188 = arith.mulf %187, %168 : vector<16x16xf32>
    %189 = arith.addf %125, %188 : vector<16x16xf32>
    %c20 = arith.constant 20 : index
    %c0_67 = arith.constant 0 : index
    %190 = vector.load %arg3[%c20, %c0_67] : memref<256x16xf32, #tpu.memory_space<vmem>>, vector<1x16xf32>
    %191 = vector.broadcast %190 : vector<1x16xf32> to vector<16x16xf32>
    %192 = arith.mulf %191, %169 : vector<16x16xf32>
    %193 = arith.addf %177, %192 : vector<16x16xf32>
    %c21 = arith.constant 21 : index
    %c0_68 = arith.constant 0 : index
    %194 = vector.load %arg3[%c21, %c0_68] : memref<256x16xf32, #tpu.memory_space<vmem>>, vector<1x16xf32>
    %195 = vector.broadcast %194 : vector<1x16xf32> to vector<16x16xf32>
    %196 = arith.mulf %195, %169 : vector<16x16xf32>
    %197 = arith.addf %181, %196 : vector<16x16xf32>
    %c22 = arith.constant 22 : index
    %c0_69 = arith.constant 0 : index
    %198 = vector.load %arg3[%c22, %c0_69] : memref<256x16xf32, #tpu.memory_space<vmem>>, vector<1x16xf32>
    %199 = vector.broadcast %198 : vector<1x16xf32> to vector<16x16xf32>
    %200 = arith.mulf %199, %169 : vector<16x16xf32>
    %201 = arith.addf %185, %200 : vector<16x16xf32>
    %c23 = arith.constant 23 : index
    %c0_70 = arith.constant 0 : index
    %202 = vector.load %arg3[%c23, %c0_70] : memref<256x16xf32, #tpu.memory_space<vmem>>, vector<1x16xf32>
    %203 = vector.broadcast %202 : vector<1x16xf32> to vector<16x16xf32>
    %204 = arith.mulf %203, %169 : vector<16x16xf32>
    %205 = arith.addf %189, %204 : vector<16x16xf32>
    %c68 = arith.constant 68 : index
    %c0_71 = arith.constant 0 : index
    %206 = vector.load %arg3[%c68, %c0_71] : memref<256x16xf32, #tpu.memory_space<vmem>>, vector<1x16xf32>
    %207 = vector.broadcast %206 : vector<1x16xf32> to vector<16x16xf32>
    %208 = arith.mulf %207, %169 : vector<16x16xf32>
    %209 = arith.addf %145, %208 : vector<16x16xf32>
    %c69 = arith.constant 69 : index
    %c0_72 = arith.constant 0 : index
    %210 = vector.load %arg3[%c69, %c0_72] : memref<256x16xf32, #tpu.memory_space<vmem>>, vector<1x16xf32>
    %211 = vector.broadcast %210 : vector<1x16xf32> to vector<16x16xf32>
    %212 = arith.mulf %211, %169 : vector<16x16xf32>
    %213 = arith.addf %149, %212 : vector<16x16xf32>
    %c70 = arith.constant 70 : index
    %c0_73 = arith.constant 0 : index
    %214 = vector.load %arg3[%c70, %c0_73] : memref<256x16xf32, #tpu.memory_space<vmem>>, vector<1x16xf32>
    %215 = vector.broadcast %214 : vector<1x16xf32> to vector<16x16xf32>
    %216 = arith.mulf %215, %169 : vector<16x16xf32>
    %217 = arith.addf %153, %216 : vector<16x16xf32>
    %c71 = arith.constant 71 : index
    %c0_74 = arith.constant 0 : index
    %218 = vector.load %arg3[%c71, %c0_74] : memref<256x16xf32, #tpu.memory_space<vmem>>, vector<1x16xf32>
    %219 = vector.broadcast %218 : vector<1x16xf32> to vector<16x16xf32>
    %220 = arith.mulf %219, %169 : vector<16x16xf32>
    %221 = arith.addf %157, %220 : vector<16x16xf32>
    %c84 = arith.constant 84 : index
    %c0_75 = arith.constant 0 : index
    %222 = vector.load %arg3[%c84, %c0_75] : memref<256x16xf32, #tpu.memory_space<vmem>>, vector<1x16xf32>
    %223 = vector.broadcast %222 : vector<1x16xf32> to vector<16x16xf32>
    %224 = arith.mulf %223, %170 : vector<16x16xf32>
    %225 = arith.addf %209, %224 : vector<16x16xf32>
    %c85 = arith.constant 85 : index
    %c0_76 = arith.constant 0 : index
    %226 = vector.load %arg3[%c85, %c0_76] : memref<256x16xf32, #tpu.memory_space<vmem>>, vector<1x16xf32>
    %227 = vector.broadcast %226 : vector<1x16xf32> to vector<16x16xf32>
    %228 = arith.mulf %227, %170 : vector<16x16xf32>
    %229 = arith.addf %213, %228 : vector<16x16xf32>
    %c86 = arith.constant 86 : index
    %c0_77 = arith.constant 0 : index
    %230 = vector.load %arg3[%c86, %c0_77] : memref<256x16xf32, #tpu.memory_space<vmem>>, vector<1x16xf32>
    %231 = vector.broadcast %230 : vector<1x16xf32> to vector<16x16xf32>
    %232 = arith.mulf %231, %170 : vector<16x16xf32>
    %233 = arith.addf %217, %232 : vector<16x16xf32>
    %c87 = arith.constant 87 : index
    %c0_78 = arith.constant 0 : index
    %234 = vector.load %arg3[%c87, %c0_78] : memref<256x16xf32, #tpu.memory_space<vmem>>, vector<1x16xf32>
    %235 = vector.broadcast %234 : vector<1x16xf32> to vector<16x16xf32>
    %236 = arith.mulf %235, %170 : vector<16x16xf32>
    %237 = arith.addf %221, %236 : vector<16x16xf32>
    %c36 = arith.constant 36 : index
    %c0_79 = arith.constant 0 : index
    %238 = vector.load %arg3[%c36, %c0_79] : memref<256x16xf32, #tpu.memory_space<vmem>>, vector<1x16xf32>
    %239 = vector.broadcast %238 : vector<1x16xf32> to vector<16x16xf32>
    %240 = arith.mulf %239, %171 : vector<16x16xf32>
    %241 = arith.addf %193, %240 : vector<16x16xf32>
    %c37 = arith.constant 37 : index
    %c0_80 = arith.constant 0 : index
    %242 = vector.load %arg3[%c37, %c0_80] : memref<256x16xf32, #tpu.memory_space<vmem>>, vector<1x16xf32>
    %243 = vector.broadcast %242 : vector<1x16xf32> to vector<16x16xf32>
    %244 = arith.mulf %243, %171 : vector<16x16xf32>
    %245 = arith.addf %197, %244 : vector<16x16xf32>
    %c38 = arith.constant 38 : index
    %c0_81 = arith.constant 0 : index
    %246 = vector.load %arg3[%c38, %c0_81] : memref<256x16xf32, #tpu.memory_space<vmem>>, vector<1x16xf32>
    %247 = vector.broadcast %246 : vector<1x16xf32> to vector<16x16xf32>
    %248 = arith.mulf %247, %171 : vector<16x16xf32>
    %249 = arith.addf %201, %248 : vector<16x16xf32>
    %c39 = arith.constant 39 : index
    %c0_82 = arith.constant 0 : index
    %250 = vector.load %arg3[%c39, %c0_82] : memref<256x16xf32, #tpu.memory_space<vmem>>, vector<1x16xf32>
    %251 = vector.broadcast %250 : vector<1x16xf32> to vector<16x16xf32>
    %252 = arith.mulf %251, %171 : vector<16x16xf32>
    %253 = arith.addf %205, %252 : vector<16x16xf32>
    %c52 = arith.constant 52 : index
    %c0_83 = arith.constant 0 : index
    %254 = vector.load %arg3[%c52, %c0_83] : memref<256x16xf32, #tpu.memory_space<vmem>>, vector<1x16xf32>
    %255 = vector.broadcast %254 : vector<1x16xf32> to vector<16x16xf32>
    %256 = arith.mulf %255, %172 : vector<16x16xf32>
    %257 = arith.addf %241, %256 : vector<16x16xf32>
    %c53 = arith.constant 53 : index
    %c0_84 = arith.constant 0 : index
    %258 = vector.load %arg3[%c53, %c0_84] : memref<256x16xf32, #tpu.memory_space<vmem>>, vector<1x16xf32>
    %259 = vector.broadcast %258 : vector<1x16xf32> to vector<16x16xf32>
    %260 = arith.mulf %259, %172 : vector<16x16xf32>
    %261 = arith.addf %245, %260 : vector<16x16xf32>
    %c54 = arith.constant 54 : index
    %c0_85 = arith.constant 0 : index
    %262 = vector.load %arg3[%c54, %c0_85] : memref<256x16xf32, #tpu.memory_space<vmem>>, vector<1x16xf32>
    %263 = vector.broadcast %262 : vector<1x16xf32> to vector<16x16xf32>
    %264 = arith.mulf %263, %172 : vector<16x16xf32>
    %265 = arith.addf %249, %264 : vector<16x16xf32>
    %c55 = arith.constant 55 : index
    %c0_86 = arith.constant 0 : index
    %266 = vector.load %arg3[%c55, %c0_86] : memref<256x16xf32, #tpu.memory_space<vmem>>, vector<1x16xf32>
    %267 = vector.broadcast %266 : vector<1x16xf32> to vector<16x16xf32>
    %268 = arith.mulf %267, %172 : vector<16x16xf32>
    %269 = arith.addf %253, %268 : vector<16x16xf32>
    %c100 = arith.constant 100 : index
    %c0_87 = arith.constant 0 : index
    %270 = vector.load %arg3[%c100, %c0_87] : memref<256x16xf32, #tpu.memory_space<vmem>>, vector<1x16xf32>
    %271 = vector.broadcast %270 : vector<1x16xf32> to vector<16x16xf32>
    %272 = arith.mulf %271, %172 : vector<16x16xf32>
    %273 = arith.addf %225, %272 : vector<16x16xf32>
    %c101 = arith.constant 101 : index
    %c0_88 = arith.constant 0 : index
    %274 = vector.load %arg3[%c101, %c0_88] : memref<256x16xf32, #tpu.memory_space<vmem>>, vector<1x16xf32>
    %275 = vector.broadcast %274 : vector<1x16xf32> to vector<16x16xf32>
    %276 = arith.mulf %275, %172 : vector<16x16xf32>
    %277 = arith.addf %229, %276 : vector<16x16xf32>
    %c102 = arith.constant 102 : index
    %c0_89 = arith.constant 0 : index
    %278 = vector.load %arg3[%c102, %c0_89] : memref<256x16xf32, #tpu.memory_space<vmem>>, vector<1x16xf32>
    %279 = vector.broadcast %278 : vector<1x16xf32> to vector<16x16xf32>
    %280 = arith.mulf %279, %172 : vector<16x16xf32>
    %281 = arith.addf %233, %280 : vector<16x16xf32>
    %c103 = arith.constant 103 : index
    %c0_90 = arith.constant 0 : index
    %282 = vector.load %arg3[%c103, %c0_90] : memref<256x16xf32, #tpu.memory_space<vmem>>, vector<1x16xf32>
    %283 = vector.broadcast %282 : vector<1x16xf32> to vector<16x16xf32>
    %284 = arith.mulf %283, %172 : vector<16x16xf32>
    %285 = arith.addf %237, %284 : vector<16x16xf32>
    %c116 = arith.constant 116 : index
    %c0_91 = arith.constant 0 : index
    %286 = vector.load %arg3[%c116, %c0_91] : memref<256x16xf32, #tpu.memory_space<vmem>>, vector<1x16xf32>
    %287 = vector.broadcast %286 : vector<1x16xf32> to vector<16x16xf32>
    %288 = arith.mulf %287, %173 : vector<16x16xf32>
    %289 = arith.addf %273, %288 : vector<16x16xf32>
    %c117 = arith.constant 117 : index
    %c0_92 = arith.constant 0 : index
    %290 = vector.load %arg3[%c117, %c0_92] : memref<256x16xf32, #tpu.memory_space<vmem>>, vector<1x16xf32>
    %291 = vector.broadcast %290 : vector<1x16xf32> to vector<16x16xf32>
    %292 = arith.mulf %291, %173 : vector<16x16xf32>
    %293 = arith.addf %277, %292 : vector<16x16xf32>
    %c118 = arith.constant 118 : index
    %c0_93 = arith.constant 0 : index
    %294 = vector.load %arg3[%c118, %c0_93] : memref<256x16xf32, #tpu.memory_space<vmem>>, vector<1x16xf32>
    %295 = vector.broadcast %294 : vector<1x16xf32> to vector<16x16xf32>
    %296 = arith.mulf %295, %173 : vector<16x16xf32>
    %297 = arith.addf %281, %296 : vector<16x16xf32>
    %c119 = arith.constant 119 : index
    %c0_94 = arith.constant 0 : index
    %298 = vector.load %arg3[%c119, %c0_94] : memref<256x16xf32, #tpu.memory_space<vmem>>, vector<1x16xf32>
    %299 = vector.broadcast %298 : vector<1x16xf32> to vector<16x16xf32>
    %300 = arith.mulf %299, %173 : vector<16x16xf32>
    %301 = arith.addf %285, %300 : vector<16x16xf32>
    %c0_i32_95 = arith.constant 0 : i32
    %302 = arith.addi %1, %c0_i32_95 : i32
    %c0_i32_96 = arith.constant 0 : i32
    %303 = arith.addi %302, %c0_i32_96 : i32
    %c0_97 = arith.constant 0 : index
    %c2_98 = arith.constant 2 : index
    %304 = arith.index_cast %303 : i32 to index
    %c0_99 = arith.constant 0 : index
    %305 = vector.load %arg2[%c0_97, %c2_98, %304, %c0_99] : memref<1x4x18x18xf32, #tpu.memory_space<vmem>>, vector<1x1x16x18xf32>
    %306 = vector.shape_cast %305 : vector<1x1x16x18xf32> to vector<16x18xf32>
    %c0_i32_100 = arith.constant 0 : i32
    %307 = arith.addi %1, %c0_i32_100 : i32
    %c1_i32_101 = arith.constant 1 : i32
    %308 = arith.addi %307, %c1_i32_101 : i32
    %c0_102 = arith.constant 0 : index
    %c2_103 = arith.constant 2 : index
    %309 = arith.index_cast %308 : i32 to index
    %c0_104 = arith.constant 0 : index
    %310 = vector.load %arg2[%c0_102, %c2_103, %309, %c0_104] : memref<1x4x18x18xf32, #tpu.memory_space<vmem>>, vector<1x1x16x18xf32>
    %311 = vector.shape_cast %310 : vector<1x1x16x18xf32> to vector<16x18xf32>
    %312 = vector.extract_strided_slice %306 {offsets = [0, 0], sizes = [16, 16], strides = [1, 1]} : vector<16x18xf32> to vector<16x16xf32>
    %313 = vector.extract_strided_slice %306 {offsets = [0, 1], sizes = [16, 16], strides = [1, 1]} : vector<16x18xf32> to vector<16x16xf32>
    %314 = vector.extract_strided_slice %306 {offsets = [0, 2], sizes = [16, 16], strides = [1, 1]} : vector<16x18xf32> to vector<16x16xf32>
    %315 = vector.extract_strided_slice %311 {offsets = [0, 0], sizes = [16, 16], strides = [1, 1]} : vector<16x18xf32> to vector<16x16xf32>
    %316 = vector.extract_strided_slice %311 {offsets = [0, 1], sizes = [16, 16], strides = [1, 1]} : vector<16x18xf32> to vector<16x16xf32>
    %317 = vector.extract_strided_slice %311 {offsets = [0, 2], sizes = [16, 16], strides = [1, 1]} : vector<16x18xf32> to vector<16x16xf32>
    %c8 = arith.constant 8 : index
    %c0_105 = arith.constant 0 : index
    %318 = vector.load %arg3[%c8, %c0_105] : memref<256x16xf32, #tpu.memory_space<vmem>>, vector<1x16xf32>
    %319 = vector.broadcast %318 : vector<1x16xf32> to vector<16x16xf32>
    %320 = arith.mulf %319, %312 : vector<16x16xf32>
    %321 = arith.addf %257, %320 : vector<16x16xf32>
    %c9 = arith.constant 9 : index
    %c0_106 = arith.constant 0 : index
    %322 = vector.load %arg3[%c9, %c0_106] : memref<256x16xf32, #tpu.memory_space<vmem>>, vector<1x16xf32>
    %323 = vector.broadcast %322 : vector<1x16xf32> to vector<16x16xf32>
    %324 = arith.mulf %323, %312 : vector<16x16xf32>
    %325 = arith.addf %261, %324 : vector<16x16xf32>
    %c10 = arith.constant 10 : index
    %c0_107 = arith.constant 0 : index
    %326 = vector.load %arg3[%c10, %c0_107] : memref<256x16xf32, #tpu.memory_space<vmem>>, vector<1x16xf32>
    %327 = vector.broadcast %326 : vector<1x16xf32> to vector<16x16xf32>
    %328 = arith.mulf %327, %312 : vector<16x16xf32>
    %329 = arith.addf %265, %328 : vector<16x16xf32>
    %c11 = arith.constant 11 : index
    %c0_108 = arith.constant 0 : index
    %330 = vector.load %arg3[%c11, %c0_108] : memref<256x16xf32, #tpu.memory_space<vmem>>, vector<1x16xf32>
    %331 = vector.broadcast %330 : vector<1x16xf32> to vector<16x16xf32>
    %332 = arith.mulf %331, %312 : vector<16x16xf32>
    %333 = arith.addf %269, %332 : vector<16x16xf32>
    %c24 = arith.constant 24 : index
    %c0_109 = arith.constant 0 : index
    %334 = vector.load %arg3[%c24, %c0_109] : memref<256x16xf32, #tpu.memory_space<vmem>>, vector<1x16xf32>
    %335 = vector.broadcast %334 : vector<1x16xf32> to vector<16x16xf32>
    %336 = arith.mulf %335, %313 : vector<16x16xf32>
    %337 = arith.addf %321, %336 : vector<16x16xf32>
    %c25 = arith.constant 25 : index
    %c0_110 = arith.constant 0 : index
    %338 = vector.load %arg3[%c25, %c0_110] : memref<256x16xf32, #tpu.memory_space<vmem>>, vector<1x16xf32>
    %339 = vector.broadcast %338 : vector<1x16xf32> to vector<16x16xf32>
    %340 = arith.mulf %339, %313 : vector<16x16xf32>
    %341 = arith.addf %325, %340 : vector<16x16xf32>
    %c26 = arith.constant 26 : index
    %c0_111 = arith.constant 0 : index
    %342 = vector.load %arg3[%c26, %c0_111] : memref<256x16xf32, #tpu.memory_space<vmem>>, vector<1x16xf32>
    %343 = vector.broadcast %342 : vector<1x16xf32> to vector<16x16xf32>
    %344 = arith.mulf %343, %313 : vector<16x16xf32>
    %345 = arith.addf %329, %344 : vector<16x16xf32>
    %c27 = arith.constant 27 : index
    %c0_112 = arith.constant 0 : index
    %346 = vector.load %arg3[%c27, %c0_112] : memref<256x16xf32, #tpu.memory_space<vmem>>, vector<1x16xf32>
    %347 = vector.broadcast %346 : vector<1x16xf32> to vector<16x16xf32>
    %348 = arith.mulf %347, %313 : vector<16x16xf32>
    %349 = arith.addf %333, %348 : vector<16x16xf32>
    %c72 = arith.constant 72 : index
    %c0_113 = arith.constant 0 : index
    %350 = vector.load %arg3[%c72, %c0_113] : memref<256x16xf32, #tpu.memory_space<vmem>>, vector<1x16xf32>
    %351 = vector.broadcast %350 : vector<1x16xf32> to vector<16x16xf32>
    %352 = arith.mulf %351, %313 : vector<16x16xf32>
    %353 = arith.addf %289, %352 : vector<16x16xf32>
    %c73 = arith.constant 73 : index
    %c0_114 = arith.constant 0 : index
    %354 = vector.load %arg3[%c73, %c0_114] : memref<256x16xf32, #tpu.memory_space<vmem>>, vector<1x16xf32>
    %355 = vector.broadcast %354 : vector<1x16xf32> to vector<16x16xf32>
    %356 = arith.mulf %355, %313 : vector<16x16xf32>
    %357 = arith.addf %293, %356 : vector<16x16xf32>
    %c74 = arith.constant 74 : index
    %c0_115 = arith.constant 0 : index
    %358 = vector.load %arg3[%c74, %c0_115] : memref<256x16xf32, #tpu.memory_space<vmem>>, vector<1x16xf32>
    %359 = vector.broadcast %358 : vector<1x16xf32> to vector<16x16xf32>
    %360 = arith.mulf %359, %313 : vector<16x16xf32>
    %361 = arith.addf %297, %360 : vector<16x16xf32>
    %c75 = arith.constant 75 : index
    %c0_116 = arith.constant 0 : index
    %362 = vector.load %arg3[%c75, %c0_116] : memref<256x16xf32, #tpu.memory_space<vmem>>, vector<1x16xf32>
    %363 = vector.broadcast %362 : vector<1x16xf32> to vector<16x16xf32>
    %364 = arith.mulf %363, %313 : vector<16x16xf32>
    %365 = arith.addf %301, %364 : vector<16x16xf32>
    %c88 = arith.constant 88 : index
    %c0_117 = arith.constant 0 : index
    %366 = vector.load %arg3[%c88, %c0_117] : memref<256x16xf32, #tpu.memory_space<vmem>>, vector<1x16xf32>
    %367 = vector.broadcast %366 : vector<1x16xf32> to vector<16x16xf32>
    %368 = arith.mulf %367, %314 : vector<16x16xf32>
    %369 = arith.addf %353, %368 : vector<16x16xf32>
    %c89 = arith.constant 89 : index
    %c0_118 = arith.constant 0 : index
    %370 = vector.load %arg3[%c89, %c0_118] : memref<256x16xf32, #tpu.memory_space<vmem>>, vector<1x16xf32>
    %371 = vector.broadcast %370 : vector<1x16xf32> to vector<16x16xf32>
    %372 = arith.mulf %371, %314 : vector<16x16xf32>
    %373 = arith.addf %357, %372 : vector<16x16xf32>
    %c90 = arith.constant 90 : index
    %c0_119 = arith.constant 0 : index
    %374 = vector.load %arg3[%c90, %c0_119] : memref<256x16xf32, #tpu.memory_space<vmem>>, vector<1x16xf32>
    %375 = vector.broadcast %374 : vector<1x16xf32> to vector<16x16xf32>
    %376 = arith.mulf %375, %314 : vector<16x16xf32>
    %377 = arith.addf %361, %376 : vector<16x16xf32>
    %c91 = arith.constant 91 : index
    %c0_120 = arith.constant 0 : index
    %378 = vector.load %arg3[%c91, %c0_120] : memref<256x16xf32, #tpu.memory_space<vmem>>, vector<1x16xf32>
    %379 = vector.broadcast %378 : vector<1x16xf32> to vector<16x16xf32>
    %380 = arith.mulf %379, %314 : vector<16x16xf32>
    %381 = arith.addf %365, %380 : vector<16x16xf32>
    %c40 = arith.constant 40 : index
    %c0_121 = arith.constant 0 : index
    %382 = vector.load %arg3[%c40, %c0_121] : memref<256x16xf32, #tpu.memory_space<vmem>>, vector<1x16xf32>
    %383 = vector.broadcast %382 : vector<1x16xf32> to vector<16x16xf32>
    %384 = arith.mulf %383, %315 : vector<16x16xf32>
    %385 = arith.addf %337, %384 : vector<16x16xf32>
    %c41 = arith.constant 41 : index
    %c0_122 = arith.constant 0 : index
    %386 = vector.load %arg3[%c41, %c0_122] : memref<256x16xf32, #tpu.memory_space<vmem>>, vector<1x16xf32>
    %387 = vector.broadcast %386 : vector<1x16xf32> to vector<16x16xf32>
    %388 = arith.mulf %387, %315 : vector<16x16xf32>
    %389 = arith.addf %341, %388 : vector<16x16xf32>
    %c42 = arith.constant 42 : index
    %c0_123 = arith.constant 0 : index
    %390 = vector.load %arg3[%c42, %c0_123] : memref<256x16xf32, #tpu.memory_space<vmem>>, vector<1x16xf32>
    %391 = vector.broadcast %390 : vector<1x16xf32> to vector<16x16xf32>
    %392 = arith.mulf %391, %315 : vector<16x16xf32>
    %393 = arith.addf %345, %392 : vector<16x16xf32>
    %c43 = arith.constant 43 : index
    %c0_124 = arith.constant 0 : index
    %394 = vector.load %arg3[%c43, %c0_124] : memref<256x16xf32, #tpu.memory_space<vmem>>, vector<1x16xf32>
    %395 = vector.broadcast %394 : vector<1x16xf32> to vector<16x16xf32>
    %396 = arith.mulf %395, %315 : vector<16x16xf32>
    %397 = arith.addf %349, %396 : vector<16x16xf32>
    %c56 = arith.constant 56 : index
    %c0_125 = arith.constant 0 : index
    %398 = vector.load %arg3[%c56, %c0_125] : memref<256x16xf32, #tpu.memory_space<vmem>>, vector<1x16xf32>
    %399 = vector.broadcast %398 : vector<1x16xf32> to vector<16x16xf32>
    %400 = arith.mulf %399, %316 : vector<16x16xf32>
    %401 = arith.addf %385, %400 : vector<16x16xf32>
    %c57 = arith.constant 57 : index
    %c0_126 = arith.constant 0 : index
    %402 = vector.load %arg3[%c57, %c0_126] : memref<256x16xf32, #tpu.memory_space<vmem>>, vector<1x16xf32>
    %403 = vector.broadcast %402 : vector<1x16xf32> to vector<16x16xf32>
    %404 = arith.mulf %403, %316 : vector<16x16xf32>
    %405 = arith.addf %389, %404 : vector<16x16xf32>
    %c58 = arith.constant 58 : index
    %c0_127 = arith.constant 0 : index
    %406 = vector.load %arg3[%c58, %c0_127] : memref<256x16xf32, #tpu.memory_space<vmem>>, vector<1x16xf32>
    %407 = vector.broadcast %406 : vector<1x16xf32> to vector<16x16xf32>
    %408 = arith.mulf %407, %316 : vector<16x16xf32>
    %409 = arith.addf %393, %408 : vector<16x16xf32>
    %c59 = arith.constant 59 : index
    %c0_128 = arith.constant 0 : index
    %410 = vector.load %arg3[%c59, %c0_128] : memref<256x16xf32, #tpu.memory_space<vmem>>, vector<1x16xf32>
    %411 = vector.broadcast %410 : vector<1x16xf32> to vector<16x16xf32>
    %412 = arith.mulf %411, %316 : vector<16x16xf32>
    %413 = arith.addf %397, %412 : vector<16x16xf32>
    %c104 = arith.constant 104 : index
    %c0_129 = arith.constant 0 : index
    %414 = vector.load %arg3[%c104, %c0_129] : memref<256x16xf32, #tpu.memory_space<vmem>>, vector<1x16xf32>
    %415 = vector.broadcast %414 : vector<1x16xf32> to vector<16x16xf32>
    %416 = arith.mulf %415, %316 : vector<16x16xf32>
    %417 = arith.addf %369, %416 : vector<16x16xf32>
    %c105 = arith.constant 105 : index
    %c0_130 = arith.constant 0 : index
    %418 = vector.load %arg3[%c105, %c0_130] : memref<256x16xf32, #tpu.memory_space<vmem>>, vector<1x16xf32>
    %419 = vector.broadcast %418 : vector<1x16xf32> to vector<16x16xf32>
    %420 = arith.mulf %419, %316 : vector<16x16xf32>
    %421 = arith.addf %373, %420 : vector<16x16xf32>
    %c106 = arith.constant 106 : index
    %c0_131 = arith.constant 0 : index
    %422 = vector.load %arg3[%c106, %c0_131] : memref<256x16xf32, #tpu.memory_space<vmem>>, vector<1x16xf32>
    %423 = vector.broadcast %422 : vector<1x16xf32> to vector<16x16xf32>
    %424 = arith.mulf %423, %316 : vector<16x16xf32>
    %425 = arith.addf %377, %424 : vector<16x16xf32>
    %c107 = arith.constant 107 : index
    %c0_132 = arith.constant 0 : index
    %426 = vector.load %arg3[%c107, %c0_132] : memref<256x16xf32, #tpu.memory_space<vmem>>, vector<1x16xf32>
    %427 = vector.broadcast %426 : vector<1x16xf32> to vector<16x16xf32>
    %428 = arith.mulf %427, %316 : vector<16x16xf32>
    %429 = arith.addf %381, %428 : vector<16x16xf32>
    %c120 = arith.constant 120 : index
    %c0_133 = arith.constant 0 : index
    %430 = vector.load %arg3[%c120, %c0_133] : memref<256x16xf32, #tpu.memory_space<vmem>>, vector<1x16xf32>
    %431 = vector.broadcast %430 : vector<1x16xf32> to vector<16x16xf32>
    %432 = arith.mulf %431, %317 : vector<16x16xf32>
    %433 = arith.addf %417, %432 : vector<16x16xf32>
    %c121 = arith.constant 121 : index
    %c0_134 = arith.constant 0 : index
    %434 = vector.load %arg3[%c121, %c0_134] : memref<256x16xf32, #tpu.memory_space<vmem>>, vector<1x16xf32>
    %435 = vector.broadcast %434 : vector<1x16xf32> to vector<16x16xf32>
    %436 = arith.mulf %435, %317 : vector<16x16xf32>
    %437 = arith.addf %421, %436 : vector<16x16xf32>
    %c122 = arith.constant 122 : index
    %c0_135 = arith.constant 0 : index
    %438 = vector.load %arg3[%c122, %c0_135] : memref<256x16xf32, #tpu.memory_space<vmem>>, vector<1x16xf32>
    %439 = vector.broadcast %438 : vector<1x16xf32> to vector<16x16xf32>
    %440 = arith.mulf %439, %317 : vector<16x16xf32>
    %441 = arith.addf %425, %440 : vector<16x16xf32>
    %c123 = arith.constant 123 : index
    %c0_136 = arith.constant 0 : index
    %442 = vector.load %arg3[%c123, %c0_136] : memref<256x16xf32, #tpu.memory_space<vmem>>, vector<1x16xf32>
    %443 = vector.broadcast %442 : vector<1x16xf32> to vector<16x16xf32>
    %444 = arith.mulf %443, %317 : vector<16x16xf32>
    %445 = arith.addf %429, %444 : vector<16x16xf32>
    %c0_i32_137 = arith.constant 0 : i32
    %446 = arith.addi %1, %c0_i32_137 : i32
    %c0_i32_138 = arith.constant 0 : i32
    %447 = arith.addi %446, %c0_i32_138 : i32
    %c0_139 = arith.constant 0 : index
    %c3_140 = arith.constant 3 : index
    %448 = arith.index_cast %447 : i32 to index
    %c0_141 = arith.constant 0 : index
    %449 = vector.load %arg2[%c0_139, %c3_140, %448, %c0_141] : memref<1x4x18x18xf32, #tpu.memory_space<vmem>>, vector<1x1x16x18xf32>
    %450 = vector.shape_cast %449 : vector<1x1x16x18xf32> to vector<16x18xf32>
    %c0_i32_142 = arith.constant 0 : i32
    %451 = arith.addi %1, %c0_i32_142 : i32
    %c1_i32_143 = arith.constant 1 : i32
    %452 = arith.addi %451, %c1_i32_143 : i32
    %c0_144 = arith.constant 0 : index
    %c3_145 = arith.constant 3 : index
    %453 = arith.index_cast %452 : i32 to index
    %c0_146 = arith.constant 0 : index
    %454 = vector.load %arg2[%c0_144, %c3_145, %453, %c0_146] : memref<1x4x18x18xf32, #tpu.memory_space<vmem>>, vector<1x1x16x18xf32>
    %455 = vector.shape_cast %454 : vector<1x1x16x18xf32> to vector<16x18xf32>
    %456 = vector.extract_strided_slice %450 {offsets = [0, 0], sizes = [16, 16], strides = [1, 1]} : vector<16x18xf32> to vector<16x16xf32>
    %457 = vector.extract_strided_slice %450 {offsets = [0, 1], sizes = [16, 16], strides = [1, 1]} : vector<16x18xf32> to vector<16x16xf32>
    %458 = vector.extract_strided_slice %450 {offsets = [0, 2], sizes = [16, 16], strides = [1, 1]} : vector<16x18xf32> to vector<16x16xf32>
    %459 = vector.extract_strided_slice %455 {offsets = [0, 0], sizes = [16, 16], strides = [1, 1]} : vector<16x18xf32> to vector<16x16xf32>
    %460 = vector.extract_strided_slice %455 {offsets = [0, 1], sizes = [16, 16], strides = [1, 1]} : vector<16x18xf32> to vector<16x16xf32>
    %461 = vector.extract_strided_slice %455 {offsets = [0, 2], sizes = [16, 16], strides = [1, 1]} : vector<16x18xf32> to vector<16x16xf32>
    %c12 = arith.constant 12 : index
    %c0_147 = arith.constant 0 : index
    %462 = vector.load %arg3[%c12, %c0_147] : memref<256x16xf32, #tpu.memory_space<vmem>>, vector<1x16xf32>
    %463 = vector.broadcast %462 : vector<1x16xf32> to vector<16x16xf32>
    %464 = arith.mulf %463, %456 : vector<16x16xf32>
    %465 = arith.addf %401, %464 : vector<16x16xf32>
    %c13 = arith.constant 13 : index
    %c0_148 = arith.constant 0 : index
    %466 = vector.load %arg3[%c13, %c0_148] : memref<256x16xf32, #tpu.memory_space<vmem>>, vector<1x16xf32>
    %467 = vector.broadcast %466 : vector<1x16xf32> to vector<16x16xf32>
    %468 = arith.mulf %467, %456 : vector<16x16xf32>
    %469 = arith.addf %405, %468 : vector<16x16xf32>
    %c14 = arith.constant 14 : index
    %c0_149 = arith.constant 0 : index
    %470 = vector.load %arg3[%c14, %c0_149] : memref<256x16xf32, #tpu.memory_space<vmem>>, vector<1x16xf32>
    %471 = vector.broadcast %470 : vector<1x16xf32> to vector<16x16xf32>
    %472 = arith.mulf %471, %456 : vector<16x16xf32>
    %473 = arith.addf %409, %472 : vector<16x16xf32>
    %c15 = arith.constant 15 : index
    %c0_150 = arith.constant 0 : index
    %474 = vector.load %arg3[%c15, %c0_150] : memref<256x16xf32, #tpu.memory_space<vmem>>, vector<1x16xf32>
    %475 = vector.broadcast %474 : vector<1x16xf32> to vector<16x16xf32>
    %476 = arith.mulf %475, %456 : vector<16x16xf32>
    %477 = arith.addf %413, %476 : vector<16x16xf32>
    %c28 = arith.constant 28 : index
    %c0_151 = arith.constant 0 : index
    %478 = vector.load %arg3[%c28, %c0_151] : memref<256x16xf32, #tpu.memory_space<vmem>>, vector<1x16xf32>
    %479 = vector.broadcast %478 : vector<1x16xf32> to vector<16x16xf32>
    %480 = arith.mulf %479, %457 : vector<16x16xf32>
    %481 = arith.addf %465, %480 : vector<16x16xf32>
    %c29 = arith.constant 29 : index
    %c0_152 = arith.constant 0 : index
    %482 = vector.load %arg3[%c29, %c0_152] : memref<256x16xf32, #tpu.memory_space<vmem>>, vector<1x16xf32>
    %483 = vector.broadcast %482 : vector<1x16xf32> to vector<16x16xf32>
    %484 = arith.mulf %483, %457 : vector<16x16xf32>
    %485 = arith.addf %469, %484 : vector<16x16xf32>
    %c30 = arith.constant 30 : index
    %c0_153 = arith.constant 0 : index
    %486 = vector.load %arg3[%c30, %c0_153] : memref<256x16xf32, #tpu.memory_space<vmem>>, vector<1x16xf32>
    %487 = vector.broadcast %486 : vector<1x16xf32> to vector<16x16xf32>
    %488 = arith.mulf %487, %457 : vector<16x16xf32>
    %489 = arith.addf %473, %488 : vector<16x16xf32>
    %c31 = arith.constant 31 : index
    %c0_154 = arith.constant 0 : index
    %490 = vector.load %arg3[%c31, %c0_154] : memref<256x16xf32, #tpu.memory_space<vmem>>, vector<1x16xf32>
    %491 = vector.broadcast %490 : vector<1x16xf32> to vector<16x16xf32>
    %492 = arith.mulf %491, %457 : vector<16x16xf32>
    %493 = arith.addf %477, %492 : vector<16x16xf32>
    %c76 = arith.constant 76 : index
    %c0_155 = arith.constant 0 : index
    %494 = vector.load %arg3[%c76, %c0_155] : memref<256x16xf32, #tpu.memory_space<vmem>>, vector<1x16xf32>
    %495 = vector.broadcast %494 : vector<1x16xf32> to vector<16x16xf32>
    %496 = arith.mulf %495, %457 : vector<16x16xf32>
    %497 = arith.addf %433, %496 : vector<16x16xf32>
    %c77 = arith.constant 77 : index
    %c0_156 = arith.constant 0 : index
    %498 = vector.load %arg3[%c77, %c0_156] : memref<256x16xf32, #tpu.memory_space<vmem>>, vector<1x16xf32>
    %499 = vector.broadcast %498 : vector<1x16xf32> to vector<16x16xf32>
    %500 = arith.mulf %499, %457 : vector<16x16xf32>
    %501 = arith.addf %437, %500 : vector<16x16xf32>
    %c78 = arith.constant 78 : index
    %c0_157 = arith.constant 0 : index
    %502 = vector.load %arg3[%c78, %c0_157] : memref<256x16xf32, #tpu.memory_space<vmem>>, vector<1x16xf32>
    %503 = vector.broadcast %502 : vector<1x16xf32> to vector<16x16xf32>
    %504 = arith.mulf %503, %457 : vector<16x16xf32>
    %505 = arith.addf %441, %504 : vector<16x16xf32>
    %c79 = arith.constant 79 : index
    %c0_158 = arith.constant 0 : index
    %506 = vector.load %arg3[%c79, %c0_158] : memref<256x16xf32, #tpu.memory_space<vmem>>, vector<1x16xf32>
    %507 = vector.broadcast %506 : vector<1x16xf32> to vector<16x16xf32>
    %508 = arith.mulf %507, %457 : vector<16x16xf32>
    %509 = arith.addf %445, %508 : vector<16x16xf32>
    %c92 = arith.constant 92 : index
    %c0_159 = arith.constant 0 : index
    %510 = vector.load %arg3[%c92, %c0_159] : memref<256x16xf32, #tpu.memory_space<vmem>>, vector<1x16xf32>
    %511 = vector.broadcast %510 : vector<1x16xf32> to vector<16x16xf32>
    %512 = arith.mulf %511, %458 : vector<16x16xf32>
    %513 = arith.addf %497, %512 : vector<16x16xf32>
    %c93 = arith.constant 93 : index
    %c0_160 = arith.constant 0 : index
    %514 = vector.load %arg3[%c93, %c0_160] : memref<256x16xf32, #tpu.memory_space<vmem>>, vector<1x16xf32>
    %515 = vector.broadcast %514 : vector<1x16xf32> to vector<16x16xf32>
    %516 = arith.mulf %515, %458 : vector<16x16xf32>
    %517 = arith.addf %501, %516 : vector<16x16xf32>
    %c94 = arith.constant 94 : index
    %c0_161 = arith.constant 0 : index
    %518 = vector.load %arg3[%c94, %c0_161] : memref<256x16xf32, #tpu.memory_space<vmem>>, vector<1x16xf32>
    %519 = vector.broadcast %518 : vector<1x16xf32> to vector<16x16xf32>
    %520 = arith.mulf %519, %458 : vector<16x16xf32>
    %521 = arith.addf %505, %520 : vector<16x16xf32>
    %c95 = arith.constant 95 : index
    %c0_162 = arith.constant 0 : index
    %522 = vector.load %arg3[%c95, %c0_162] : memref<256x16xf32, #tpu.memory_space<vmem>>, vector<1x16xf32>
    %523 = vector.broadcast %522 : vector<1x16xf32> to vector<16x16xf32>
    %524 = arith.mulf %523, %458 : vector<16x16xf32>
    %525 = arith.addf %509, %524 : vector<16x16xf32>
    %c44 = arith.constant 44 : index
    %c0_163 = arith.constant 0 : index
    %526 = vector.load %arg3[%c44, %c0_163] : memref<256x16xf32, #tpu.memory_space<vmem>>, vector<1x16xf32>
    %527 = vector.broadcast %526 : vector<1x16xf32> to vector<16x16xf32>
    %528 = arith.mulf %527, %459 : vector<16x16xf32>
    %529 = arith.addf %481, %528 : vector<16x16xf32>
    %c45 = arith.constant 45 : index
    %c0_164 = arith.constant 0 : index
    %530 = vector.load %arg3[%c45, %c0_164] : memref<256x16xf32, #tpu.memory_space<vmem>>, vector<1x16xf32>
    %531 = vector.broadcast %530 : vector<1x16xf32> to vector<16x16xf32>
    %532 = arith.mulf %531, %459 : vector<16x16xf32>
    %533 = arith.addf %485, %532 : vector<16x16xf32>
    %c46 = arith.constant 46 : index
    %c0_165 = arith.constant 0 : index
    %534 = vector.load %arg3[%c46, %c0_165] : memref<256x16xf32, #tpu.memory_space<vmem>>, vector<1x16xf32>
    %535 = vector.broadcast %534 : vector<1x16xf32> to vector<16x16xf32>
    %536 = arith.mulf %535, %459 : vector<16x16xf32>
    %537 = arith.addf %489, %536 : vector<16x16xf32>
    %c47 = arith.constant 47 : index
    %c0_166 = arith.constant 0 : index
    %538 = vector.load %arg3[%c47, %c0_166] : memref<256x16xf32, #tpu.memory_space<vmem>>, vector<1x16xf32>
    %539 = vector.broadcast %538 : vector<1x16xf32> to vector<16x16xf32>
    %540 = arith.mulf %539, %459 : vector<16x16xf32>
    %541 = arith.addf %493, %540 : vector<16x16xf32>
    %c60 = arith.constant 60 : index
    %c0_167 = arith.constant 0 : index
    %542 = vector.load %arg3[%c60, %c0_167] : memref<256x16xf32, #tpu.memory_space<vmem>>, vector<1x16xf32>
    %543 = vector.broadcast %542 : vector<1x16xf32> to vector<16x16xf32>
    %544 = arith.mulf %543, %460 : vector<16x16xf32>
    %545 = arith.addf %529, %544 : vector<16x16xf32>
    %c61 = arith.constant 61 : index
    %c0_168 = arith.constant 0 : index
    %546 = vector.load %arg3[%c61, %c0_168] : memref<256x16xf32, #tpu.memory_space<vmem>>, vector<1x16xf32>
    %547 = vector.broadcast %546 : vector<1x16xf32> to vector<16x16xf32>
    %548 = arith.mulf %547, %460 : vector<16x16xf32>
    %549 = arith.addf %533, %548 : vector<16x16xf32>
    %c62 = arith.constant 62 : index
    %c0_169 = arith.constant 0 : index
    %550 = vector.load %arg3[%c62, %c0_169] : memref<256x16xf32, #tpu.memory_space<vmem>>, vector<1x16xf32>
    %551 = vector.broadcast %550 : vector<1x16xf32> to vector<16x16xf32>
    %552 = arith.mulf %551, %460 : vector<16x16xf32>
    %553 = arith.addf %537, %552 : vector<16x16xf32>
    %c63 = arith.constant 63 : index
    %c0_170 = arith.constant 0 : index
    %554 = vector.load %arg3[%c63, %c0_170] : memref<256x16xf32, #tpu.memory_space<vmem>>, vector<1x16xf32>
    %555 = vector.broadcast %554 : vector<1x16xf32> to vector<16x16xf32>
    %556 = arith.mulf %555, %460 : vector<16x16xf32>
    %557 = arith.addf %541, %556 : vector<16x16xf32>
    %c108 = arith.constant 108 : index
    %c0_171 = arith.constant 0 : index
    %558 = vector.load %arg3[%c108, %c0_171] : memref<256x16xf32, #tpu.memory_space<vmem>>, vector<1x16xf32>
    %559 = vector.broadcast %558 : vector<1x16xf32> to vector<16x16xf32>
    %560 = arith.mulf %559, %460 : vector<16x16xf32>
    %561 = arith.addf %513, %560 : vector<16x16xf32>
    %c109 = arith.constant 109 : index
    %c0_172 = arith.constant 0 : index
    %562 = vector.load %arg3[%c109, %c0_172] : memref<256x16xf32, #tpu.memory_space<vmem>>, vector<1x16xf32>
    %563 = vector.broadcast %562 : vector<1x16xf32> to vector<16x16xf32>
    %564 = arith.mulf %563, %460 : vector<16x16xf32>
    %565 = arith.addf %517, %564 : vector<16x16xf32>
    %c110 = arith.constant 110 : index
    %c0_173 = arith.constant 0 : index
    %566 = vector.load %arg3[%c110, %c0_173] : memref<256x16xf32, #tpu.memory_space<vmem>>, vector<1x16xf32>
    %567 = vector.broadcast %566 : vector<1x16xf32> to vector<16x16xf32>
    %568 = arith.mulf %567, %460 : vector<16x16xf32>
    %569 = arith.addf %521, %568 : vector<16x16xf32>
    %c111 = arith.constant 111 : index
    %c0_174 = arith.constant 0 : index
    %570 = vector.load %arg3[%c111, %c0_174] : memref<256x16xf32, #tpu.memory_space<vmem>>, vector<1x16xf32>
    %571 = vector.broadcast %570 : vector<1x16xf32> to vector<16x16xf32>
    %572 = arith.mulf %571, %460 : vector<16x16xf32>
    %573 = arith.addf %525, %572 : vector<16x16xf32>
    %c124 = arith.constant 124 : index
    %c0_175 = arith.constant 0 : index
    %574 = vector.load %arg3[%c124, %c0_175] : memref<256x16xf32, #tpu.memory_space<vmem>>, vector<1x16xf32>
    %575 = vector.broadcast %574 : vector<1x16xf32> to vector<16x16xf32>
    %576 = arith.mulf %575, %461 : vector<16x16xf32>
    %577 = arith.addf %561, %576 : vector<16x16xf32>
    %c125 = arith.constant 125 : index
    %c0_176 = arith.constant 0 : index
    %578 = vector.load %arg3[%c125, %c0_176] : memref<256x16xf32, #tpu.memory_space<vmem>>, vector<1x16xf32>
    %579 = vector.broadcast %578 : vector<1x16xf32> to vector<16x16xf32>
    %580 = arith.mulf %579, %461 : vector<16x16xf32>
    %581 = arith.addf %565, %580 : vector<16x16xf32>
    %c126 = arith.constant 126 : index
    %c0_177 = arith.constant 0 : index
    %582 = vector.load %arg3[%c126, %c0_177] : memref<256x16xf32, #tpu.memory_space<vmem>>, vector<1x16xf32>
    %583 = vector.broadcast %582 : vector<1x16xf32> to vector<16x16xf32>
    %584 = arith.mulf %583, %461 : vector<16x16xf32>
    %585 = arith.addf %569, %584 : vector<16x16xf32>
    %c127 = arith.constant 127 : index
    %c0_178 = arith.constant 0 : index
    %586 = vector.load %arg3[%c127, %c0_178] : memref<256x16xf32, #tpu.memory_space<vmem>>, vector<1x16xf32>
    %587 = vector.broadcast %586 : vector<1x16xf32> to vector<16x16xf32>
    %588 = arith.mulf %587, %461 : vector<16x16xf32>
    %589 = arith.addf %573, %588 : vector<16x16xf32>
    %590 = tpu.concatenate %545, %549, %553, %557 in 0 : vector<16x16xf32>, vector<16x16xf32>, vector<16x16xf32>, vector<16x16xf32> -> vector<64x16xf32>
    %591 = tpu.concatenate %577, %581, %585, %589 in 0 : vector<16x16xf32>, vector<16x16xf32>, vector<16x16xf32>, vector<16x16xf32> -> vector<64x16xf32>
    %cst_179 = arith.constant dense<0.000000e+00> : vector<64x32xf32>
    %592 = tpu.matmul %590, %3, %cst_179 {dimension_numbers = #tpu.dot_dimension_numbers<[1], [0], [0], [1], [0, 0, 1, 1], [], []>} : vector<64x16xf32>, vector<16x32xf32>, vector<64x32xf32> -> vector<64x32xf32>
    %cst_180 = arith.constant dense<0.000000e+00> : vector<64x32xf32>
    %593 = tpu.matmul %591, %5, %cst_180 {dimension_numbers = #tpu.dot_dimension_numbers<[1], [0], [0], [1], [0, 0, 1, 1], [], []>} : vector<64x16xf32>, vector<16x32xf32>, vector<64x32xf32> -> vector<64x32xf32>
    %594 = arith.addf %592, %593 : vector<64x32xf32>
    %595 = vector.extract_strided_slice %594 {offsets = [0, 0], sizes = [16, 32], strides = [1, 1]} : vector<64x32xf32> to vector<16x32xf32>
    %c0_181 = arith.constant 0 : index
    %596 = memref.load %arg5[%c0_181] : memref<4xf32, #tpu.memory_space<smem>>
    %597 = vector.broadcast %596 : f32 to vector<16x32xf32>
    %598 = arith.addf %595, %597 : vector<16x32xf32>
    %c0_182 = arith.constant 0 : index
    %c0_183 = arith.constant 0 : index
    %c0_184 = arith.constant 0 : index
    %c0_185 = arith.constant 0 : index
    %599 = vector.load %arg6[%c0_182, %c0_183, %c0_184, %c0_185] : memref<1x4x16x64xf32, #tpu.memory_space<vmem>>, vector<1x1x16x32xf32>
    %600 = vector.shape_cast %599 : vector<1x1x16x32xf32> to vector<16x32xf32>
    %601 = vector.shape_cast %598 : vector<16x32xf32> to vector<1x1x16x32xf32>
    tpu.vector_store %arg6[%c0_182, %c0_183, %c0_184, %c0_185], %601 {strides = array<i32>} : memref<1x4x16x64xf32, #tpu.memory_space<vmem>>, vector<1x1x16x32xf32>,
    %602 = vector.extract_strided_slice %594 {offsets = [16, 0], sizes = [16, 32], strides = [1, 1]} : vector<64x32xf32> to vector<16x32xf32>
    %c1_186 = arith.constant 1 : index
    %603 = memref.load %arg5[%c1_186] : memref<4xf32, #tpu.memory_space<smem>>
    %604 = vector.broadcast %603 : f32 to vector<16x32xf32>
    %605 = arith.addf %602, %604 : vector<16x32xf32>
    %c0_187 = arith.constant 0 : index
    %c1_188 = arith.constant 1 : index
    %c0_189 = arith.constant 0 : index
    %c0_190 = arith.constant 0 : index
    %606 = vector.load %arg6[%c0_187, %c1_188, %c0_189, %c0_190] : memref<1x4x16x64xf32, #tpu.memory_space<vmem>>, vector<1x1x16x32xf32>
    %607 = vector.shape_cast %606 : vector<1x1x16x32xf32> to vector<16x32xf32>
    %608 = vector.shape_cast %605 : vector<16x32xf32> to vector<1x1x16x32xf32>
    tpu.vector_store %arg6[%c0_187, %c1_188, %c0_189, %c0_190], %608 {strides = array<i32>} : memref<1x4x16x64xf32, #tpu.memory_space<vmem>>, vector<1x1x16x32xf32>,
    %609 = vector.extract_strided_slice %594 {offsets = [32, 0], sizes = [16, 32], strides = [1, 1]} : vector<64x32xf32> to vector<16x32xf32>
    %c2_191 = arith.constant 2 : index
    %610 = memref.load %arg5[%c2_191] : memref<4xf32, #tpu.memory_space<smem>>
    %611 = vector.broadcast %610 : f32 to vector<16x32xf32>
    %612 = arith.addf %609, %611 : vector<16x32xf32>
    %c0_192 = arith.constant 0 : index
    %c2_193 = arith.constant 2 : index
    %c0_194 = arith.constant 0 : index
    %c0_195 = arith.constant 0 : index
    %613 = vector.load %arg6[%c0_192, %c2_193, %c0_194, %c0_195] : memref<1x4x16x64xf32, #tpu.memory_space<vmem>>, vector<1x1x16x32xf32>
    %614 = vector.shape_cast %613 : vector<1x1x16x32xf32> to vector<16x32xf32>
    %615 = vector.shape_cast %612 : vector<16x32xf32> to vector<1x1x16x32xf32>
    tpu.vector_store %arg6[%c0_192, %c2_193, %c0_194, %c0_195], %615 {strides = array<i32>} : memref<1x4x16x64xf32, #tpu.memory_space<vmem>>, vector<1x1x16x32xf32>,
    %616 = vector.extract_strided_slice %594 {offsets = [48, 0], sizes = [16, 32], strides = [1, 1]} : vector<64x32xf32> to vector<16x32xf32>
    %c3_196 = arith.constant 3 : index
    %617 = memref.load %arg5[%c3_196] : memref<4xf32, #tpu.memory_space<smem>>
    %618 = vector.broadcast %617 : f32 to vector<16x32xf32>
    %619 = arith.addf %616, %618 : vector<16x32xf32>
    %c0_197 = arith.constant 0 : index
    %c3_198 = arith.constant 3 : index
    %c0_199 = arith.constant 0 : index
    %c0_200 = arith.constant 0 : index
    %620 = vector.load %arg6[%c0_197, %c3_198, %c0_199, %c0_200] : memref<1x4x16x64xf32, #tpu.memory_space<vmem>>, vector<1x1x16x32xf32>
    %621 = vector.shape_cast %620 : vector<1x1x16x32xf32> to vector<16x32xf32>
    %622 = vector.shape_cast %619 : vector<16x32xf32> to vector<1x1x16x32xf32>
    tpu.vector_store %arg6[%c0_197, %c3_198, %c0_199, %c0_200], %622 {strides = array<i32>} : memref<1x4x16x64xf32, #tpu.memory_space<vmem>>, vector<1x1x16x32xf32>,
    %cst_201 = arith.constant 0.000000e+00 : f32
    %623 = vector.broadcast %cst_201 : f32 to vector<16x16xf32>
    %cst_202 = arith.constant 0.000000e+00 : f32
    %624 = vector.broadcast %cst_202 : f32 to vector<16x16xf32>
    %cst_203 = arith.constant 0.000000e+00 : f32
    %625 = vector.broadcast %cst_203 : f32 to vector<16x16xf32>
    %cst_204 = arith.constant 0.000000e+00 : f32
    %626 = vector.broadcast %cst_204 : f32 to vector<16x16xf32>
    %cst_205 = arith.constant 0.000000e+00 : f32
    %627 = vector.broadcast %cst_205 : f32 to vector<16x16xf32>
    %cst_206 = arith.constant 0.000000e+00 : f32
    %628 = vector.broadcast %cst_206 : f32 to vector<16x16xf32>
    %cst_207 = arith.constant 0.000000e+00 : f32
    %629 = vector.broadcast %cst_207 : f32 to vector<16x16xf32>
    %cst_208 = arith.constant 0.000000e+00 : f32
    %630 = vector.broadcast %cst_208 : f32 to vector<16x16xf32>
    %c1_i32_209 = arith.constant 1 : i32
    %631 = arith.addi %1, %c1_i32_209 : i32
    %c0_i32_210 = arith.constant 0 : i32
    %632 = arith.addi %631, %c0_i32_210 : i32
    %c0_211 = arith.constant 0 : index
    %c0_212 = arith.constant 0 : index
    %633 = arith.index_cast %632 : i32 to index
    %c0_213 = arith.constant 0 : index
    %634 = vector.load %arg2[%c0_211, %c0_212, %633, %c0_213] : memref<1x4x18x18xf32, #tpu.memory_space<vmem>>, vector<1x1x16x18xf32>
    %635 = vector.shape_cast %634 : vector<1x1x16x18xf32> to vector<16x18xf32>
    %c1_i32_214 = arith.constant 1 : i32
    %636 = arith.addi %1, %c1_i32_214 : i32
    %c1_i32_215 = arith.constant 1 : i32
    %637 = arith.addi %636, %c1_i32_215 : i32
    %c0_216 = arith.constant 0 : index
    %c0_217 = arith.constant 0 : index
    %638 = arith.index_cast %637 : i32 to index
    %c0_218 = arith.constant 0 : index
    %639 = vector.load %arg2[%c0_216, %c0_217, %638, %c0_218] : memref<1x4x18x18xf32, #tpu.memory_space<vmem>>, vector<1x1x16x18xf32>
    %640 = vector.shape_cast %639 : vector<1x1x16x18xf32> to vector<16x18xf32>
    %641 = vector.extract_strided_slice %635 {offsets = [0, 0], sizes = [16, 16], strides = [1, 1]} : vector<16x18xf32> to vector<16x16xf32>
    %642 = vector.extract_strided_slice %635 {offsets = [0, 1], sizes = [16, 16], strides = [1, 1]} : vector<16x18xf32> to vector<16x16xf32>
    %643 = vector.extract_strided_slice %635 {offsets = [0, 2], sizes = [16, 16], strides = [1, 1]} : vector<16x18xf32> to vector<16x16xf32>
    %644 = vector.extract_strided_slice %640 {offsets = [0, 0], sizes = [16, 16], strides = [1, 1]} : vector<16x18xf32> to vector<16x16xf32>
    %645 = vector.extract_strided_slice %640 {offsets = [0, 1], sizes = [16, 16], strides = [1, 1]} : vector<16x18xf32> to vector<16x16xf32>
    %646 = vector.extract_strided_slice %640 {offsets = [0, 2], sizes = [16, 16], strides = [1, 1]} : vector<16x18xf32> to vector<16x16xf32>
    %c128 = arith.constant 128 : index
    %c0_219 = arith.constant 0 : index
    %647 = vector.load %arg3[%c128, %c0_219] : memref<256x16xf32, #tpu.memory_space<vmem>>, vector<1x16xf32>
    %648 = vector.broadcast %647 : vector<1x16xf32> to vector<16x16xf32>
    %649 = arith.mulf %648, %641 : vector<16x16xf32>
    %650 = arith.addf %623, %649 : vector<16x16xf32>
    %c129 = arith.constant 129 : index
    %c0_220 = arith.constant 0 : index
    %651 = vector.load %arg3[%c129, %c0_220] : memref<256x16xf32, #tpu.memory_space<vmem>>, vector<1x16xf32>
    %652 = vector.broadcast %651 : vector<1x16xf32> to vector<16x16xf32>
    %653 = arith.mulf %652, %641 : vector<16x16xf32>
    %654 = arith.addf %624, %653 : vector<16x16xf32>
    %c130 = arith.constant 130 : index
    %c0_221 = arith.constant 0 : index
    %655 = vector.load %arg3[%c130, %c0_221] : memref<256x16xf32, #tpu.memory_space<vmem>>, vector<1x16xf32>
    %656 = vector.broadcast %655 : vector<1x16xf32> to vector<16x16xf32>
    %657 = arith.mulf %656, %641 : vector<16x16xf32>
    %658 = arith.addf %625, %657 : vector<16x16xf32>
    %c131 = arith.constant 131 : index
    %c0_222 = arith.constant 0 : index
    %659 = vector.load %arg3[%c131, %c0_222] : memref<256x16xf32, #tpu.memory_space<vmem>>, vector<1x16xf32>
    %660 = vector.broadcast %659 : vector<1x16xf32> to vector<16x16xf32>
    %661 = arith.mulf %660, %641 : vector<16x16xf32>
    %662 = arith.addf %626, %661 : vector<16x16xf32>
    %c144 = arith.constant 144 : index
    %c0_223 = arith.constant 0 : index
    %663 = vector.load %arg3[%c144, %c0_223] : memref<256x16xf32, #tpu.memory_space<vmem>>, vector<1x16xf32>
    %664 = vector.broadcast %663 : vector<1x16xf32> to vector<16x16xf32>
    %665 = arith.mulf %664, %642 : vector<16x16xf32>
    %666 = arith.addf %650, %665 : vector<16x16xf32>
    %c145 = arith.constant 145 : index
    %c0_224 = arith.constant 0 : index
    %667 = vector.load %arg3[%c145, %c0_224] : memref<256x16xf32, #tpu.memory_space<vmem>>, vector<1x16xf32>
    %668 = vector.broadcast %667 : vector<1x16xf32> to vector<16x16xf32>
    %669 = arith.mulf %668, %642 : vector<16x16xf32>
    %670 = arith.addf %654, %669 : vector<16x16xf32>
    %c146 = arith.constant 146 : index
    %c0_225 = arith.constant 0 : index
    %671 = vector.load %arg3[%c146, %c0_225] : memref<256x16xf32, #tpu.memory_space<vmem>>, vector<1x16xf32>
    %672 = vector.broadcast %671 : vector<1x16xf32> to vector<16x16xf32>
    %673 = arith.mulf %672, %642 : vector<16x16xf32>
    %674 = arith.addf %658, %673 : vector<16x16xf32>
    %c147 = arith.constant 147 : index
    %c0_226 = arith.constant 0 : index
    %675 = vector.load %arg3[%c147, %c0_226] : memref<256x16xf32, #tpu.memory_space<vmem>>, vector<1x16xf32>
    %676 = vector.broadcast %675 : vector<1x16xf32> to vector<16x16xf32>
    %677 = arith.mulf %676, %642 : vector<16x16xf32>
    %678 = arith.addf %662, %677 : vector<16x16xf32>
    %c192 = arith.constant 192 : index
    %c0_227 = arith.constant 0 : index
    %679 = vector.load %arg3[%c192, %c0_227] : memref<256x16xf32, #tpu.memory_space<vmem>>, vector<1x16xf32>
    %680 = vector.broadcast %679 : vector<1x16xf32> to vector<16x16xf32>
    %681 = arith.mulf %680, %642 : vector<16x16xf32>
    %682 = arith.addf %627, %681 : vector<16x16xf32>
    %c193 = arith.constant 193 : index
    %c0_228 = arith.constant 0 : index
    %683 = vector.load %arg3[%c193, %c0_228] : memref<256x16xf32, #tpu.memory_space<vmem>>, vector<1x16xf32>
    %684 = vector.broadcast %683 : vector<1x16xf32> to vector<16x16xf32>
    %685 = arith.mulf %684, %642 : vector<16x16xf32>
    %686 = arith.addf %628, %685 : vector<16x16xf32>
    %c194 = arith.constant 194 : index
    %c0_229 = arith.constant 0 : index
    %687 = vector.load %arg3[%c194, %c0_229] : memref<256x16xf32, #tpu.memory_space<vmem>>, vector<1x16xf32>
    %688 = vector.broadcast %687 : vector<1x16xf32> to vector<16x16xf32>
    %689 = arith.mulf %688, %642 : vector<16x16xf32>
    %690 = arith.addf %629, %689 : vector<16x16xf32>
    %c195 = arith.constant 195 : index
    %c0_230 = arith.constant 0 : index
    %691 = vector.load %arg3[%c195, %c0_230] : memref<256x16xf32, #tpu.memory_space<vmem>>, vector<1x16xf32>
    %692 = vector.broadcast %691 : vector<1x16xf32> to vector<16x16xf32>
    %693 = arith.mulf %692, %642 : vector<16x16xf32>
    %694 = arith.addf %630, %693 : vector<16x16xf32>
    %c208 = arith.constant 208 : index
    %c0_231 = arith.constant 0 : index
    %695 = vector.load %arg3[%c208, %c0_231] : memref<256x16xf32, #tpu.memory_space<vmem>>, vector<1x16xf32>
    %696 = vector.broadcast %695 : vector<1x16xf32> to vector<16x16xf32>
    %697 = arith.mulf %696, %643 : vector<16x16xf32>
    %698 = arith.addf %682, %697 : vector<16x16xf32>
    %c209 = arith.constant 209 : index
    %c0_232 = arith.constant 0 : index
    %699 = vector.load %arg3[%c209, %c0_232] : memref<256x16xf32, #tpu.memory_space<vmem>>, vector<1x16xf32>
    %700 = vector.broadcast %699 : vector<1x16xf32> to vector<16x16xf32>
    %701 = arith.mulf %700, %643 : vector<16x16xf32>
    %702 = arith.addf %686, %701 : vector<16x16xf32>
    %c210 = arith.constant 210 : index
    %c0_233 = arith.constant 0 : index
    %703 = vector.load %arg3[%c210, %c0_233] : memref<256x16xf32, #tpu.memory_space<vmem>>, vector<1x16xf32>
    %704 = vector.broadcast %703 : vector<1x16xf32> to vector<16x16xf32>
    %705 = arith.mulf %704, %643 : vector<16x16xf32>
    %706 = arith.addf %690, %705 : vector<16x16xf32>
    %c211 = arith.constant 211 : index
    %c0_234 = arith.constant 0 : index
    %707 = vector.load %arg3[%c211, %c0_234] : memref<256x16xf32, #tpu.memory_space<vmem>>, vector<1x16xf32>
    %708 = vector.broadcast %707 : vector<1x16xf32> to vector<16x16xf32>
    %709 = arith.mulf %708, %643 : vector<16x16xf32>
    %710 = arith.addf %694, %709 : vector<16x16xf32>
    %c160 = arith.constant 160 : index
    %c0_235 = arith.constant 0 : index
    %711 = vector.load %arg3[%c160, %c0_235] : memref<256x16xf32, #tpu.memory_space<vmem>>, vector<1x16xf32>
    %712 = vector.broadcast %711 : vector<1x16xf32> to vector<16x16xf32>
    %713 = arith.mulf %712, %644 : vector<16x16xf32>
    %714 = arith.addf %666, %713 : vector<16x16xf32>
    %c161 = arith.constant 161 : index
    %c0_236 = arith.constant 0 : index
    %715 = vector.load %arg3[%c161, %c0_236] : memref<256x16xf32, #tpu.memory_space<vmem>>, vector<1x16xf32>
    %716 = vector.broadcast %715 : vector<1x16xf32> to vector<16x16xf32>
    %717 = arith.mulf %716, %644 : vector<16x16xf32>
    %718 = arith.addf %670, %717 : vector<16x16xf32>
    %c162 = arith.constant 162 : index
    %c0_237 = arith.constant 0 : index
    %719 = vector.load %arg3[%c162, %c0_237] : memref<256x16xf32, #tpu.memory_space<vmem>>, vector<1x16xf32>
    %720 = vector.broadcast %719 : vector<1x16xf32> to vector<16x16xf32>
    %721 = arith.mulf %720, %644 : vector<16x16xf32>
    %722 = arith.addf %674, %721 : vector<16x16xf32>
    %c163 = arith.constant 163 : index
    %c0_238 = arith.constant 0 : index
    %723 = vector.load %arg3[%c163, %c0_238] : memref<256x16xf32, #tpu.memory_space<vmem>>, vector<1x16xf32>
    %724 = vector.broadcast %723 : vector<1x16xf32> to vector<16x16xf32>
    %725 = arith.mulf %724, %644 : vector<16x16xf32>
    %726 = arith.addf %678, %725 : vector<16x16xf32>
    %c176 = arith.constant 176 : index
    %c0_239 = arith.constant 0 : index
    %727 = vector.load %arg3[%c176, %c0_239] : memref<256x16xf32, #tpu.memory_space<vmem>>, vector<1x16xf32>
    %728 = vector.broadcast %727 : vector<1x16xf32> to vector<16x16xf32>
    %729 = arith.mulf %728, %645 : vector<16x16xf32>
    %730 = arith.addf %714, %729 : vector<16x16xf32>
    %c177 = arith.constant 177 : index
    %c0_240 = arith.constant 0 : index
    %731 = vector.load %arg3[%c177, %c0_240] : memref<256x16xf32, #tpu.memory_space<vmem>>, vector<1x16xf32>
    %732 = vector.broadcast %731 : vector<1x16xf32> to vector<16x16xf32>
    %733 = arith.mulf %732, %645 : vector<16x16xf32>
    %734 = arith.addf %718, %733 : vector<16x16xf32>
    %c178 = arith.constant 178 : index
    %c0_241 = arith.constant 0 : index
    %735 = vector.load %arg3[%c178, %c0_241] : memref<256x16xf32, #tpu.memory_space<vmem>>, vector<1x16xf32>
    %736 = vector.broadcast %735 : vector<1x16xf32> to vector<16x16xf32>
    %737 = arith.mulf %736, %645 : vector<16x16xf32>
    %738 = arith.addf %722, %737 : vector<16x16xf32>
    %c179 = arith.constant 179 : index
    %c0_242 = arith.constant 0 : index
    %739 = vector.load %arg3[%c179, %c0_242] : memref<256x16xf32, #tpu.memory_space<vmem>>, vector<1x16xf32>
    %740 = vector.broadcast %739 : vector<1x16xf32> to vector<16x16xf32>
    %741 = arith.mulf %740, %645 : vector<16x16xf32>
    %742 = arith.addf %726, %741 : vector<16x16xf32>
    %c224 = arith.constant 224 : index
    %c0_243 = arith.constant 0 : index
    %743 = vector.load %arg3[%c224, %c0_243] : memref<256x16xf32, #tpu.memory_space<vmem>>, vector<1x16xf32>
    %744 = vector.broadcast %743 : vector<1x16xf32> to vector<16x16xf32>
    %745 = arith.mulf %744, %645 : vector<16x16xf32>
    %746 = arith.addf %698, %745 : vector<16x16xf32>
    %c225 = arith.constant 225 : index
    %c0_244 = arith.constant 0 : index
    %747 = vector.load %arg3[%c225, %c0_244] : memref<256x16xf32, #tpu.memory_space<vmem>>, vector<1x16xf32>
    %748 = vector.broadcast %747 : vector<1x16xf32> to vector<16x16xf32>
    %749 = arith.mulf %748, %645 : vector<16x16xf32>
    %750 = arith.addf %702, %749 : vector<16x16xf32>
    %c226 = arith.constant 226 : index
    %c0_245 = arith.constant 0 : index
    %751 = vector.load %arg3[%c226, %c0_245] : memref<256x16xf32, #tpu.memory_space<vmem>>, vector<1x16xf32>
    %752 = vector.broadcast %751 : vector<1x16xf32> to vector<16x16xf32>
    %753 = arith.mulf %752, %645 : vector<16x16xf32>
    %754 = arith.addf %706, %753 : vector<16x16xf32>
    %c227 = arith.constant 227 : index
    %c0_246 = arith.constant 0 : index
    %755 = vector.load %arg3[%c227, %c0_246] : memref<256x16xf32, #tpu.memory_space<vmem>>, vector<1x16xf32>
    %756 = vector.broadcast %755 : vector<1x16xf32> to vector<16x16xf32>
    %757 = arith.mulf %756, %645 : vector<16x16xf32>
    %758 = arith.addf %710, %757 : vector<16x16xf32>
    %c240 = arith.constant 240 : index
    %c0_247 = arith.constant 0 : index
    %759 = vector.load %arg3[%c240, %c0_247] : memref<256x16xf32, #tpu.memory_space<vmem>>, vector<1x16xf32>
    %760 = vector.broadcast %759 : vector<1x16xf32> to vector<16x16xf32>
    %761 = arith.mulf %760, %646 : vector<16x16xf32>
    %762 = arith.addf %746, %761 : vector<16x16xf32>
    %c241 = arith.constant 241 : index
    %c0_248 = arith.constant 0 : index
    %763 = vector.load %arg3[%c241, %c0_248] : memref<256x16xf32, #tpu.memory_space<vmem>>, vector<1x16xf32>
    %764 = vector.broadcast %763 : vector<1x16xf32> to vector<16x16xf32>
    %765 = arith.mulf %764, %646 : vector<16x16xf32>
    %766 = arith.addf %750, %765 : vector<16x16xf32>
    %c242 = arith.constant 242 : index
    %c0_249 = arith.constant 0 : index
    %767 = vector.load %arg3[%c242, %c0_249] : memref<256x16xf32, #tpu.memory_space<vmem>>, vector<1x16xf32>
    %768 = vector.broadcast %767 : vector<1x16xf32> to vector<16x16xf32>
    %769 = arith.mulf %768, %646 : vector<16x16xf32>
    %770 = arith.addf %754, %769 : vector<16x16xf32>
    %c243 = arith.constant 243 : index
    %c0_250 = arith.constant 0 : index
    %771 = vector.load %arg3[%c243, %c0_250] : memref<256x16xf32, #tpu.memory_space<vmem>>, vector<1x16xf32>
    %772 = vector.broadcast %771 : vector<1x16xf32> to vector<16x16xf32>
    %773 = arith.mulf %772, %646 : vector<16x16xf32>
    %774 = arith.addf %758, %773 : vector<16x16xf32>
    %c1_i32_251 = arith.constant 1 : i32
    %775 = arith.addi %1, %c1_i32_251 : i32
    %c0_i32_252 = arith.constant 0 : i32
    %776 = arith.addi %775, %c0_i32_252 : i32
    %c0_253 = arith.constant 0 : index
    %c1_254 = arith.constant 1 : index
    %777 = arith.index_cast %776 : i32 to index
    %c0_255 = arith.constant 0 : index
    %778 = vector.load %arg2[%c0_253, %c1_254, %777, %c0_255] : memref<1x4x18x18xf32, #tpu.memory_space<vmem>>, vector<1x1x16x18xf32>
    %779 = vector.shape_cast %778 : vector<1x1x16x18xf32> to vector<16x18xf32>
    %c1_i32_256 = arith.constant 1 : i32
    %780 = arith.addi %1, %c1_i32_256 : i32
    %c1_i32_257 = arith.constant 1 : i32
    %781 = arith.addi %780, %c1_i32_257 : i32
    %c0_258 = arith.constant 0 : index
    %c1_259 = arith.constant 1 : index
    %782 = arith.index_cast %781 : i32 to index
    %c0_260 = arith.constant 0 : index
    %783 = vector.load %arg2[%c0_258, %c1_259, %782, %c0_260] : memref<1x4x18x18xf32, #tpu.memory_space<vmem>>, vector<1x1x16x18xf32>
    %784 = vector.shape_cast %783 : vector<1x1x16x18xf32> to vector<16x18xf32>
    %785 = vector.extract_strided_slice %779 {offsets = [0, 0], sizes = [16, 16], strides = [1, 1]} : vector<16x18xf32> to vector<16x16xf32>
    %786 = vector.extract_strided_slice %779 {offsets = [0, 1], sizes = [16, 16], strides = [1, 1]} : vector<16x18xf32> to vector<16x16xf32>
    %787 = vector.extract_strided_slice %779 {offsets = [0, 2], sizes = [16, 16], strides = [1, 1]} : vector<16x18xf32> to vector<16x16xf32>
    %788 = vector.extract_strided_slice %784 {offsets = [0, 0], sizes = [16, 16], strides = [1, 1]} : vector<16x18xf32> to vector<16x16xf32>
    %789 = vector.extract_strided_slice %784 {offsets = [0, 1], sizes = [16, 16], strides = [1, 1]} : vector<16x18xf32> to vector<16x16xf32>
    %790 = vector.extract_strided_slice %784 {offsets = [0, 2], sizes = [16, 16], strides = [1, 1]} : vector<16x18xf32> to vector<16x16xf32>
    %c132 = arith.constant 132 : index
    %c0_261 = arith.constant 0 : index
    %791 = vector.load %arg3[%c132, %c0_261] : memref<256x16xf32, #tpu.memory_space<vmem>>, vector<1x16xf32>
    %792 = vector.broadcast %791 : vector<1x16xf32> to vector<16x16xf32>
    %793 = arith.mulf %792, %785 : vector<16x16xf32>
    %794 = arith.addf %730, %793 : vector<16x16xf32>
    %c133 = arith.constant 133 : index
    %c0_262 = arith.constant 0 : index
    %795 = vector.load %arg3[%c133, %c0_262] : memref<256x16xf32, #tpu.memory_space<vmem>>, vector<1x16xf32>
    %796 = vector.broadcast %795 : vector<1x16xf32> to vector<16x16xf32>
    %797 = arith.mulf %796, %785 : vector<16x16xf32>
    %798 = arith.addf %734, %797 : vector<16x16xf32>
    %c134 = arith.constant 134 : index
    %c0_263 = arith.constant 0 : index
    %799 = vector.load %arg3[%c134, %c0_263] : memref<256x16xf32, #tpu.memory_space<vmem>>, vector<1x16xf32>
    %800 = vector.broadcast %799 : vector<1x16xf32> to vector<16x16xf32>
    %801 = arith.mulf %800, %785 : vector<16x16xf32>
    %802 = arith.addf %738, %801 : vector<16x16xf32>
    %c135 = arith.constant 135 : index
    %c0_264 = arith.constant 0 : index
    %803 = vector.load %arg3[%c135, %c0_264] : memref<256x16xf32, #tpu.memory_space<vmem>>, vector<1x16xf32>
    %804 = vector.broadcast %803 : vector<1x16xf32> to vector<16x16xf32>
    %805 = arith.mulf %804, %785 : vector<16x16xf32>
    %806 = arith.addf %742, %805 : vector<16x16xf32>
    %c148 = arith.constant 148 : index
    %c0_265 = arith.constant 0 : index
    %807 = vector.load %arg3[%c148, %c0_265] : memref<256x16xf32, #tpu.memory_space<vmem>>, vector<1x16xf32>
    %808 = vector.broadcast %807 : vector<1x16xf32> to vector<16x16xf32>
    %809 = arith.mulf %808, %786 : vector<16x16xf32>
    %810 = arith.addf %794, %809 : vector<16x16xf32>
    %c149 = arith.constant 149 : index
    %c0_266 = arith.constant 0 : index
    %811 = vector.load %arg3[%c149, %c0_266] : memref<256x16xf32, #tpu.memory_space<vmem>>, vector<1x16xf32>
    %812 = vector.broadcast %811 : vector<1x16xf32> to vector<16x16xf32>
    %813 = arith.mulf %812, %786 : vector<16x16xf32>
    %814 = arith.addf %798, %813 : vector<16x16xf32>
    %c150 = arith.constant 150 : index
    %c0_267 = arith.constant 0 : index
    %815 = vector.load %arg3[%c150, %c0_267] : memref<256x16xf32, #tpu.memory_space<vmem>>, vector<1x16xf32>
    %816 = vector.broadcast %815 : vector<1x16xf32> to vector<16x16xf32>
    %817 = arith.mulf %816, %786 : vector<16x16xf32>
    %818 = arith.addf %802, %817 : vector<16x16xf32>
    %c151 = arith.constant 151 : index
    %c0_268 = arith.constant 0 : index
    %819 = vector.load %arg3[%c151, %c0_268] : memref<256x16xf32, #tpu.memory_space<vmem>>, vector<1x16xf32>
    %820 = vector.broadcast %819 : vector<1x16xf32> to vector<16x16xf32>
    %821 = arith.mulf %820, %786 : vector<16x16xf32>
    %822 = arith.addf %806, %821 : vector<16x16xf32>
    %c196 = arith.constant 196 : index
    %c0_269 = arith.constant 0 : index
    %823 = vector.load %arg3[%c196, %c0_269] : memref<256x16xf32, #tpu.memory_space<vmem>>, vector<1x16xf32>
    %824 = vector.broadcast %823 : vector<1x16xf32> to vector<16x16xf32>
    %825 = arith.mulf %824, %786 : vector<16x16xf32>
    %826 = arith.addf %762, %825 : vector<16x16xf32>
    %c197 = arith.constant 197 : index
    %c0_270 = arith.constant 0 : index
    %827 = vector.load %arg3[%c197, %c0_270] : memref<256x16xf32, #tpu.memory_space<vmem>>, vector<1x16xf32>
    %828 = vector.broadcast %827 : vector<1x16xf32> to vector<16x16xf32>
    %829 = arith.mulf %828, %786 : vector<16x16xf32>
    %830 = arith.addf %766, %829 : vector<16x16xf32>
    %c198 = arith.constant 198 : index
    %c0_271 = arith.constant 0 : index
    %831 = vector.load %arg3[%c198, %c0_271] : memref<256x16xf32, #tpu.memory_space<vmem>>, vector<1x16xf32>
    %832 = vector.broadcast %831 : vector<1x16xf32> to vector<16x16xf32>
    %833 = arith.mulf %832, %786 : vector<16x16xf32>
    %834 = arith.addf %770, %833 : vector<16x16xf32>
    %c199 = arith.constant 199 : index
    %c0_272 = arith.constant 0 : index
    %835 = vector.load %arg3[%c199, %c0_272] : memref<256x16xf32, #tpu.memory_space<vmem>>, vector<1x16xf32>
    %836 = vector.broadcast %835 : vector<1x16xf32> to vector<16x16xf32>
    %837 = arith.mulf %836, %786 : vector<16x16xf32>
    %838 = arith.addf %774, %837 : vector<16x16xf32>
    %c212 = arith.constant 212 : index
    %c0_273 = arith.constant 0 : index
    %839 = vector.load %arg3[%c212, %c0_273] : memref<256x16xf32, #tpu.memory_space<vmem>>, vector<1x16xf32>
    %840 = vector.broadcast %839 : vector<1x16xf32> to vector<16x16xf32>
    %841 = arith.mulf %840, %787 : vector<16x16xf32>
    %842 = arith.addf %826, %841 : vector<16x16xf32>
    %c213 = arith.constant 213 : index
    %c0_274 = arith.constant 0 : index
    %843 = vector.load %arg3[%c213, %c0_274] : memref<256x16xf32, #tpu.memory_space<vmem>>, vector<1x16xf32>
    %844 = vector.broadcast %843 : vector<1x16xf32> to vector<16x16xf32>
    %845 = arith.mulf %844, %787 : vector<16x16xf32>
    %846 = arith.addf %830, %845 : vector<16x16xf32>
    %c214 = arith.constant 214 : index
    %c0_275 = arith.constant 0 : index
    %847 = vector.load %arg3[%c214, %c0_275] : memref<256x16xf32, #tpu.memory_space<vmem>>, vector<1x16xf32>
    %848 = vector.broadcast %847 : vector<1x16xf32> to vector<16x16xf32>
    %849 = arith.mulf %848, %787 : vector<16x16xf32>
    %850 = arith.addf %834, %849 : vector<16x16xf32>
    %c215 = arith.constant 215 : index
    %c0_276 = arith.constant 0 : index
    %851 = vector.load %arg3[%c215, %c0_276] : memref<256x16xf32, #tpu.memory_space<vmem>>, vector<1x16xf32>
    %852 = vector.broadcast %851 : vector<1x16xf32> to vector<16x16xf32>
    %853 = arith.mulf %852, %787 : vector<16x16xf32>
    %854 = arith.addf %838, %853 : vector<16x16xf32>
    %c164 = arith.constant 164 : index
    %c0_277 = arith.constant 0 : index
    %855 = vector.load %arg3[%c164, %c0_277] : memref<256x16xf32, #tpu.memory_space<vmem>>, vector<1x16xf32>
    %856 = vector.broadcast %855 : vector<1x16xf32> to vector<16x16xf32>
    %857 = arith.mulf %856, %788 : vector<16x16xf32>
    %858 = arith.addf %810, %857 : vector<16x16xf32>
    %c165 = arith.constant 165 : index
    %c0_278 = arith.constant 0 : index
    %859 = vector.load %arg3[%c165, %c0_278] : memref<256x16xf32, #tpu.memory_space<vmem>>, vector<1x16xf32>
    %860 = vector.broadcast %859 : vector<1x16xf32> to vector<16x16xf32>
    %861 = arith.mulf %860, %788 : vector<16x16xf32>
    %862 = arith.addf %814, %861 : vector<16x16xf32>
    %c166 = arith.constant 166 : index
    %c0_279 = arith.constant 0 : index
    %863 = vector.load %arg3[%c166, %c0_279] : memref<256x16xf32, #tpu.memory_space<vmem>>, vector<1x16xf32>
    %864 = vector.broadcast %863 : vector<1x16xf32> to vector<16x16xf32>
    %865 = arith.mulf %864, %788 : vector<16x16xf32>
    %866 = arith.addf %818, %865 : vector<16x16xf32>
    %c167 = arith.constant 167 : index
    %c0_280 = arith.constant 0 : index
    %867 = vector.load %arg3[%c167, %c0_280] : memref<256x16xf32, #tpu.memory_space<vmem>>, vector<1x16xf32>
    %868 = vector.broadcast %867 : vector<1x16xf32> to vector<16x16xf32>
    %869 = arith.mulf %868, %788 : vector<16x16xf32>
    %870 = arith.addf %822, %869 : vector<16x16xf32>
    %c180 = arith.constant 180 : index
    %c0_281 = arith.constant 0 : index
    %871 = vector.load %arg3[%c180, %c0_281] : memref<256x16xf32, #tpu.memory_space<vmem>>, vector<1x16xf32>
    %872 = vector.broadcast %871 : vector<1x16xf32> to vector<16x16xf32>
    %873 = arith.mulf %872, %789 : vector<16x16xf32>
    %874 = arith.addf %858, %873 : vector<16x16xf32>
    %c181 = arith.constant 181 : index
    %c0_282 = arith.constant 0 : index
    %875 = vector.load %arg3[%c181, %c0_282] : memref<256x16xf32, #tpu.memory_space<vmem>>, vector<1x16xf32>
    %876 = vector.broadcast %875 : vector<1x16xf32> to vector<16x16xf32>
    %877 = arith.mulf %876, %789 : vector<16x16xf32>
    %878 = arith.addf %862, %877 : vector<16x16xf32>
    %c182 = arith.constant 182 : index
    %c0_283 = arith.constant 0 : index
    %879 = vector.load %arg3[%c182, %c0_283] : memref<256x16xf32, #tpu.memory_space<vmem>>, vector<1x16xf32>
    %880 = vector.broadcast %879 : vector<1x16xf32> to vector<16x16xf32>
    %881 = arith.mulf %880, %789 : vector<16x16xf32>
    %882 = arith.addf %866, %881 : vector<16x16xf32>
    %c183 = arith.constant 183 : index
    %c0_284 = arith.constant 0 : index
    %883 = vector.load %arg3[%c183, %c0_284] : memref<256x16xf32, #tpu.memory_space<vmem>>, vector<1x16xf32>
    %884 = vector.broadcast %883 : vector<1x16xf32> to vector<16x16xf32>
    %885 = arith.mulf %884, %789 : vector<16x16xf32>
    %886 = arith.addf %870, %885 : vector<16x16xf32>
    %c228 = arith.constant 228 : index
    %c0_285 = arith.constant 0 : index
    %887 = vector.load %arg3[%c228, %c0_285] : memref<256x16xf32, #tpu.memory_space<vmem>>, vector<1x16xf32>
    %888 = vector.broadcast %887 : vector<1x16xf32> to vector<16x16xf32>
    %889 = arith.mulf %888, %789 : vector<16x16xf32>
    %890 = arith.addf %842, %889 : vector<16x16xf32>
    %c229 = arith.constant 229 : index
    %c0_286 = arith.constant 0 : index
    %891 = vector.load %arg3[%c229, %c0_286] : memref<256x16xf32, #tpu.memory_space<vmem>>, vector<1x16xf32>
    %892 = vector.broadcast %891 : vector<1x16xf32> to vector<16x16xf32>
    %893 = arith.mulf %892, %789 : vector<16x16xf32>
    %894 = arith.addf %846, %893 : vector<16x16xf32>
    %c230 = arith.constant 230 : index
    %c0_287 = arith.constant 0 : index
    %895 = vector.load %arg3[%c230, %c0_287] : memref<256x16xf32, #tpu.memory_space<vmem>>, vector<1x16xf32>
    %896 = vector.broadcast %895 : vector<1x16xf32> to vector<16x16xf32>
    %897 = arith.mulf %896, %789 : vector<16x16xf32>
    %898 = arith.addf %850, %897 : vector<16x16xf32>
    %c231 = arith.constant 231 : index
    %c0_288 = arith.constant 0 : index
    %899 = vector.load %arg3[%c231, %c0_288] : memref<256x16xf32, #tpu.memory_space<vmem>>, vector<1x16xf32>
    %900 = vector.broadcast %899 : vector<1x16xf32> to vector<16x16xf32>
    %901 = arith.mulf %900, %789 : vector<16x16xf32>
    %902 = arith.addf %854, %901 : vector<16x16xf32>
    %c244 = arith.constant 244 : index
    %c0_289 = arith.constant 0 : index
    %903 = vector.load %arg3[%c244, %c0_289] : memref<256x16xf32, #tpu.memory_space<vmem>>, vector<1x16xf32>
    %904 = vector.broadcast %903 : vector<1x16xf32> to vector<16x16xf32>
    %905 = arith.mulf %904, %790 : vector<16x16xf32>
    %906 = arith.addf %890, %905 : vector<16x16xf32>
    %c245 = arith.constant 245 : index
    %c0_290 = arith.constant 0 : index
    %907 = vector.load %arg3[%c245, %c0_290] : memref<256x16xf32, #tpu.memory_space<vmem>>, vector<1x16xf32>
    %908 = vector.broadcast %907 : vector<1x16xf32> to vector<16x16xf32>
    %909 = arith.mulf %908, %790 : vector<16x16xf32>
    %910 = arith.addf %894, %909 : vector<16x16xf32>
    %c246 = arith.constant 246 : index
    %c0_291 = arith.constant 0 : index
    %911 = vector.load %arg3[%c246, %c0_291] : memref<256x16xf32, #tpu.memory_space<vmem>>, vector<1x16xf32>
    %912 = vector.broadcast %911 : vector<1x16xf32> to vector<16x16xf32>
    %913 = arith.mulf %912, %790 : vector<16x16xf32>
    %914 = arith.addf %898, %913 : vector<16x16xf32>
    %c247 = arith.constant 247 : index
    %c0_292 = arith.constant 0 : index
    %915 = vector.load %arg3[%c247, %c0_292] : memref<256x16xf32, #tpu.memory_space<vmem>>, vector<1x16xf32>
    %916 = vector.broadcast %915 : vector<1x16xf32> to vector<16x16xf32>
    %917 = arith.mulf %916, %790 : vector<16x16xf32>
    %918 = arith.addf %902, %917 : vector<16x16xf32>
    %c1_i32_293 = arith.constant 1 : i32
    %919 = arith.addi %1, %c1_i32_293 : i32
    %c0_i32_294 = arith.constant 0 : i32
    %920 = arith.addi %919, %c0_i32_294 : i32
    %c0_295 = arith.constant 0 : index
    %c2_296 = arith.constant 2 : index
    %921 = arith.index_cast %920 : i32 to index
    %c0_297 = arith.constant 0 : index
    %922 = vector.load %arg2[%c0_295, %c2_296, %921, %c0_297] : memref<1x4x18x18xf32, #tpu.memory_space<vmem>>, vector<1x1x16x18xf32>
    %923 = vector.shape_cast %922 : vector<1x1x16x18xf32> to vector<16x18xf32>
    %c1_i32_298 = arith.constant 1 : i32
    %924 = arith.addi %1, %c1_i32_298 : i32
    %c1_i32_299 = arith.constant 1 : i32
    %925 = arith.addi %924, %c1_i32_299 : i32
    %c0_300 = arith.constant 0 : index
    %c2_301 = arith.constant 2 : index
    %926 = arith.index_cast %925 : i32 to index
    %c0_302 = arith.constant 0 : index
    %927 = vector.load %arg2[%c0_300, %c2_301, %926, %c0_302] : memref<1x4x18x18xf32, #tpu.memory_space<vmem>>, vector<1x1x16x18xf32>
    %928 = vector.shape_cast %927 : vector<1x1x16x18xf32> to vector<16x18xf32>
    %929 = vector.extract_strided_slice %923 {offsets = [0, 0], sizes = [16, 16], strides = [1, 1]} : vector<16x18xf32> to vector<16x16xf32>
    %930 = vector.extract_strided_slice %923 {offsets = [0, 1], sizes = [16, 16], strides = [1, 1]} : vector<16x18xf32> to vector<16x16xf32>
    %931 = vector.extract_strided_slice %923 {offsets = [0, 2], sizes = [16, 16], strides = [1, 1]} : vector<16x18xf32> to vector<16x16xf32>
    %932 = vector.extract_strided_slice %928 {offsets = [0, 0], sizes = [16, 16], strides = [1, 1]} : vector<16x18xf32> to vector<16x16xf32>
    %933 = vector.extract_strided_slice %928 {offsets = [0, 1], sizes = [16, 16], strides = [1, 1]} : vector<16x18xf32> to vector<16x16xf32>
    %934 = vector.extract_strided_slice %928 {offsets = [0, 2], sizes = [16, 16], strides = [1, 1]} : vector<16x18xf32> to vector<16x16xf32>
    %c136 = arith.constant 136 : index
    %c0_303 = arith.constant 0 : index
    %935 = vector.load %arg3[%c136, %c0_303] : memref<256x16xf32, #tpu.memory_space<vmem>>, vector<1x16xf32>
    %936 = vector.broadcast %935 : vector<1x16xf32> to vector<16x16xf32>
    %937 = arith.mulf %936, %929 : vector<16x16xf32>
    %938 = arith.addf %874, %937 : vector<16x16xf32>
    %c137 = arith.constant 137 : index
    %c0_304 = arith.constant 0 : index
    %939 = vector.load %arg3[%c137, %c0_304] : memref<256x16xf32, #tpu.memory_space<vmem>>, vector<1x16xf32>
    %940 = vector.broadcast %939 : vector<1x16xf32> to vector<16x16xf32>
    %941 = arith.mulf %940, %929 : vector<16x16xf32>
    %942 = arith.addf %878, %941 : vector<16x16xf32>
    %c138 = arith.constant 138 : index
    %c0_305 = arith.constant 0 : index
    %943 = vector.load %arg3[%c138, %c0_305] : memref<256x16xf32, #tpu.memory_space<vmem>>, vector<1x16xf32>
    %944 = vector.broadcast %943 : vector<1x16xf32> to vector<16x16xf32>
    %945 = arith.mulf %944, %929 : vector<16x16xf32>
    %946 = arith.addf %882, %945 : vector<16x16xf32>
    %c139 = arith.constant 139 : index
    %c0_306 = arith.constant 0 : index
    %947 = vector.load %arg3[%c139, %c0_306] : memref<256x16xf32, #tpu.memory_space<vmem>>, vector<1x16xf32>
    %948 = vector.broadcast %947 : vector<1x16xf32> to vector<16x16xf32>
    %949 = arith.mulf %948, %929 : vector<16x16xf32>
    %950 = arith.addf %886, %949 : vector<16x16xf32>
    %c152 = arith.constant 152 : index
    %c0_307 = arith.constant 0 : index
    %951 = vector.load %arg3[%c152, %c0_307] : memref<256x16xf32, #tpu.memory_space<vmem>>, vector<1x16xf32>
    %952 = vector.broadcast %951 : vector<1x16xf32> to vector<16x16xf32>
    %953 = arith.mulf %952, %930 : vector<16x16xf32>
    %954 = arith.addf %938, %953 : vector<16x16xf32>
    %c153 = arith.constant 153 : index
    %c0_308 = arith.constant 0 : index
    %955 = vector.load %arg3[%c153, %c0_308] : memref<256x16xf32, #tpu.memory_space<vmem>>, vector<1x16xf32>
    %956 = vector.broadcast %955 : vector<1x16xf32> to vector<16x16xf32>
    %957 = arith.mulf %956, %930 : vector<16x16xf32>
    %958 = arith.addf %942, %957 : vector<16x16xf32>
    %c154 = arith.constant 154 : index
    %c0_309 = arith.constant 0 : index
    %959 = vector.load %arg3[%c154, %c0_309] : memref<256x16xf32, #tpu.memory_space<vmem>>, vector<1x16xf32>
    %960 = vector.broadcast %959 : vector<1x16xf32> to vector<16x16xf32>
    %961 = arith.mulf %960, %930 : vector<16x16xf32>
    %962 = arith.addf %946, %961 : vector<16x16xf32>
    %c155 = arith.constant 155 : index
    %c0_310 = arith.constant 0 : index
    %963 = vector.load %arg3[%c155, %c0_310] : memref<256x16xf32, #tpu.memory_space<vmem>>, vector<1x16xf32>
    %964 = vector.broadcast %963 : vector<1x16xf32> to vector<16x16xf32>
    %965 = arith.mulf %964, %930 : vector<16x16xf32>
    %966 = arith.addf %950, %965 : vector<16x16xf32>
    %c200 = arith.constant 200 : index
    %c0_311 = arith.constant 0 : index
    %967 = vector.load %arg3[%c200, %c0_311] : memref<256x16xf32, #tpu.memory_space<vmem>>, vector<1x16xf32>
    %968 = vector.broadcast %967 : vector<1x16xf32> to vector<16x16xf32>
    %969 = arith.mulf %968, %930 : vector<16x16xf32>
    %970 = arith.addf %906, %969 : vector<16x16xf32>
    %c201 = arith.constant 201 : index
    %c0_312 = arith.constant 0 : index
    %971 = vector.load %arg3[%c201, %c0_312] : memref<256x16xf32, #tpu.memory_space<vmem>>, vector<1x16xf32>
    %972 = vector.broadcast %971 : vector<1x16xf32> to vector<16x16xf32>
    %973 = arith.mulf %972, %930 : vector<16x16xf32>
    %974 = arith.addf %910, %973 : vector<16x16xf32>
    %c202 = arith.constant 202 : index
    %c0_313 = arith.constant 0 : index
    %975 = vector.load %arg3[%c202, %c0_313] : memref<256x16xf32, #tpu.memory_space<vmem>>, vector<1x16xf32>
    %976 = vector.broadcast %975 : vector<1x16xf32> to vector<16x16xf32>
    %977 = arith.mulf %976, %930 : vector<16x16xf32>
    %978 = arith.addf %914, %977 : vector<16x16xf32>
    %c203 = arith.constant 203 : index
    %c0_314 = arith.constant 0 : index
    %979 = vector.load %arg3[%c203, %c0_314] : memref<256x16xf32, #tpu.memory_space<vmem>>, vector<1x16xf32>
    %980 = vector.broadcast %979 : vector<1x16xf32> to vector<16x16xf32>
    %981 = arith.mulf %980, %930 : vector<16x16xf32>
    %982 = arith.addf %918, %981 : vector<16x16xf32>
    %c216 = arith.constant 216 : index
    %c0_315 = arith.constant 0 : index
    %983 = vector.load %arg3[%c216, %c0_315] : memref<256x16xf32, #tpu.memory_space<vmem>>, vector<1x16xf32>
    %984 = vector.broadcast %983 : vector<1x16xf32> to vector<16x16xf32>
    %985 = arith.mulf %984, %931 : vector<16x16xf32>
    %986 = arith.addf %970, %985 : vector<16x16xf32>
    %c217 = arith.constant 217 : index
    %c0_316 = arith.constant 0 : index
    %987 = vector.load %arg3[%c217, %c0_316] : memref<256x16xf32, #tpu.memory_space<vmem>>, vector<1x16xf32>
    %988 = vector.broadcast %987 : vector<1x16xf32> to vector<16x16xf32>
    %989 = arith.mulf %988, %931 : vector<16x16xf32>
    %990 = arith.addf %974, %989 : vector<16x16xf32>
    %c218 = arith.constant 218 : index
    %c0_317 = arith.constant 0 : index
    %991 = vector.load %arg3[%c218, %c0_317] : memref<256x16xf32, #tpu.memory_space<vmem>>, vector<1x16xf32>
    %992 = vector.broadcast %991 : vector<1x16xf32> to vector<16x16xf32>
    %993 = arith.mulf %992, %931 : vector<16x16xf32>
    %994 = arith.addf %978, %993 : vector<16x16xf32>
    %c219 = arith.constant 219 : index
    %c0_318 = arith.constant 0 : index
    %995 = vector.load %arg3[%c219, %c0_318] : memref<256x16xf32, #tpu.memory_space<vmem>>, vector<1x16xf32>
    %996 = vector.broadcast %995 : vector<1x16xf32> to vector<16x16xf32>
    %997 = arith.mulf %996, %931 : vector<16x16xf32>
    %998 = arith.addf %982, %997 : vector<16x16xf32>
    %c168 = arith.constant 168 : index
    %c0_319 = arith.constant 0 : index
    %999 = vector.load %arg3[%c168, %c0_319] : memref<256x16xf32, #tpu.memory_space<vmem>>, vector<1x16xf32>
    %1000 = vector.broadcast %999 : vector<1x16xf32> to vector<16x16xf32>
    %1001 = arith.mulf %1000, %932 : vector<16x16xf32>
    %1002 = arith.addf %954, %1001 : vector<16x16xf32>
    %c169 = arith.constant 169 : index
    %c0_320 = arith.constant 0 : index
    %1003 = vector.load %arg3[%c169, %c0_320] : memref<256x16xf32, #tpu.memory_space<vmem>>, vector<1x16xf32>
    %1004 = vector.broadcast %1003 : vector<1x16xf32> to vector<16x16xf32>
    %1005 = arith.mulf %1004, %932 : vector<16x16xf32>
    %1006 = arith.addf %958, %1005 : vector<16x16xf32>
    %c170 = arith.constant 170 : index
    %c0_321 = arith.constant 0 : index
    %1007 = vector.load %arg3[%c170, %c0_321] : memref<256x16xf32, #tpu.memory_space<vmem>>, vector<1x16xf32>
    %1008 = vector.broadcast %1007 : vector<1x16xf32> to vector<16x16xf32>
    %1009 = arith.mulf %1008, %932 : vector<16x16xf32>
    %1010 = arith.addf %962, %1009 : vector<16x16xf32>
    %c171 = arith.constant 171 : index
    %c0_322 = arith.constant 0 : index
    %1011 = vector.load %arg3[%c171, %c0_322] : memref<256x16xf32, #tpu.memory_space<vmem>>, vector<1x16xf32>
    %1012 = vector.broadcast %1011 : vector<1x16xf32> to vector<16x16xf32>
    %1013 = arith.mulf %1012, %932 : vector<16x16xf32>
    %1014 = arith.addf %966, %1013 : vector<16x16xf32>
    %c184 = arith.constant 184 : index
    %c0_323 = arith.constant 0 : index
    %1015 = vector.load %arg3[%c184, %c0_323] : memref<256x16xf32, #tpu.memory_space<vmem>>, vector<1x16xf32>
    %1016 = vector.broadcast %1015 : vector<1x16xf32> to vector<16x16xf32>
    %1017 = arith.mulf %1016, %933 : vector<16x16xf32>
    %1018 = arith.addf %1002, %1017 : vector<16x16xf32>
    %c185 = arith.constant 185 : index
    %c0_324 = arith.constant 0 : index
    %1019 = vector.load %arg3[%c185, %c0_324] : memref<256x16xf32, #tpu.memory_space<vmem>>, vector<1x16xf32>
    %1020 = vector.broadcast %1019 : vector<1x16xf32> to vector<16x16xf32>
    %1021 = arith.mulf %1020, %933 : vector<16x16xf32>
    %1022 = arith.addf %1006, %1021 : vector<16x16xf32>
    %c186 = arith.constant 186 : index
    %c0_325 = arith.constant 0 : index
    %1023 = vector.load %arg3[%c186, %c0_325] : memref<256x16xf32, #tpu.memory_space<vmem>>, vector<1x16xf32>
    %1024 = vector.broadcast %1023 : vector<1x16xf32> to vector<16x16xf32>
    %1025 = arith.mulf %1024, %933 : vector<16x16xf32>
    %1026 = arith.addf %1010, %1025 : vector<16x16xf32>
    %c187 = arith.constant 187 : index
    %c0_326 = arith.constant 0 : index
    %1027 = vector.load %arg3[%c187, %c0_326] : memref<256x16xf32, #tpu.memory_space<vmem>>, vector<1x16xf32>
    %1028 = vector.broadcast %1027 : vector<1x16xf32> to vector<16x16xf32>
    %1029 = arith.mulf %1028, %933 : vector<16x16xf32>
    %1030 = arith.addf %1014, %1029 : vector<16x16xf32>
    %c232 = arith.constant 232 : index
    %c0_327 = arith.constant 0 : index
    %1031 = vector.load %arg3[%c232, %c0_327] : memref<256x16xf32, #tpu.memory_space<vmem>>, vector<1x16xf32>
    %1032 = vector.broadcast %1031 : vector<1x16xf32> to vector<16x16xf32>
    %1033 = arith.mulf %1032, %933 : vector<16x16xf32>
    %1034 = arith.addf %986, %1033 : vector<16x16xf32>
    %c233 = arith.constant 233 : index
    %c0_328 = arith.constant 0 : index
    %1035 = vector.load %arg3[%c233, %c0_328] : memref<256x16xf32, #tpu.memory_space<vmem>>, vector<1x16xf32>
    %1036 = vector.broadcast %1035 : vector<1x16xf32> to vector<16x16xf32>
    %1037 = arith.mulf %1036, %933 : vector<16x16xf32>
    %1038 = arith.addf %990, %1037 : vector<16x16xf32>
    %c234 = arith.constant 234 : index
    %c0_329 = arith.constant 0 : index
    %1039 = vector.load %arg3[%c234, %c0_329] : memref<256x16xf32, #tpu.memory_space<vmem>>, vector<1x16xf32>
    %1040 = vector.broadcast %1039 : vector<1x16xf32> to vector<16x16xf32>
    %1041 = arith.mulf %1040, %933 : vector<16x16xf32>
    %1042 = arith.addf %994, %1041 : vector<16x16xf32>
    %c235 = arith.constant 235 : index
    %c0_330 = arith.constant 0 : index
    %1043 = vector.load %arg3[%c235, %c0_330] : memref<256x16xf32, #tpu.memory_space<vmem>>, vector<1x16xf32>
    %1044 = vector.broadcast %1043 : vector<1x16xf32> to vector<16x16xf32>
    %1045 = arith.mulf %1044, %933 : vector<16x16xf32>
    %1046 = arith.addf %998, %1045 : vector<16x16xf32>
    %c248 = arith.constant 248 : index
    %c0_331 = arith.constant 0 : index
    %1047 = vector.load %arg3[%c248, %c0_331] : memref<256x16xf32, #tpu.memory_space<vmem>>, vector<1x16xf32>
    %1048 = vector.broadcast %1047 : vector<1x16xf32> to vector<16x16xf32>
    %1049 = arith.mulf %1048, %934 : vector<16x16xf32>
    %1050 = arith.addf %1034, %1049 : vector<16x16xf32>
    %c249 = arith.constant 249 : index
    %c0_332 = arith.constant 0 : index
    %1051 = vector.load %arg3[%c249, %c0_332] : memref<256x16xf32, #tpu.memory_space<vmem>>, vector<1x16xf32>
    %1052 = vector.broadcast %1051 : vector<1x16xf32> to vector<16x16xf32>
    %1053 = arith.mulf %1052, %934 : vector<16x16xf32>
    %1054 = arith.addf %1038, %1053 : vector<16x16xf32>
    %c250 = arith.constant 250 : index
    %c0_333 = arith.constant 0 : index
    %1055 = vector.load %arg3[%c250, %c0_333] : memref<256x16xf32, #tpu.memory_space<vmem>>, vector<1x16xf32>
    %1056 = vector.broadcast %1055 : vector<1x16xf32> to vector<16x16xf32>
    %1057 = arith.mulf %1056, %934 : vector<16x16xf32>
    %1058 = arith.addf %1042, %1057 : vector<16x16xf32>
    %c251 = arith.constant 251 : index
    %c0_334 = arith.constant 0 : index
    %1059 = vector.load %arg3[%c251, %c0_334] : memref<256x16xf32, #tpu.memory_space<vmem>>, vector<1x16xf32>
    %1060 = vector.broadcast %1059 : vector<1x16xf32> to vector<16x16xf32>
    %1061 = arith.mulf %1060, %934 : vector<16x16xf32>
    %1062 = arith.addf %1046, %1061 : vector<16x16xf32>
    %c1_i32_335 = arith.constant 1 : i32
    %1063 = arith.addi %1, %c1_i32_335 : i32
    %c0_i32_336 = arith.constant 0 : i32
    %1064 = arith.addi %1063, %c0_i32_336 : i32
    %c0_337 = arith.constant 0 : index
    %c3_338 = arith.constant 3 : index
    %1065 = arith.index_cast %1064 : i32 to index
    %c0_339 = arith.constant 0 : index
    %1066 = vector.load %arg2[%c0_337, %c3_338, %1065, %c0_339] : memref<1x4x18x18xf32, #tpu.memory_space<vmem>>, vector<1x1x16x18xf32>
    %1067 = vector.shape_cast %1066 : vector<1x1x16x18xf32> to vector<16x18xf32>
    %c1_i32_340 = arith.constant 1 : i32
    %1068 = arith.addi %1, %c1_i32_340 : i32
    %c1_i32_341 = arith.constant 1 : i32
    %1069 = arith.addi %1068, %c1_i32_341 : i32
    %c0_342 = arith.constant 0 : index
    %c3_343 = arith.constant 3 : index
    %1070 = arith.index_cast %1069 : i32 to index
    %c0_344 = arith.constant 0 : index
    %1071 = vector.load %arg2[%c0_342, %c3_343, %1070, %c0_344] : memref<1x4x18x18xf32, #tpu.memory_space<vmem>>, vector<1x1x16x18xf32>
    %1072 = vector.shape_cast %1071 : vector<1x1x16x18xf32> to vector<16x18xf32>
    %1073 = vector.extract_strided_slice %1067 {offsets = [0, 0], sizes = [16, 16], strides = [1, 1]} : vector<16x18xf32> to vector<16x16xf32>
    %1074 = vector.extract_strided_slice %1067 {offsets = [0, 1], sizes = [16, 16], strides = [1, 1]} : vector<16x18xf32> to vector<16x16xf32>
    %1075 = vector.extract_strided_slice %1067 {offsets = [0, 2], sizes = [16, 16], strides = [1, 1]} : vector<16x18xf32> to vector<16x16xf32>
    %1076 = vector.extract_strided_slice %1072 {offsets = [0, 0], sizes = [16, 16], strides = [1, 1]} : vector<16x18xf32> to vector<16x16xf32>
    %1077 = vector.extract_strided_slice %1072 {offsets = [0, 1], sizes = [16, 16], strides = [1, 1]} : vector<16x18xf32> to vector<16x16xf32>
    %1078 = vector.extract_strided_slice %1072 {offsets = [0, 2], sizes = [16, 16], strides = [1, 1]} : vector<16x18xf32> to vector<16x16xf32>
    %c140 = arith.constant 140 : index
    %c0_345 = arith.constant 0 : index
    %1079 = vector.load %arg3[%c140, %c0_345] : memref<256x16xf32, #tpu.memory_space<vmem>>, vector<1x16xf32>
    %1080 = vector.broadcast %1079 : vector<1x16xf32> to vector<16x16xf32>
    %1081 = arith.mulf %1080, %1073 : vector<16x16xf32>
    %1082 = arith.addf %1018, %1081 : vector<16x16xf32>
    %c141 = arith.constant 141 : index
    %c0_346 = arith.constant 0 : index
    %1083 = vector.load %arg3[%c141, %c0_346] : memref<256x16xf32, #tpu.memory_space<vmem>>, vector<1x16xf32>
    %1084 = vector.broadcast %1083 : vector<1x16xf32> to vector<16x16xf32>
    %1085 = arith.mulf %1084, %1073 : vector<16x16xf32>
    %1086 = arith.addf %1022, %1085 : vector<16x16xf32>
    %c142 = arith.constant 142 : index
    %c0_347 = arith.constant 0 : index
    %1087 = vector.load %arg3[%c142, %c0_347] : memref<256x16xf32, #tpu.memory_space<vmem>>, vector<1x16xf32>
    %1088 = vector.broadcast %1087 : vector<1x16xf32> to vector<16x16xf32>
    %1089 = arith.mulf %1088, %1073 : vector<16x16xf32>
    %1090 = arith.addf %1026, %1089 : vector<16x16xf32>
    %c143 = arith.constant 143 : index
    %c0_348 = arith.constant 0 : index
    %1091 = vector.load %arg3[%c143, %c0_348] : memref<256x16xf32, #tpu.memory_space<vmem>>, vector<1x16xf32>
    %1092 = vector.broadcast %1091 : vector<1x16xf32> to vector<16x16xf32>
    %1093 = arith.mulf %1092, %1073 : vector<16x16xf32>
    %1094 = arith.addf %1030, %1093 : vector<16x16xf32>
    %c156 = arith.constant 156 : index
    %c0_349 = arith.constant 0 : index
    %1095 = vector.load %arg3[%c156, %c0_349] : memref<256x16xf32, #tpu.memory_space<vmem>>, vector<1x16xf32>
    %1096 = vector.broadcast %1095 : vector<1x16xf32> to vector<16x16xf32>
    %1097 = arith.mulf %1096, %1074 : vector<16x16xf32>
    %1098 = arith.addf %1082, %1097 : vector<16x16xf32>
    %c157 = arith.constant 157 : index
    %c0_350 = arith.constant 0 : index
    %1099 = vector.load %arg3[%c157, %c0_350] : memref<256x16xf32, #tpu.memory_space<vmem>>, vector<1x16xf32>
    %1100 = vector.broadcast %1099 : vector<1x16xf32> to vector<16x16xf32>
    %1101 = arith.mulf %1100, %1074 : vector<16x16xf32>
    %1102 = arith.addf %1086, %1101 : vector<16x16xf32>
    %c158 = arith.constant 158 : index
    %c0_351 = arith.constant 0 : index
    %1103 = vector.load %arg3[%c158, %c0_351] : memref<256x16xf32, #tpu.memory_space<vmem>>, vector<1x16xf32>
    %1104 = vector.broadcast %1103 : vector<1x16xf32> to vector<16x16xf32>
    %1105 = arith.mulf %1104, %1074 : vector<16x16xf32>
    %1106 = arith.addf %1090, %1105 : vector<16x16xf32>
    %c159 = arith.constant 159 : index
    %c0_352 = arith.constant 0 : index
    %1107 = vector.load %arg3[%c159, %c0_352] : memref<256x16xf32, #tpu.memory_space<vmem>>, vector<1x16xf32>
    %1108 = vector.broadcast %1107 : vector<1x16xf32> to vector<16x16xf32>
    %1109 = arith.mulf %1108, %1074 : vector<16x16xf32>
    %1110 = arith.addf %1094, %1109 : vector<16x16xf32>
    %c204 = arith.constant 204 : index
    %c0_353 = arith.constant 0 : index
    %1111 = vector.load %arg3[%c204, %c0_353] : memref<256x16xf32, #tpu.memory_space<vmem>>, vector<1x16xf32>
    %1112 = vector.broadcast %1111 : vector<1x16xf32> to vector<16x16xf32>
    %1113 = arith.mulf %1112, %1074 : vector<16x16xf32>
    %1114 = arith.addf %1050, %1113 : vector<16x16xf32>
    %c205 = arith.constant 205 : index
    %c0_354 = arith.constant 0 : index
    %1115 = vector.load %arg3[%c205, %c0_354] : memref<256x16xf32, #tpu.memory_space<vmem>>, vector<1x16xf32>
    %1116 = vector.broadcast %1115 : vector<1x16xf32> to vector<16x16xf32>
    %1117 = arith.mulf %1116, %1074 : vector<16x16xf32>
    %1118 = arith.addf %1054, %1117 : vector<16x16xf32>
    %c206 = arith.constant 206 : index
    %c0_355 = arith.constant 0 : index
    %1119 = vector.load %arg3[%c206, %c0_355] : memref<256x16xf32, #tpu.memory_space<vmem>>, vector<1x16xf32>
    %1120 = vector.broadcast %1119 : vector<1x16xf32> to vector<16x16xf32>
    %1121 = arith.mulf %1120, %1074 : vector<16x16xf32>
    %1122 = arith.addf %1058, %1121 : vector<16x16xf32>
    %c207 = arith.constant 207 : index
    %c0_356 = arith.constant 0 : index
    %1123 = vector.load %arg3[%c207, %c0_356] : memref<256x16xf32, #tpu.memory_space<vmem>>, vector<1x16xf32>
    %1124 = vector.broadcast %1123 : vector<1x16xf32> to vector<16x16xf32>
    %1125 = arith.mulf %1124, %1074 : vector<16x16xf32>
    %1126 = arith.addf %1062, %1125 : vector<16x16xf32>
    %c220 = arith.constant 220 : index
    %c0_357 = arith.constant 0 : index
    %1127 = vector.load %arg3[%c220, %c0_357] : memref<256x16xf32, #tpu.memory_space<vmem>>, vector<1x16xf32>
    %1128 = vector.broadcast %1127 : vector<1x16xf32> to vector<16x16xf32>
    %1129 = arith.mulf %1128, %1075 : vector<16x16xf32>
    %1130 = arith.addf %1114, %1129 : vector<16x16xf32>
    %c221 = arith.constant 221 : index
    %c0_358 = arith.constant 0 : index
    %1131 = vector.load %arg3[%c221, %c0_358] : memref<256x16xf32, #tpu.memory_space<vmem>>, vector<1x16xf32>
    %1132 = vector.broadcast %1131 : vector<1x16xf32> to vector<16x16xf32>
    %1133 = arith.mulf %1132, %1075 : vector<16x16xf32>
    %1134 = arith.addf %1118, %1133 : vector<16x16xf32>
    %c222 = arith.constant 222 : index
    %c0_359 = arith.constant 0 : index
    %1135 = vector.load %arg3[%c222, %c0_359] : memref<256x16xf32, #tpu.memory_space<vmem>>, vector<1x16xf32>
    %1136 = vector.broadcast %1135 : vector<1x16xf32> to vector<16x16xf32>
    %1137 = arith.mulf %1136, %1075 : vector<16x16xf32>
    %1138 = arith.addf %1122, %1137 : vector<16x16xf32>
    %c223 = arith.constant 223 : index
    %c0_360 = arith.constant 0 : index
    %1139 = vector.load %arg3[%c223, %c0_360] : memref<256x16xf32, #tpu.memory_space<vmem>>, vector<1x16xf32>
    %1140 = vector.broadcast %1139 : vector<1x16xf32> to vector<16x16xf32>
    %1141 = arith.mulf %1140, %1075 : vector<16x16xf32>
    %1142 = arith.addf %1126, %1141 : vector<16x16xf32>
    %c172 = arith.constant 172 : index
    %c0_361 = arith.constant 0 : index
    %1143 = vector.load %arg3[%c172, %c0_361] : memref<256x16xf32, #tpu.memory_space<vmem>>, vector<1x16xf32>
    %1144 = vector.broadcast %1143 : vector<1x16xf32> to vector<16x16xf32>
    %1145 = arith.mulf %1144, %1076 : vector<16x16xf32>
    %1146 = arith.addf %1098, %1145 : vector<16x16xf32>
    %c173 = arith.constant 173 : index
    %c0_362 = arith.constant 0 : index
    %1147 = vector.load %arg3[%c173, %c0_362] : memref<256x16xf32, #tpu.memory_space<vmem>>, vector<1x16xf32>
    %1148 = vector.broadcast %1147 : vector<1x16xf32> to vector<16x16xf32>
    %1149 = arith.mulf %1148, %1076 : vector<16x16xf32>
    %1150 = arith.addf %1102, %1149 : vector<16x16xf32>
    %c174 = arith.constant 174 : index
    %c0_363 = arith.constant 0 : index
    %1151 = vector.load %arg3[%c174, %c0_363] : memref<256x16xf32, #tpu.memory_space<vmem>>, vector<1x16xf32>
    %1152 = vector.broadcast %1151 : vector<1x16xf32> to vector<16x16xf32>
    %1153 = arith.mulf %1152, %1076 : vector<16x16xf32>
    %1154 = arith.addf %1106, %1153 : vector<16x16xf32>
    %c175 = arith.constant 175 : index
    %c0_364 = arith.constant 0 : index
    %1155 = vector.load %arg3[%c175, %c0_364] : memref<256x16xf32, #tpu.memory_space<vmem>>, vector<1x16xf32>
    %1156 = vector.broadcast %1155 : vector<1x16xf32> to vector<16x16xf32>
    %1157 = arith.mulf %1156, %1076 : vector<16x16xf32>
    %1158 = arith.addf %1110, %1157 : vector<16x16xf32>
    %c188 = arith.constant 188 : index
    %c0_365 = arith.constant 0 : index
    %1159 = vector.load %arg3[%c188, %c0_365] : memref<256x16xf32, #tpu.memory_space<vmem>>, vector<1x16xf32>
    %1160 = vector.broadcast %1159 : vector<1x16xf32> to vector<16x16xf32>
    %1161 = arith.mulf %1160, %1077 : vector<16x16xf32>
    %1162 = arith.addf %1146, %1161 : vector<16x16xf32>
    %c189 = arith.constant 189 : index
    %c0_366 = arith.constant 0 : index
    %1163 = vector.load %arg3[%c189, %c0_366] : memref<256x16xf32, #tpu.memory_space<vmem>>, vector<1x16xf32>
    %1164 = vector.broadcast %1163 : vector<1x16xf32> to vector<16x16xf32>
    %1165 = arith.mulf %1164, %1077 : vector<16x16xf32>
    %1166 = arith.addf %1150, %1165 : vector<16x16xf32>
    %c190 = arith.constant 190 : index
    %c0_367 = arith.constant 0 : index
    %1167 = vector.load %arg3[%c190, %c0_367] : memref<256x16xf32, #tpu.memory_space<vmem>>, vector<1x16xf32>
    %1168 = vector.broadcast %1167 : vector<1x16xf32> to vector<16x16xf32>
    %1169 = arith.mulf %1168, %1077 : vector<16x16xf32>
    %1170 = arith.addf %1154, %1169 : vector<16x16xf32>
    %c191 = arith.constant 191 : index
    %c0_368 = arith.constant 0 : index
    %1171 = vector.load %arg3[%c191, %c0_368] : memref<256x16xf32, #tpu.memory_space<vmem>>, vector<1x16xf32>
    %1172 = vector.broadcast %1171 : vector<1x16xf32> to vector<16x16xf32>
    %1173 = arith.mulf %1172, %1077 : vector<16x16xf32>
    %1174 = arith.addf %1158, %1173 : vector<16x16xf32>
    %c236 = arith.constant 236 : index
    %c0_369 = arith.constant 0 : index
    %1175 = vector.load %arg3[%c236, %c0_369] : memref<256x16xf32, #tpu.memory_space<vmem>>, vector<1x16xf32>
    %1176 = vector.broadcast %1175 : vector<1x16xf32> to vector<16x16xf32>
    %1177 = arith.mulf %1176, %1077 : vector<16x16xf32>
    %1178 = arith.addf %1130, %1177 : vector<16x16xf32>
    %c237 = arith.constant 237 : index
    %c0_370 = arith.constant 0 : index
    %1179 = vector.load %arg3[%c237, %c0_370] : memref<256x16xf32, #tpu.memory_space<vmem>>, vector<1x16xf32>
    %1180 = vector.broadcast %1179 : vector<1x16xf32> to vector<16x16xf32>
    %1181 = arith.mulf %1180, %1077 : vector<16x16xf32>
    %1182 = arith.addf %1134, %1181 : vector<16x16xf32>
    %c238 = arith.constant 238 : index
    %c0_371 = arith.constant 0 : index
    %1183 = vector.load %arg3[%c238, %c0_371] : memref<256x16xf32, #tpu.memory_space<vmem>>, vector<1x16xf32>
    %1184 = vector.broadcast %1183 : vector<1x16xf32> to vector<16x16xf32>
    %1185 = arith.mulf %1184, %1077 : vector<16x16xf32>
    %1186 = arith.addf %1138, %1185 : vector<16x16xf32>
    %c239 = arith.constant 239 : index
    %c0_372 = arith.constant 0 : index
    %1187 = vector.load %arg3[%c239, %c0_372] : memref<256x16xf32, #tpu.memory_space<vmem>>, vector<1x16xf32>
    %1188 = vector.broadcast %1187 : vector<1x16xf32> to vector<16x16xf32>
    %1189 = arith.mulf %1188, %1077 : vector<16x16xf32>
    %1190 = arith.addf %1142, %1189 : vector<16x16xf32>
    %c252 = arith.constant 252 : index
    %c0_373 = arith.constant 0 : index
    %1191 = vector.load %arg3[%c252, %c0_373] : memref<256x16xf32, #tpu.memory_space<vmem>>, vector<1x16xf32>
    %1192 = vector.broadcast %1191 : vector<1x16xf32> to vector<16x16xf32>
    %1193 = arith.mulf %1192, %1078 : vector<16x16xf32>
    %1194 = arith.addf %1178, %1193 : vector<16x16xf32>
    %c253 = arith.constant 253 : index
    %c0_374 = arith.constant 0 : index
    %1195 = vector.load %arg3[%c253, %c0_374] : memref<256x16xf32, #tpu.memory_space<vmem>>, vector<1x16xf32>
    %1196 = vector.broadcast %1195 : vector<1x16xf32> to vector<16x16xf32>
    %1197 = arith.mulf %1196, %1078 : vector<16x16xf32>
    %1198 = arith.addf %1182, %1197 : vector<16x16xf32>
    %c254 = arith.constant 254 : index
    %c0_375 = arith.constant 0 : index
    %1199 = vector.load %arg3[%c254, %c0_375] : memref<256x16xf32, #tpu.memory_space<vmem>>, vector<1x16xf32>
    %1200 = vector.broadcast %1199 : vector<1x16xf32> to vector<16x16xf32>
    %1201 = arith.mulf %1200, %1078 : vector<16x16xf32>
    %1202 = arith.addf %1186, %1201 : vector<16x16xf32>
    %c255 = arith.constant 255 : index
    %c0_376 = arith.constant 0 : index
    %1203 = vector.load %arg3[%c255, %c0_376] : memref<256x16xf32, #tpu.memory_space<vmem>>, vector<1x16xf32>
    %1204 = vector.broadcast %1203 : vector<1x16xf32> to vector<16x16xf32>
    %1205 = arith.mulf %1204, %1078 : vector<16x16xf32>
    %1206 = arith.addf %1190, %1205 : vector<16x16xf32>
    %1207 = tpu.concatenate %1162, %1166, %1170, %1174 in 0 : vector<16x16xf32>, vector<16x16xf32>, vector<16x16xf32>, vector<16x16xf32> -> vector<64x16xf32>
    %1208 = tpu.concatenate %1194, %1198, %1202, %1206 in 0 : vector<16x16xf32>, vector<16x16xf32>, vector<16x16xf32>, vector<16x16xf32> -> vector<64x16xf32>
    %cst_377 = arith.constant dense<0.000000e+00> : vector<64x32xf32>
    %1209 = tpu.matmul %1207, %3, %cst_377 {dimension_numbers = #tpu.dot_dimension_numbers<[1], [0], [0], [1], [0, 0, 1, 1], [], []>} : vector<64x16xf32>, vector<16x32xf32>, vector<64x32xf32> -> vector<64x32xf32>
    %cst_378 = arith.constant dense<0.000000e+00> : vector<64x32xf32>
    %1210 = tpu.matmul %1208, %5, %cst_378 {dimension_numbers = #tpu.dot_dimension_numbers<[1], [0], [0], [1], [0, 0, 1, 1], [], []>} : vector<64x16xf32>, vector<16x32xf32>, vector<64x32xf32> -> vector<64x32xf32>
    %1211 = arith.addf %1209, %1210 : vector<64x32xf32>
    %1212 = vector.extract_strided_slice %1211 {offsets = [0, 0], sizes = [16, 32], strides = [1, 1]} : vector<64x32xf32> to vector<16x32xf32>
    %c0_379 = arith.constant 0 : index
    %1213 = memref.load %arg5[%c0_379] : memref<4xf32, #tpu.memory_space<smem>>
    %1214 = vector.broadcast %1213 : f32 to vector<16x32xf32>
    %1215 = arith.addf %1212, %1214 : vector<16x32xf32>
    %c0_380 = arith.constant 0 : index
    %c0_381 = arith.constant 0 : index
    %c0_382 = arith.constant 0 : index
    %c32_383 = arith.constant 32 : index
    %1216 = vector.load %arg6[%c0_380, %c0_381, %c0_382, %c32_383] : memref<1x4x16x64xf32, #tpu.memory_space<vmem>>, vector<1x1x16x32xf32>
    %1217 = vector.shape_cast %1216 : vector<1x1x16x32xf32> to vector<16x32xf32>
    %1218 = vector.shape_cast %1215 : vector<16x32xf32> to vector<1x1x16x32xf32>
    tpu.vector_store %arg6[%c0_380, %c0_381, %c0_382, %c32_383], %1218 {strides = array<i32>} : memref<1x4x16x64xf32, #tpu.memory_space<vmem>>, vector<1x1x16x32xf32>,
    %1219 = vector.extract_strided_slice %1211 {offsets = [16, 0], sizes = [16, 32], strides = [1, 1]} : vector<64x32xf32> to vector<16x32xf32>
    %c1_384 = arith.constant 1 : index
    %1220 = memref.load %arg5[%c1_384] : memref<4xf32, #tpu.memory_space<smem>>
    %1221 = vector.broadcast %1220 : f32 to vector<16x32xf32>
    %1222 = arith.addf %1219, %1221 : vector<16x32xf32>
    %c0_385 = arith.constant 0 : index
    %c1_386 = arith.constant 1 : index
    %c0_387 = arith.constant 0 : index
    %c32_388 = arith.constant 32 : index
    %1223 = vector.load %arg6[%c0_385, %c1_386, %c0_387, %c32_388] : memref<1x4x16x64xf32, #tpu.memory_space<vmem>>, vector<1x1x16x32xf32>
    %1224 = vector.shape_cast %1223 : vector<1x1x16x32xf32> to vector<16x32xf32>
    %1225 = vector.shape_cast %1222 : vector<16x32xf32> to vector<1x1x16x32xf32>
    tpu.vector_store %arg6[%c0_385, %c1_386, %c0_387, %c32_388], %1225 {strides = array<i32>} : memref<1x4x16x64xf32, #tpu.memory_space<vmem>>, vector<1x1x16x32xf32>,
    %1226 = vector.extract_strided_slice %1211 {offsets = [32, 0], sizes = [16, 32], strides = [1, 1]} : vector<64x32xf32> to vector<16x32xf32>
    %c2_389 = arith.constant 2 : index
    %1227 = memref.load %arg5[%c2_389] : memref<4xf32, #tpu.memory_space<smem>>
    %1228 = vector.broadcast %1227 : f32 to vector<16x32xf32>
    %1229 = arith.addf %1226, %1228 : vector<16x32xf32>
    %c0_390 = arith.constant 0 : index
    %c2_391 = arith.constant 2 : index
    %c0_392 = arith.constant 0 : index
    %c32_393 = arith.constant 32 : index
    %1230 = vector.load %arg6[%c0_390, %c2_391, %c0_392, %c32_393] : memref<1x4x16x64xf32, #tpu.memory_space<vmem>>, vector<1x1x16x32xf32>
    %1231 = vector.shape_cast %1230 : vector<1x1x16x32xf32> to vector<16x32xf32>
    %1232 = vector.shape_cast %1229 : vector<16x32xf32> to vector<1x1x16x32xf32>
    tpu.vector_store %arg6[%c0_390, %c2_391, %c0_392, %c32_393], %1232 {strides = array<i32>} : memref<1x4x16x64xf32, #tpu.memory_space<vmem>>, vector<1x1x16x32xf32>,
    %1233 = vector.extract_strided_slice %1211 {offsets = [48, 0], sizes = [16, 32], strides = [1, 1]} : vector<64x32xf32> to vector<16x32xf32>
    %c3_394 = arith.constant 3 : index
    %1234 = memref.load %arg5[%c3_394] : memref<4xf32, #tpu.memory_space<smem>>
    %1235 = vector.broadcast %1234 : f32 to vector<16x32xf32>
    %1236 = arith.addf %1233, %1235 : vector<16x32xf32>
    %c0_395 = arith.constant 0 : index
    %c3_396 = arith.constant 3 : index
    %c0_397 = arith.constant 0 : index
    %c32_398 = arith.constant 32 : index
    %1237 = vector.load %arg6[%c0_395, %c3_396, %c0_397, %c32_398] : memref<1x4x16x64xf32, #tpu.memory_space<vmem>>, vector<1x1x16x32xf32>
    %1238 = vector.shape_cast %1237 : vector<1x1x16x32xf32> to vector<16x32xf32>
    %1239 = vector.shape_cast %1236 : vector<16x32xf32> to vector<1x1x16x32xf32>
    tpu.vector_store %arg6[%c0_395, %c3_396, %c0_397, %c32_398], %1239 {strides = array<i32>} : memref<1x4x16x64xf32, #tpu.memory_space<vmem>>, vector<1x1x16x32xf32>,
    return
  }
  func.func @transform_0(%arg0: i32, %arg1: i32) -> (i32, i32, i32, i32) {
    %c0_i32 = arith.constant 0 : i32
    %c0_i32_0 = arith.constant 0 : i32
    %c0_i32_1 = arith.constant 0 : i32
    %c0_i32_2 = arith.constant 0 : i32
    return %arg0, %c0_i32, %c0_i32_0, %c0_i32_1 : i32, i32, i32, i32
  }
  func.func @transform_1(%arg0: i32, %arg1: i32) -> (i32, i32) {
    %c0_i32 = arith.constant 0 : i32
    %c0_i32_0 = arith.constant 0 : i32
    %c0_i32_1 = arith.constant 0 : i32
    return %c0_i32, %c0_i32_0 : i32, i32
  }
  func.func @transform_2(%arg0: i32, %arg1: i32) -> (i32, i32, i32) {
    %c0_i32 = arith.constant 0 : i32
    %c0_i32_0 = arith.constant 0 : i32
    %c0_i32_1 = arith.constant 0 : i32
    %c0_i32_2 = arith.constant 0 : i32
    return %c0_i32, %c0_i32_0, %c0_i32_1 : i32, i32, i32
  }
  func.func @transform_3(%arg0: i32, %arg1: i32) -> i32 {
    %c0_i32 = arith.constant 0 : i32
    %c0_i32_0 = arith.constant 0 : i32
    return %c0_i32 : i32
  }
  func.func @transform_4(%arg0: i32, %arg1: i32) -> (i32, i32, i32, i32) {
    %c0_i32 = arith.constant 0 : i32
    %c0_i32_0 = arith.constant 0 : i32
    %c0_i32_1 = arith.constant 0 : i32
    return %arg0, %c0_i32, %arg1, %c0_i32_0 : i32, i32, i32, i32
  }
}

</mosaic_0001>

<bundles_post_ra>
// kernel: upsample_forward.1
= control target key start
LH: loop header
LB: loop body
LE: loop exit
PB: predicated region body
PF: predicated region fallthrough
CT: control target
= control target key end

     0   :  { %9 = vsyncpa [#allocation3], 0  ;;  %s4159_s15 = smov 0   ;;  %s4161_s16 = smov 0   ;;  %s6389_s0 = inlined_call_operand.vmem [shape: f32[2,4,18,18], index: 0, kind: input, shape index: {}]   ;;  %s6390_s1 = inlined_call_operand.vmem [shape: f32[256,16], index: 1, kind: input, shape index: {}]   ;;  %s6391_s2 = inlined_call_operand.vmem [shape: f32[2,16,32], index: 2, kind: input, shape index: {}]   ;;  %s6392_s3 = inlined_call_operand.vmem [shape: f32[4], index: 3, kind: input, shape index: {}]   ;;  %s6393_s4 = inlined_call_operand.vmem [shape: f32[2,4,16,64], index: 4, kind: output, shape index: {}]  }
   0x1   :  { %s4163_s17 = smov 0  }
   0x2 LB: > { %s3554_s18 = sadd.s32 4294967295, %s4128_s17   ;;  %s27_s19 = sadd.s32 1, %s4124_s16  ;;  %s4128_s17 = sphi %s4163_s17, %s15_s17   ;;  %s4124_s16 = sphi %s4161_s16, %s6610_s16   ;;  %s4120_s15 = sphi %s4159_s15, %s6609_s15  }
   0x3   : > { %p29_p0 = scmp.ge.s32.totalorder %s27_s19, 2  ;;  %p3556_p1 = scmp.ge.s32.totalorder %s4128_s17, 1 }
   0x4   : > { %p149_p2 = scmp.lt.s32.totalorder %s4128_s17, 3  ;;  %p4184_p4 = scmp.eq.s32.totalorder %s3554_s18, 0 }
   0x5   : > { %s6612_s19 = smov (%p29_p0, %s27_s19), 0  ;;  %s168_s24 = sshll.u32 %s6392_s3, 4  ;;  %s169_s24 = int_to_ptr.vmem [resolvable:$true] %s168_s24 }
   0x6   : > { %p4180_p3 = pnand %p3556_p1, %p149_p2  ;;  %s4087_s25 = scalar_lea.vmem %s169_s24, 16 }
   0x7   : > { %p4088_p7 = scmp.ne.s32.totalorder %s169_s24, %s4087_s25  ;;  %p4095_p11 = scmp.lt.s32.totalorder %s169_s24, %s169_s24 }
   0x8   : > { %p4046_p5 = pneg %p4180_p3  ;;  %p4096_p12 = scmp.lt.s32.totalorder %s4087_s25, %s4087_s25 }
   0xa   : > { %p4047_p6 = pnand %p4184_p4, %p4046_p5  ;;  %p4097_p13 = por %p4096_p12, %p4095_p11 }
   0xc   : > { %p4089_p8 = pneg %p4047_p6 }
   0xe   : > { %p4090_p9 = pnand %p4089_p8, %p4088_p7 }
  0x10   : > { %p4091_p10 = pneg %p4090_p9 }
  0x12   : > { %p4098_p0 = pnand %p4097_p13, %p4091_p10 }
  0x14   : > { %4101 = shalt.err (!%p4098_p0)
}
  0x15   : > { %s4130_s26 = smov [#allocation2]   ;;  %189 = sbr.rel (%p4180_p3) target bundleno = 661 (0x295), region = 36 }
  0x16   : > { %4049 = dma.vmem_to_smem (!%p4047_p6), %s169_s24, 16, %s4130_s26, [#allocation3]  }
  0x1c   : > { %4115 = dma.done.wait (%p4184_p4), [#allocation3], 16  }
  0x1d   : > { %4117 = vsyncadd (%p4184_p4), [#allocation3], 4294967280 }
  0x1e   : > { %195 = sfence }
  0x1f   : > { %p220_p1 = scmp.lt.s32.totalorder %s4120_s15, 1  ;;  %s4131_s5 = smov 127   ;;  %v3564_v18 = vld [vmem:[%s6391_s2 + $0x10] sm:$0xff]  ;;  %v3565_v19 = vld [vmem:[%s6391_s2 + $0x18] sm:$0xff]  ;;  %v236_v22 = vld [vmem:[%s6391_s2] sm:$0xff]  ;;  %vm1536_vm0 = vcmask 130048  }
  0x20   : > { %s4132_s6 = smov 126   ;;  %v4009_v20 = vpack.c.bf16 %v3565_v19, %v3564_v18  ;;  %v237_v23 = vld [vmem:[%s6391_s2 + $0x8] sm:$0xff]  ;;  %v3737_v26 = vld [vmem:[%s6390_s1 + $0x80] ss:$0 sm:$0xff]  ;;  %v3738_v27 = vld [vmem:[%s6390_s1 + $0x81] ss:$0 sm:$0xff] }
  0x21   : > { %s6614_s15 = smov (!%p220_p1, %s4120_s15), 1  ;;  %v4363_v25 = vpack.c.bf16 %v237_v23, %v236_v22  ;;  %v3739_v28 = vld [vmem:[%s6390_s1 + $0x82] ss:$0 sm:$0xff]  ;;  %v3740_v29 = vld [vmem:[%s6390_s1 + $0x83] ss:$0 sm:$0xff]  ;;  %s3369_s18 = sld [smem:[#allocation2]] }
  0x22   : > { %s4041_s27 = smul.u32 96, %s6614_s15  ;;  %4018 = vmatprep.subr.bf16.mxu1 %v4009_v20  ;;  %4010 = vmatprep.subr.bf16.mxu0 %v4009_v20  ;;  %v3753_v30 = vld [vmem:[%s6390_s1 + $0xa0] ss:$0 sm:$0xff]  ;;  %v3754_v31 = vld [vmem:[%s6390_s1 + $0xa1] ss:$0 sm:$0xff]  ;;  %s4133_s20 = smov 32  }
  0x23   : > { %4020 = vmatpush3.bf16.msra.mxu1 %v4009_v20  ;;  %4012 = vmatpush3.bf16.msra.mxu0 %v4009_v20  ;;  %6406 = vst [vmem:[#allocation5_spill] sm:$0xff] %v4363_v25  ;;  %v3755_v32 = vld [vmem:[%s6390_s1 + $0xa2] ss:$0 sm:$0xff]  ;;  %v3756_v36 = vld [vmem:[%s6390_s1 + $0xa3] ss:$0 sm:$0xff]  ;;  %s3896_s21 = sld [smem:[#allocation2 + $0x2]] }
  0x24   : > { %s4209_s30 = scalar_lea.vmem %s6389_s0, %s4041_s27  ;;  %4022 = vmatprep.subr.bf16.mxu1 %v4363_v25  ;;  %4014 = vmatprep.subr.bf16.mxu0 %v4363_v25  ;;  %v3773_v41 = vld [vmem:[%s6390_s1 + $0x84] ss:$0 sm:$0xff]  ;;  %v3774_v42 = vld [vmem:[%s6390_s1 + $0x85] ss:$0 sm:$0xff]  ;;  %v3775_v43 = vld [vmem:[%s6390_s1 + $0x86] ss:$0 sm:$0xff] }
  0x25   : > { %v4212_v0 = vld [vmem:[%s4209_s30 + $0x9] sm:$0xff]  ;;  %v4215_v1 = vld [vmem:[%s4209_s30 + $0x1] sm:$0xff]  ;;  %v4243_v5 = vld [vmem:[%s4209_s30 + $0x19] sm:$0xff]  ;;  %s3899_s22 = sld [smem:[#allocation2 + $0x3]]  ;;  %s3904_s23 = sshll.u32 %s6614_s15, 6  ;;  %vm1799_vm1 = vcmask 261120  }
  0x26   : > { %1874 = vrot.lane.b32.xlu1 %v4212_v0, %s4131_s5  ;;  %1872 = vrot.lane.b32.xlu0 %v4215_v1, %s4131_s5  ;;  %v4226_v2 = vld [vmem:[%s4209_s30 + $0xa] sm:$0xff]  ;;  %v4229_v3 = vld [vmem:[%s4209_s30 + $0x2] sm:$0xff]  ;;  %v4401_v33 = vmul.f32 %v3737_v26, %v4212_v0  ;;  %v4404_v34 = vmul.f32 %v3738_v27, %v4212_v0  ;;  %v4407_v35 = vmul.f32 %v3739_v28, %v4212_v0  ;;  %s6346_s26 = scalar_lea.vmem %s6393_s4, %s3904_s23  ;;  %vm3381_vm2 = vcmask 523520  }
  0x27   : > { %v4240_v4 = vld [vmem:[%s4209_s30 + $0x21] sm:$0xff]  ;;  %v4268_v8 = vld [vmem:[%s4209_s30 + $0x39] sm:$0xff]  ;;  %v4271_v9 = vld [vmem:[%s4209_s30 + $0x31] sm:$0xff]  ;;  %v4413_v37 = vmul.f32 %v3740_v29, %v4212_v0  ;;  %v4416_v38 = vmul.f32 %v3737_v26, %v4215_v1  ;;  %v4419_v39 = vmul.f32 %v3738_v27, %v4215_v1  ;;  %v4422_v40 = vmul.f32 %v3739_v28, %v4215_v1 }
  0x28   : > { %v4254_v6 = vld [vmem:[%s4209_s30 + $0x22] sm:$0xff]  ;;  %v4257_v7 = vld [vmem:[%s4209_s30 + $0x1a] sm:$0xff]  ;;  %v4285_v11 = vld [vmem:[%s4209_s30 + $0x32] sm:$0xff]  ;;  %v4436_v44 = vmul.f32 %v3740_v29, %v4215_v1  ;;  %v4439_v45 = vmul.f32 %v3753_v30, %v4226_v2  ;;  %v4442_v46 = vmul.f32 %v3754_v31, %v4226_v2  ;;  %v4445_v47 = vmul.f32 %v3755_v32, %v4226_v2 }
  0x29   : > { %v4282_v10 = vld [vmem:[%s4209_s30 + $0x3a] sm:$0xff]  ;;  %v4296_v12 = vld [vmem:[%s4209_s30 + $0x51] sm:$0xff]  ;;  %v4299_v13 = vld [vmem:[%s4209_s30 + $0x49] sm:$0xff]  ;;  %v4459_v51 = vmul.f32 %v3756_v36, %v4226_v2  ;;  %v4462_v52 = vmul.f32 %v3753_v30, %v4229_v3  ;;  %v4465_v53 = vmul.f32 %v3754_v31, %v4229_v3  ;;  %v4468_v54 = vmul.f32 %v3755_v32, %v4229_v3 }
  0x2a   : > { %1952 = vrot.lane.b32.xlu1 %v4212_v0, %s4132_s6  ;;  %1950 = vrot.lane.b32.xlu0 %v4215_v1, %s4132_s6  ;;  %v4310_v14 = vld [vmem:[%s4209_s30 + $0x52] sm:$0xff]  ;;  %v4313_v15 = vld [vmem:[%s4209_s30 + $0x4a] sm:$0xff]  ;;  %v4480_v58 = vmul.f32 %v3756_v36, %v4229_v3  ;;  %v4483_v59 = vmul.f32 %v3773_v41, %v4240_v4  ;;  %v4486_v60 = vmul.f32 %v3774_v42, %v4240_v4 }
  0x2b   : > { %v4324_v16 = vld [vmem:[%s4209_s30] sm:$0xff]  ;;  %v4331_v17 = vld [vmem:[%s4209_s30 + $0x8] sm:$0xff]  ;;  %v4361_v24 = vld [vmem:[%s4209_s30 + $0x18] sm:$0xff]  ;;  %v4489_v61 = vmul.f32 %v3775_v43, %v4240_v4  ;;  %v4504_v18 = vmul.f32 %v3775_v43, %v4243_v5 }
  0x2c   : > { %v4352_v21 = vld [vmem:[%s4209_s30 + $0x20] sm:$0xff]  ;;  %v4456_v50 = vld [vmem:[%s4209_s30 + $0x38] sm:$0xff]  ;;  %v4477_v57 = vld [vmem:[%s4209_s30 + $0x30] sm:$0xff] }
  0x2d   : > { %v3776_v48 = vld [vmem:[%s6390_s1 + $0x87] ss:$0 sm:$0xff]  ;;  %v3789_v49 = vld [vmem:[%s6390_s1 + $0xa4] ss:$0 sm:$0xff]  ;;  %v3790_v55 = vld [vmem:[%s6390_s1 + $0xa5] ss:$0 sm:$0xff] }
  0x2e   : > { %2032 = vrot.lane.b32.xlu1 %v4226_v2, %s4131_s5  ;;  %2030 = vrot.lane.b32.xlu0 %v4229_v3, %s4131_s5  ;;  %v3791_v56 = vld [vmem:[%s6390_s1 + $0xa6] ss:$0 sm:$0xff]  ;;  %v3792_v62 = vld [vmem:[%s6390_s1 + $0xa7] ss:$0 sm:$0xff]  ;;  %v4495_v63 = vmul.f32 %v3776_v48, %v4240_v4  ;;  %v4518_v23 = vmul.f32 %v3776_v48, %v4243_v5  ;;  %v4521_v26 = vmul.f32 %v3789_v49, %v4254_v6 }
  0x2f   : > { %v3809_v19 = vld [vmem:[%s6390_s1 + $0x88] ss:$0 sm:$0xff]  ;;  %v3810_v20 = vld [vmem:[%s6390_s1 + $0x89] ss:$0 sm:$0xff]  ;;  %v3811_v22 = vld [vmem:[%s6390_s1 + $0x8a] ss:$0 sm:$0xff]  ;;  %v4524_v27 = vmul.f32 %v3790_v55, %v4254_v6  ;;  %v4527_v28 = vmul.f32 %v3791_v56, %v4254_v6  ;;  %v4535_v30 = vmul.f32 %v3792_v62, %v4254_v6  ;;  %v4538_v31 = vmul.f32 %v3789_v49, %v4257_v7 }
  0x30   : > { %6407 = vst [vmem:[#allocation6_spill] sm:$0xff] %v4521_v26  ;;  %v3812_v29 = vld [vmem:[%s6390_s1 + $0x8b] ss:$0 sm:$0xff]  ;;  %v4541_v32 = vmul.f32 %v3790_v55, %v4257_v7  ;;  %v4544_v36 = vmul.f32 %v3791_v56, %v4257_v7  ;;  %v4556_v43 = vmul.f32 %v3792_v62, %v4257_v7  ;;  %v4559_v48 = vmul.f32 %v3809_v19, %v4268_v8 }
  0x31   : > { %6408 = vst [vmem:[#allocation7_spill] sm:$0xff] %v4524_v27  ;;  %6409 = vst [vmem:[#allocation8_spill] sm:$0xff] %v4527_v28  ;;  %v4562_v49 = vmul.f32 %v3810_v20, %v4268_v8  ;;  %v4565_v55 = vmul.f32 %v3811_v22, %v4268_v8  ;;  %v3828_v56 = vld [vmem:[%s6390_s1 + $0xab] ss:$0 sm:$0xff]  ;;  %v4571_v25 = vmul.f32 %v3812_v29, %v4268_v8 }
  0x32   : > { %2110 = vrot.lane.b32.xlu1 %v4226_v2, %s4132_s6  ;;  %2108 = vrot.lane.b32.xlu0 %v4229_v3, %s4132_s6  ;;  %v4498_v2 = vmul.f32 %v3773_v41, %v4243_v5  ;;  %v4501_v3 = vmul.f32 %v3774_v42, %v4243_v5  ;;  %6410 = vst [vmem:[#allocation9_spill] sm:$0xff] %v4535_v30  ;;  %6411 = vst [vmem:[#allocation10_spill] sm:$0xff] %v4538_v31  ;;  %v3825_v41 = vld [vmem:[%s6390_s1 + $0xa8] ss:$0 sm:$0xff]  ;;  %v3826_v42 = vld [vmem:[%s6390_s1 + $0xa9] ss:$0 sm:$0xff] }
  0x33   : > { %6412 = vst [vmem:[#allocation11_spill] sm:$0xff] %v4541_v32  ;;  %6413 = vst [vmem:[#allocation12_spill] sm:$0xff] %v4544_v36  ;;  %v4574_v36 = vmul.f32 %v3809_v19, %v4271_v9  ;;  %v4580_v62 = vmul.f32 %v3811_v22, %v4271_v9  ;;  %v4594_v19 = vmul.f32 %v3812_v29, %v4271_v9 }
  0x34   : > { %6414 = vst [vmem:[#allocation13_spill] sm:$0xff] %v4556_v43  ;;  %6415 = vst [vmem:[#allocation14_spill] sm:$0xff] %v4559_v48  ;;  %v4600_v22 = vmul.f32 %v3826_v42, %v4282_v10  ;;  %v4614_v29 = vmul.f32 %v3825_v41, %v4285_v11 }
  0x35   : > { %6416 = vst [vmem:[#allocation15_spill] sm:$0xff] %v4562_v49  ;;  %6417 = vst [vmem:[#allocation16_spill] sm:$0xff] %v4565_v55  ;;  %v3568_v55 = vld [vmem:[%s6390_s1] ss:$0 sm:$0xff]  ;;  %v3569_v49 = vld [vmem:[%s6390_s1 + $0x1] ss:$0 sm:$0xff] }
  0x36   : > { %2196 = vrot.lane.b32.xlu1 %v4240_v4, %s4131_s5  ;;  %2194 = vrot.lane.b32.xlu0 %v4243_v5, %s4131_s5  ;;  %6418 = vst [vmem:[#allocation17_spill] sm:$0xff] %v4571_v25  ;;  %6419 = vst [vmem:[#allocation18_spill] sm:$0xff] %v4574_v36  ;;  %v3570_v25 = vld [vmem:[%s6390_s1 + $0x2] ss:$0 sm:$0xff]  ;;  %v4611_v36 = vmul.f32 %v3828_v56, %v4282_v10 }
  0x37   : > { %6421 = vst [vmem:[#allocation20_spill] sm:$0xff] %v4580_v62  ;;  %6422 = vst [vmem:[#allocation21_spill] sm:$0xff] %v4594_v19  ;;  %v4617_v19 = vmul.f32 %v3826_v42, %v4285_v11  ;;  %v4635_v42 = vmul.f32 %v3568_v55, %v4324_v16 }
  0x38   : > { %6424 = vst [vmem:[#allocation23_spill] sm:$0xff] %v4600_v22  ;;  %6426 = vst [vmem:[#allocation25_spill] sm:$0xff] %v4611_v36  ;;  %v4641_v36 = vmul.f32 %v3570_v25, %v4324_v16 }
  0x39   : > { %6427 = vst [vmem:[#allocation26_spill] sm:$0xff] %v4614_v29  ;;  %6428 = vst [vmem:[#allocation27_spill] sm:$0xff] %v4617_v19  ;;  %v4650_v29 = vmul.f32 %v3568_v55, %v4331_v17 }
  0x3a   : > { %2274 = vrot.lane.b32.xlu1 %v4240_v4, %s4132_s6  ;;  %2272 = vrot.lane.b32.xlu0 %v4243_v5, %s4132_s6  ;;  %6431 = vst [vmem:[#allocation30_spill] sm:$0xff] %v4635_v42  ;;  %6433 = vst [vmem:[#allocation32_spill] sm:$0xff] %v4641_v36  ;;  %v3605_v36 = vld [vmem:[%s6390_s1 + $0x5] ss:$0 sm:$0xff] }
  0x3b   : > { %6435 = vst [vmem:[#allocation34_spill] sm:$0xff] %v4650_v29 }
  0x3e   : > { %2354 = vrot.lane.b32.xlu1 %v4254_v6, %s4131_s5  ;;  %2352 = vrot.lane.b32.xlu0 %v4257_v7, %s4131_s5 }
  0x42   : > { %2432 = vrot.lane.b32.xlu1 %v4254_v6, %s4132_s6  ;;  %2430 = vrot.lane.b32.xlu0 %v4257_v7, %s4132_s6  ;;  %v3827_v6 = vld [vmem:[%s6390_s1 + $0xaa] ss:$0 sm:$0xff]  ;;  %v4577_v7 = vmul.f32 %v3810_v20, %v4271_v9  ;;  %v4597_v20 = vmul.f32 %v3825_v41, %v4282_v10  ;;  %v4632_v41 = vmul.f32 %v3828_v56, %v4285_v11 }
  0x43   : > { %v4603_v62 = vmul.f32 %v3827_v6, %v4282_v10  ;;  %v4620_v22 = vmul.f32 %v3827_v6, %v4285_v11  ;;  %v4638_v6 = vmul.f32 %v3569_v49, %v4324_v16  ;;  %v4656_v56 = vmul.f32 %v3570_v25, %v4331_v17 }
  0x44   : > { %6420 = vst [vmem:[#allocation19_spill] sm:$0xff] %v4577_v7  ;;  %6423 = vst [vmem:[#allocation22_spill] sm:$0xff] %v4597_v20  ;;  %v3571_v7 = vld [vmem:[%s6390_s1 + $0x3] ss:$0 sm:$0xff]  ;;  %v3585_v20 = vld [vmem:[%s6390_s1 + $0x21] ss:$0 sm:$0xff] }
  0x45   : > { %6425 = vst [vmem:[#allocation24_spill] sm:$0xff] %v4603_v62  ;;  %6429 = vst [vmem:[#allocation28_spill] sm:$0xff] %v4620_v22  ;;  %v3584_v62 = vld [vmem:[%s6390_s1 + $0x20] ss:$0 sm:$0xff]  ;;  %v3587_v22 = vld [vmem:[%s6390_s1 + $0x23] ss:$0 sm:$0xff]  ;;  %v4647_v19 = vmul.f32 %v3571_v7, %v4324_v16  ;;  %v4676_v55 = vmul.f32 %v4215_v1, %v3585_v20 }
  0x46   : > { %2518 = vrot.lane.b32.xlu1 %v4268_v8, %s4131_s5  ;;  %2516 = vrot.lane.b32.xlu0 %v4271_v9, %s4131_s5  ;;  %6430 = vst [vmem:[#allocation29_spill] sm:$0xff] %v4632_v41  ;;  %6432 = vst [vmem:[#allocation31_spill] sm:$0xff] %v4638_v6  ;;  %v3604_v41 = vld [vmem:[%s6390_s1 + $0x4] ss:$0 sm:$0xff]  ;;  %v4673_v25 = vmul.f32 %v4215_v1, %v3584_v62  ;;  %v4687_v29 = vmul.f32 %v4215_v1, %v3587_v22 }
  0x47   : > { %6434 = vst [vmem:[#allocation33_spill] sm:$0xff] %v4647_v19  ;;  %6437 = vst [vmem:[#allocation36_spill] sm:$0xff] %v4656_v56  ;;  %v3758_v19 = vld [vmem:[%s6390_s1 + $0xb1] ss:$0 sm:$0xff] }
  0x48   : > { %6439 = vst [vmem:[#allocation38_spill] sm:$0xff] %v4673_v25  ;;  %6440 = vst [vmem:[#allocation39_spill] sm:$0xff] %v4676_v55  ;;  %v3621_v55 = vld [vmem:[%s6390_s1 + $0x25] ss:$0 sm:$0xff] }
  0x49   : > { %6442 = vst [vmem:[#allocation41_spill] sm:$0xff] %v4687_v29  ;;  %v3749_v29 = vld [vmem:[%s6390_s1 + $0xd0] ss:$0 sm:$0xff] }
  0x4a   : > { %2596 = vrot.lane.b32.xlu1 %v4268_v8, %s4132_s6  ;;  %2594 = vrot.lane.b32.xlu0 %v4271_v9, %s4132_s6 }
  0x4e   : > { %2676 = vrot.lane.b32.xlu1 %v4282_v10, %s4131_s5  ;;  %2674 = vrot.lane.b32.xlu0 %v4285_v11, %s4131_s5 }
  0x52   : > { %2754 = vrot.lane.b32.xlu1 %v4282_v10, %s4132_s6  ;;  %2752 = vrot.lane.b32.xlu0 %v4285_v11, %s4132_s6  ;;  %v3586_v10 = vld [vmem:[%s6390_s1 + $0x22] ss:$0 sm:$0xff]  ;;  %v4653_v11 = vmul.f32 %v3569_v49, %v4331_v17  ;;  %v4670_v49 = vmul.f32 %v3571_v7, %v4331_v17  ;;  %v4693_v7 = vmul.f32 %v4212_v0, %v3585_v20 }
  0x53   : > { %v4679_v56 = vmul.f32 %v4215_v1, %v3586_v10  ;;  %v4711_v20 = vmul.f32 %v3604_v41, %v4361_v24 }
  0x54   : > { %6436 = vst [vmem:[#allocation35_spill] sm:$0xff] %v4653_v11  ;;  %6438 = vst [vmem:[#allocation37_spill] sm:$0xff] %v4670_v49  ;;  %v3607_v11 = vld [vmem:[%s6390_s1 + $0x7] ss:$0 sm:$0xff]  ;;  %v4696_v49 = vmul.f32 %v4212_v0, %v3586_v10  ;;  %v4714_v10 = vmul.f32 %v3605_v36, %v4361_v24 }
  0x55   : > { %6441 = vst [vmem:[#allocation40_spill] sm:$0xff] %v4679_v56  ;;  %6444 = vst [vmem:[#allocation43_spill] sm:$0xff] %v4693_v7  ;;  %v3620_v56 = vld [vmem:[%s6390_s1 + $0x24] ss:$0 sm:$0xff]  ;;  %v3623_v7 = vld [vmem:[%s6390_s1 + $0x27] ss:$0 sm:$0xff] }
  0x56   : > { %2840 = vrot.lane.b32.xlu1 %v4296_v12, %s4131_s5  ;;  %2838 = vrot.lane.b32.xlu0 %v4299_v13, %s4131_s5  ;;  %6445 = vst [vmem:[#allocation44_spill] sm:$0xff] %v4696_v49  ;;  %6447 = vst [vmem:[#allocation46_spill] sm:$0xff] %v4711_v20 }
  0x57   : > { %6448 = vst [vmem:[#allocation47_spill] sm:$0xff] %v4714_v10  ;;  %v3641_v10 = vld [vmem:[%s6390_s1 + $0x9] ss:$0 sm:$0xff] }
  0x5a   : > { %2918 = vrot.lane.b32.xlu1 %v4296_v12, %s4132_s6  ;;  %2916 = vrot.lane.b32.xlu0 %v4299_v13, %s4132_s6 }
  0x5e   : > { %2998 = vrot.lane.b32.xlu1 %v4310_v14, %s4131_s5  ;;  %2996 = vrot.lane.b32.xlu0 %v4313_v15, %s4131_s5 }
  0x62   : > { %3076 = vrot.lane.b32.xlu1 %v4310_v14, %s4132_s6  ;;  %3074 = vrot.lane.b32.xlu0 %v4313_v15, %s4132_s6 }
  0x66   : > { %369 = vrot.lane.b32.xlu1 %v4324_v16, %s4132_s6  ;;  %291 = vrot.lane.b32.xlu0 %v4324_v16, %s4131_s5  ;;  %v3606_v16 = vld [vmem:[%s6390_s1 + $0x6] ss:$0 sm:$0xff] }
  0x67   : > { %v4717_v49 = vmul.f32 %v3606_v16, %v4361_v24  ;;  %v4732_v20 = vmul.f32 %v3606_v16, %v4352_v21  ;;  %v4752_v16 = vmul.f32 %v4243_v5, %v3621_v55 }
  0x69   : > { %6449 = vst [vmem:[#allocation48_spill] sm:$0xff] %v4717_v49  ;;  %6453 = vst [vmem:[#allocation52_spill] sm:$0xff] %v4732_v20  ;;  %v3640_v49 = vld [vmem:[%s6390_s1 + $0x8] ss:$0 sm:$0xff] }
  0x6a   : > { %371 = vrot.lane.b32.xlu1 %v4331_v17, %s4132_s6  ;;  %293 = vrot.lane.b32.xlu0 %v4331_v17, %s4131_s5  ;;  %v4690_v17 = vmul.f32 %v4212_v0, %v3584_v62  ;;  %v4708_v62 = vmul.f32 %v4212_v0, %v3587_v22  ;;  %v4729_v22 = vmul.f32 %v3605_v36, %v4352_v21 }
  0x6b   : > { %v4746_v36 = vmul.f32 %v3607_v11, %v4352_v21  ;;  %6456 = vst [vmem:[#allocation55_spill] sm:$0xff] %v4752_v16  ;;  %v4770_v16 = vmul.f32 %v4240_v4, %v3620_v56 }
  0x6c   : > { %6443 = vst [vmem:[#allocation42_spill] sm:$0xff] %v4690_v17  ;;  %6446 = vst [vmem:[#allocation45_spill] sm:$0xff] %v4708_v62  ;;  %v4723_v17 = vmul.f32 %v3607_v11, %v4361_v24  ;;  %v4767_v11 = vmul.f32 %v4243_v5, %v3623_v7  ;;  %v3672_v62 = vld [vmem:[%s4209_s30 + $0x48] sm:$0xff] }
  0x6d   : > { %6452 = vst [vmem:[#allocation51_spill] sm:$0xff] %v4729_v22  ;;  %6454 = vst [vmem:[#allocation53_spill] sm:$0xff] %v4746_v36  ;;  %v3643_v22 = vld [vmem:[%s6390_s1 + $0xb] ss:$0 sm:$0xff]  ;;  %v3657_v36 = vld [vmem:[%s6390_s1 + $0x29] ss:$0 sm:$0xff] }
  0x6e   : > { %451 = vrot.lane.b32.xlu1 %v4212_v0, %s4131_s5  ;;  %449 = vrot.lane.b32.xlu0 %v4215_v1, %s4131_s5  ;;  %6450 = vst [vmem:[#allocation49_spill] sm:$0xff] %v4723_v17  ;;  %6458 = vst [vmem:[#allocation57_spill] sm:$0xff] %v4767_v11  ;;  %v3658_v17 = vld [vmem:[%s6390_s1 + $0x2a] ss:$0 sm:$0xff]  ;;  %v3745_v11 = vld [vmem:[%s6390_s1 + $0xc0] ss:$0 sm:$0xff] }
  0x6f   : > { %6459 = vst [vmem:[#allocation58_spill] sm:$0xff] %v4770_v16 }
  0x72   : > { %529 = vrot.lane.b32.xlu1 %v4212_v0, %s4132_s6  ;;  %527 = vrot.lane.b32.xlu0 %v4215_v1, %s4132_s6  ;;  %v3622_v1 = vld [vmem:[%s6390_s1 + $0x26] ss:$0 sm:$0xff]  ;;  %v4726_v0 = vmul.f32 %v3604_v41, %v4352_v21  ;;  %v4749_v41 = vmul.f32 %v4243_v5, %v3620_v56  ;;  %v4789_v56 = vmul.f32 %v3640_v49, %v4477_v57 }
  0x73   : > { %v4755_v20 = vmul.f32 %v4243_v5, %v3622_v1 }
  0x74   : > { %6451 = vst [vmem:[#allocation50_spill] sm:$0xff] %v4726_v0  ;;  %6455 = vst [vmem:[#allocation54_spill] sm:$0xff] %v4749_v41  ;;  %v3656_v0 = vld [vmem:[%s6390_s1 + $0x28] ss:$0 sm:$0xff]  ;;  %v4776_v41 = vmul.f32 %v4240_v4, %v3622_v1 }
  0x75   : > { %6457 = vst [vmem:[#allocation56_spill] sm:$0xff] %v4755_v20  ;;  %v4773_v20 = vmul.f32 %v4240_v4, %v3621_v55  ;;  %6463 = vst [vmem:[#allocation62_spill] sm:$0xff] %v4789_v56  ;;  %v4792_v55 = vmul.f32 %v3641_v10, %v4477_v57  ;;  %v4810_v56 = vmul.f32 %v3641_v10, %v4456_v50 }
  0x76   : > { %617 = vrot.lane.b32.xlu1 %v4352_v21, %s4131_s5  ;;  %615 = vrot.lane.b32.xlu0 %v4361_v24, %s4131_s5  ;;  %6461 = vst [vmem:[#allocation60_spill] sm:$0xff] %v4776_v41  ;;  %v3659_v41 = vld [vmem:[%s6390_s1 + $0x2b] ss:$0 sm:$0xff]  ;;  %v4826_v10 = vmul.f32 %v3643_v22, %v4456_v50 }
  0x77   : > { %6460 = vst [vmem:[#allocation59_spill] sm:$0xff] %v4773_v20  ;;  %6464 = vst [vmem:[#allocation63_spill] sm:$0xff] %v4792_v55  ;;  %v3741_v20 = vld [vmem:[%s6390_s1 + $0x90] ss:$0 sm:$0xff]  ;;  %v4861_v16 = vmul.f32 %v4268_v8, %v3659_v41 }
  0x78   : > { %6468 = vst [vmem:[#allocation67_spill] sm:$0xff] %v4810_v56  ;;  %6470 = vst [vmem:[#allocation69_spill] sm:$0xff] %v4826_v10  ;;  %v4839_v56 = vmul.f32 %v4271_v9, %v3659_v41 }
  0x79   : > { %6478 = vst [vmem:[#allocation77_spill] sm:$0xff] %v4861_v16 }
  0x7a   : > { %695 = vrot.lane.b32.xlu1 %v4352_v21, %s4132_s6  ;;  %693 = vrot.lane.b32.xlu0 %v4361_v24, %s4132_s6  ;;  %v3642_v24 = vld [vmem:[%s6390_s1 + $0xa] ss:$0 sm:$0xff]  ;;  %v3673_v21 = vld [vmem:[%s4209_s30 + $0x50] sm:$0xff]  ;;  %6474 = vst [vmem:[#allocation73_spill] sm:$0xff] %v4839_v56 }
  0x7b   : > { %v4795_v1 = vmul.f32 %v3642_v24, %v4477_v57  ;;  %v4813_v55 = vmul.f32 %v3642_v24, %v4456_v50  ;;  %v4829_v24 = vmul.f32 %v4271_v9, %v3656_v0 }
  0x7d   : > { %6465 = vst [vmem:[#allocation64_spill] sm:$0xff] %v4795_v1  ;;  %6469 = vst [vmem:[#allocation68_spill] sm:$0xff] %v4813_v55  ;;  %v3742_v1 = vld [vmem:[%s6390_s1 + $0x91] ss:$0 sm:$0xff]  ;;  %v4835_v55 = vmul.f32 %v4271_v9, %v3658_v17 }
  0x7e   : > { %775 = vrot.lane.b32.xlu1 %v4240_v4, %s4131_s5  ;;  %773 = vrot.lane.b32.xlu0 %v4243_v5, %s4131_s5  ;;  %6471 = vst [vmem:[#allocation70_spill] sm:$0xff] %v4829_v24 }
  0x7f   : > { %6473 = vst [vmem:[#allocation72_spill] sm:$0xff] %v4835_v55  ;;  %v3861_v55 = vld [vmem:[%s6390_s1 + $0xac] ss:$0 sm:$0xff] }
  0x82   : > { %853 = vrot.lane.b32.xlu1 %v4240_v4, %s4132_s6  ;;  %851 = vrot.lane.b32.xlu0 %v4243_v5, %s4132_s6  ;;  %v4786_v5 = vmul.f32 %v4240_v4, %v3623_v7  ;;  %v4804_v4 = vmul.f32 %v3643_v22, %v4477_v57  ;;  %v4807_v7 = vmul.f32 %v3640_v49, %v4456_v50  ;;  %v3744_v49 = vld [vmem:[%s6390_s1 + $0x93] ss:$0 sm:$0xff] }
  0x83   : > { %v4848_v22 = vmul.f32 %v4268_v8, %v3658_v17 }
  0x84   : > { %6462 = vst [vmem:[#allocation61_spill] sm:$0xff] %v4786_v5  ;;  %6466 = vst [vmem:[#allocation65_spill] sm:$0xff] %v4804_v4  ;;  %v4832_v4 = vmul.f32 %v4271_v9, %v3657_v36 }
  0x85   : > { %6467 = vst [vmem:[#allocation66_spill] sm:$0xff] %v4807_v7  ;;  %v4842_v7 = vmul.f32 %v4268_v8, %v3656_v0  ;;  %6477 = vst [vmem:[#allocation76_spill] sm:$0xff] %v4848_v22 }
  0x86   : > { %941 = vrot.lane.b32.xlu1 %v4456_v50, %s4131_s5  ;;  %939 = vrot.lane.b32.xlu0 %v4477_v57, %s4131_s5  ;;  %6472 = vst [vmem:[#allocation71_spill] sm:$0xff] %v4832_v4  ;;  %v3845_v4 = vld [vmem:[%s6390_s1 + $0x8c] ss:$0 sm:$0xff] }
  0x87   : > { %6475 = vst [vmem:[#allocation74_spill] sm:$0xff] %v4842_v7 }
  0x8a   : > { %1019 = vrot.lane.b32.xlu1 %v4456_v50, %s4132_s6  ;;  %1017 = vrot.lane.b32.xlu0 %v4477_v57, %s4132_s6  ;;  %v3743_v57 = vld [vmem:[%s6390_s1 + $0x92] ss:$0 sm:$0xff]  ;;  %v4845_v50 = vmul.f32 %v4268_v8, %v3657_v36  ;;  %v3846_v36 = vld [vmem:[%s6390_s1 + $0x8d] ss:$0 sm:$0xff] }
  0x8c   : > { %6476 = vst [vmem:[#allocation75_spill] sm:$0xff] %v4845_v50 }
  0x8e   : > { %1099 = vrot.lane.b32.xlu1 %v4268_v8, %s4131_s5  ;;  %1097 = vrot.lane.b32.xlu0 %v4271_v9, %s4131_s5 }
  0x92   : > { %1177 = vrot.lane.b32.xlu1 %v4268_v8, %s4132_s6  ;;  %1175 = vrot.lane.b32.xlu0 %v4271_v9, %s4132_s6  ;;  %v4877_v8 = vmul.f32 %v3845_v4, %v4296_v12 }
  0x94   : > { %6480 = vst [vmem:[#allocation79_spill] sm:$0xff] %v4877_v8 }
  0x96   : > { %1265 = vrot.lane.b32.xlu1 %v3673_v21, %s4131_s5  ;;  %1263 = vrot.lane.b32.xlu0 %v3672_v62, %s4131_s5 }
  0x98   : > { %v1875_v10 = vpop.permute.xlu1 %1874  ;;  %v1873_v7 = vpop.permute.xlu0 %1872 }
  0x99   : > { %v1879_v9 = vmul.f32 %v3741_v20, %v1875_v10  ;;  %v1888_v56 = vmul.f32 %v3742_v1, %v1875_v10  ;;  %v1897_v24 = vmul.f32 %v3743_v57, %v1875_v10  ;;  %v1906_v0 = vmul.f32 %v3744_v49, %v1875_v10 }
  0x9a   : > { %v1878_v17 = vmul.f32 %v3741_v20, %v1873_v7  ;;  %v1887_v22 = vmul.f32 %v3742_v1, %v1873_v7  ;;  %v1896_v50 = vmul.f32 %v3743_v57, %v1873_v7  ;;  %v1905_v5 = vmul.f32 %v3744_v49, %v1873_v7  ;;  %1343 = vrot.lane.b32.xlu1 %v3673_v21, %s4132_s6  ;;  %v3750_v20 = vld [vmem:[%s6390_s1 + $0xd1] ss:$0 sm:$0xff]  ;;  %v3746_v57 = vld [vmem:[%s6390_s1 + $0xc1] ss:$0 sm:$0xff]  ;;  %v3751_v49 = vld [vmem:[%s6390_s1 + $0xd2] ss:$0 sm:$0xff] }
  0x9b   : > { %1341 = vrot.lane.b32.xlu0 %v3672_v62, %s4132_s6  ;;  %v4874_v1 = vmul.f32 %v3845_v4, %v4299_v13  ;;  %v4880_v62 = vmul.f32 %v3861_v55, %v4313_v15  ;;  %v1881_v41 = vadd.f32 %v1879_v9, %v4401_v33  ;;  %v1890_v21 = vadd.f32 %v1888_v56, %v4404_v34  ;;  %v3752_v4 = vld [vmem:[%s6390_s1 + $0xd3] ss:$0 sm:$0xff] }
  0x9c   : > { %v1953_v16 = vpop.permute.xlu1 %1952  ;;  %v4894_v15 = vmul.f32 %v3861_v55, %v4310_v14  ;;  %v4897_v33 = vmul.f32 %v3846_v36, %v4299_v13  ;;  %v1899_v34 = vadd.f32 %v1897_v24, %v4407_v35  ;;  %v1908_v56 = vadd.f32 %v1906_v0, %v4413_v37  ;;  %v3748_v14 = vld [vmem:[%s6390_s1 + $0xc3] ss:$0 sm:$0xff]  ;;  %v1951_v55 = vpop.permute.xlu0 %1950 }
  0x9d   : > { %6479 = vst [vmem:[#allocation78_spill] sm:$0xff] %v4874_v1  ;;  %6481 = vst [vmem:[#allocation80_spill] sm:$0xff] %v4880_v62  ;;  %v1880_v9 = vadd.f32 %v1878_v17, %v4416_v38  ;;  %v1889_v62 = vadd.f32 %v1887_v22, %v4419_v39  ;;  %v3747_v1 = vld [vmem:[%s6390_s1 + $0xc2] ss:$0 sm:$0xff]  ;;  %v1898_v36 = vadd.f32 %v1896_v50, %v4422_v40 }
  0x9e   : > { %6482 = vst [vmem:[#allocation81_spill] sm:$0xff] %v4894_v15  ;;  %6483 = vst [vmem:[#allocation82_spill] sm:$0xff] %v4897_v33  ;;  %v1907_v33 = vadd.f32 %v1905_v5, %v4436_v44  ;;  %v1957_v35 = vmul.f32 %v3749_v29, %v1953_v16  ;;  %v1966_v24 = vmul.f32 %v3750_v20, %v1953_v16  ;;  %1423 = vrot.lane.b32.xlu1 %v4296_v12, %s4131_s5 }
  0x9f   : > { %v1915_v37 = vmul.f32 %v3745_v11, %v1875_v10  ;;  %v1924_v38 = vmul.f32 %v3746_v57, %v1875_v10  ;;  %v1975_v39 = vmul.f32 %v3751_v49, %v1953_v16  ;;  %v1984_v22 = vmul.f32 %v3752_v4, %v1953_v16  ;;  %1421 = vrot.lane.b32.xlu0 %v4299_v13, %s4131_s5  ;;  %v3759_v16 = vld [vmem:[%s6390_s1 + $0xb2] ss:$0 sm:$0xff] }
  0xa0   : > { %v1933_v0 = vmul.f32 %v3747_v1, %v1875_v10  ;;  %v1942_v17 = vmul.f32 %v3748_v14, %v1875_v10  ;;  %v1914_v15 = vmul.f32 %v3745_v11, %v1873_v7  ;;  %v1923_v8 = vmul.f32 %v3746_v57, %v1873_v7  ;;  %v2033_v25 = vpop.permute.xlu1 %2032  ;;  %v3760_v11 = vld [vmem:[%s6390_s1 + $0xb3] ss:$0 sm:$0xff]  ;;  %v2031_v10 = vpop.permute.xlu0 %2030 }
  0xa1   : > { %v1959_v40 = vadd.f32 %v1957_v35, %v1915_v37  ;;  %v1968_v50 = vadd.f32 %v1966_v24, %v1924_v38  ;;  %v4915_v44 = vmul.f32 %v3747_v1, %v1873_v7  ;;  %v4917_v5 = vmul.f32 %v3748_v14, %v1873_v7 }
  0xa2   : > { %v4929_v57 = vadd.f32 %v4439_v45, %v1881_v41  ;;  %v2004_v1 = vadd.f32 %v4442_v46, %v1890_v21  ;;  %v2013_v7 = vadd.f32 %v4445_v47, %v1899_v34  ;;  %v2022_v14 = vadd.f32 %v4459_v51, %v1908_v56  ;;  %1501 = vrot.lane.b32.xlu1 %v4296_v12, %s4132_s6 }
  0xa3   : > { %v1977_v35 = vadd.f32 %v1975_v39, %v1933_v0  ;;  %v1986_v24 = vadd.f32 %v1984_v22, %v1942_v17  ;;  %v1956_v37 = vmul.f32 %v3749_v29, %v1951_v55  ;;  %v1965_v38 = vmul.f32 %v3750_v20, %v1951_v55  ;;  %1499 = vrot.lane.b32.xlu0 %v4299_v13, %s4132_s6  ;;  %v3761_v29 = vld [vmem:[%s6390_s1 + $0xe0] ss:$0 sm:$0xff]  ;;  %v3762_v13 = vld [vmem:[%s6390_s1 + $0xe1] ss:$0 sm:$0xff]  ;;  %v3763_v20 = vld [vmem:[%s6390_s1 + $0xe2] ss:$0 sm:$0xff] }
  0xa4   : > { %v1974_v6 = vmul.f32 %v3751_v49, %v1951_v55  ;;  %v2046_v42 = vmul.f32 %v3758_v19, %v2033_v25  ;;  %v2055_v45 = vmul.f32 %v3759_v16, %v2033_v25  ;;  %v2064_v41 = vmul.f32 %v3760_v11, %v2033_v25  ;;  %v2111_v48 = vpop.permute.xlu1 %2110  ;;  %v2109_v21 = vpop.permute.xlu0 %2108  ;;  %v3766_v22 = vld [vmem:[%s6390_s1 + $0xf1] ss:$0 sm:$0xff]  ;;  %s3893_s6 = sld [smem:[#allocation2 + $0x1]] }
  0xa5   : > { %v1994_v46 = vadd.f32 %v4462_v52, %v1880_v9  ;;  %v2003_v47 = vadd.f32 %v4465_v53, %v1889_v62  ;;  %v2012_v51 = vadd.f32 %v4468_v54, %v1898_v36  ;;  %v2021_v12 = vadd.f32 %v4480_v58, %v1907_v33  ;;  %v3764_v54 = vld [vmem:[%s6390_s1 + $0xe3] ss:$0 sm:$0xff]  ;;  %v3757_v33 = vld [vmem:[%s6390_s1 + $0xb0] ss:$0 sm:$0xff] }
  0xa6   : > { %v1983_v52 = vmul.f32 %v3752_v4, %v1951_v55  ;;  %v2048_v49 = vadd.f32 %v2046_v42, %v2004_v1  ;;  %v2057_v53 = vadd.f32 %v2055_v45, %v2013_v7  ;;  %v2066_v62 = vadd.f32 %v2064_v41, %v2022_v14  ;;  %v3765_v36 = vld [vmem:[%s6390_s1 + $0xf0] ss:$0 sm:$0xff] }
  0xa7   : > { %v1958_v58 = vadd.f32 %v1956_v37, %v1914_v15  ;;  %v2045_v34 = vmul.f32 %v3758_v19, %v2031_v10  ;;  %v2054_v56 = vmul.f32 %v3759_v16, %v2031_v10  ;;  %v2063_v9 = vmul.f32 %v3760_v11, %v2031_v10  ;;  %v3767_v15 = vld [vmem:[%s6390_s1 + $0xf2] ss:$0 sm:$0xff]  ;;  %v3768_v19 = vld [vmem:[%s6390_s1 + $0xf3] ss:$0 sm:$0xff] }
  0xa8   : > { %v1967_v4 = vadd.f32 %v1965_v38, %v1923_v8  ;;  %v2073_v42 = vmul.f32 %v3761_v29, %v2033_v25  ;;  %v2082_v55 = vmul.f32 %v3762_v13, %v2033_v25  ;;  %v2091_v39 = vmul.f32 %v3763_v20, %v2033_v25  ;;  %v4969_v0 = vpop.permute.xlu1 %2196  ;;  %v4971_v1 = vpop.permute.xlu0 %2194 }
  0xa9   : > { %v2047_v17 = vadd.f32 %v2045_v34, %v2003_v47  ;;  %v2056_v16 = vadd.f32 %v2054_v56, %v2012_v51  ;;  %v2065_v8 = vadd.f32 %v2063_v9, %v2021_v12  ;;  %v2100_v11 = vmul.f32 %v3764_v54, %v2033_v25 }
  0xaa   : > { %v2037_v7 = vmul.f32 %v3757_v33, %v2033_v25  ;;  %v2036_v14 = vmul.f32 %v3757_v33, %v2031_v10  ;;  %v2075_v37 = vadd.f32 %v2073_v42, %v1959_v40  ;;  %v2084_v38 = vadd.f32 %v2082_v55, %v1968_v50 }
  0xab   : > { %v2115_v45 = vmul.f32 %v3765_v36, %v2111_v48  ;;  %v2124_v41 = vmul.f32 %v3766_v22, %v2111_v48  ;;  %v2133_v43 = vmul.f32 %v3767_v15, %v2111_v48  ;;  %v2142_v32 = vmul.f32 %v3768_v19, %v2111_v48 }
  0xac   : > { %v2072_v31 = vmul.f32 %v3761_v29, %v2031_v10  ;;  %v2081_v30 = vmul.f32 %v3762_v13, %v2031_v10  ;;  %v2090_v28 = vmul.f32 %v3763_v20, %v2031_v10  ;;  %v2099_v27 = vmul.f32 %v3764_v54, %v2031_v10  ;;  %v4973_v26 = vpop.permute.xlu1 %2274  ;;  %v4977_v25 = vpop.permute.xlu0 %2272 }
  0xad   : > { %v1976_v47 = vadd.f32 %v1974_v6, %v4915_v44  ;;  %v1985_v51 = vadd.f32 %v1983_v52, %v4917_v5  ;;  %v2093_v12 = vadd.f32 %v2091_v39, %v1977_v35  ;;  %v2102_v34 = vadd.f32 %v2100_v11, %v1986_v24  ;;  %v3778_v6 = vld [vmem:[%s6390_s1 + $0x95] ss:$0 sm:$0xff]  ;;  %v3779_v44 = vld [vmem:[%s6390_s1 + $0x96] ss:$0 sm:$0xff]  ;;  %v3780_v5 = vld [vmem:[%s6390_s1 + $0x97] ss:$0 sm:$0xff] }
  0xae   : > { %v2039_v40 = vadd.f32 %v2037_v7, %v4929_v57  ;;  %v2038_v50 = vadd.f32 %v2036_v14, %v1994_v46  ;;  %v4980_v33 = vadd.f32 %v2115_v45, %v2075_v37  ;;  %v4982_v48 = vadd.f32 %v2124_v41, %v2084_v38  ;;  %v3788_v37 = vld [vmem:[%s6390_s1 + $0xd7] ss:$0 sm:$0xff] }
  0xaf   : > { %v4984_v29 = vadd.f32 %v2133_v43, %v2093_v12  ;;  %v4986_v10 = vadd.f32 %v2142_v32, %v2102_v34  ;;  %v2074_v13 = vadd.f32 %v2072_v31, %v1958_v58  ;;  %v2114_v20 = vmul.f32 %v3765_v36, %v2109_v21  ;;  %v3777_v31 = vld [vmem:[%s6390_s1 + $0x94] ss:$0 sm:$0xff] }
  0xb0   : > { %v2083_v57 = vadd.f32 %v2081_v30, %v1967_v4  ;;  %v2092_v35 = vadd.f32 %v2090_v28, %v1976_v47  ;;  %v2101_v43 = vadd.f32 %v2099_v27, %v1985_v51  ;;  %v2123_v24 = vmul.f32 %v3766_v22, %v2109_v21  ;;  %v5000_v32 = vpop.permute.xlu1 %2354  ;;  %v5004_v56 = vpop.permute.xlu0 %2352 }
  0xb1   : > { %v2132_v46 = vmul.f32 %v3767_v15, %v2109_v21  ;;  %v2141_v52 = vmul.f32 %v3768_v19, %v2109_v21  ;;  %v2168_v54 = vadd.f32 %v4486_v60, %v2048_v49  ;;  %v2177_v58 = vadd.f32 %v4489_v61, %v2057_v53  ;;  %v3781_v60 = vld [vmem:[%s6390_s1 + $0xc4] ss:$0 sm:$0xff]  ;;  %v3782_v61 = vld [vmem:[%s6390_s1 + $0xc5] ss:$0 sm:$0xff] }
  0xb2   : > { %v2186_v9 = vadd.f32 %v4495_v63, %v2066_v62  ;;  %v2210_v28 = vmul.f32 %v3778_v6, %v4969_v0  ;;  %v2219_v27 = vmul.f32 %v3779_v44, %v4969_v0  ;;  %v2228_v30 = vmul.f32 %v3780_v5, %v4969_v0  ;;  %v3783_v63 = vld [vmem:[%s6390_s1 + $0xc6] ss:$0 sm:$0xff] }
  0xb3   : > { %v2116_v36 = vadd.f32 %v2114_v20, %v2074_v13  ;;  %v2159_v4 = vadd.f32 %v4483_v59, %v2039_v40  ;;  %v2201_v42 = vmul.f32 %v3777_v31, %v4969_v0  ;;  %v2167_v21 = vadd.f32 %v4501_v3, %v2047_v17  ;;  %v3784_v3 = vld [vmem:[%s6390_s1 + $0xc7] ss:$0 sm:$0xff]  ;;  %v3785_v17 = vld [vmem:[%s6390_s1 + $0xd4] ss:$0 sm:$0xff] }
  0xb4   : > { %v2212_v49 = vadd.f32 %v2210_v28, %v2168_v54  ;;  %v2221_v53 = vadd.f32 %v2219_v27, %v2177_v58  ;;  %v2230_v62 = vadd.f32 %v2228_v30, %v2186_v9  ;;  %v2176_v59 = vadd.f32 %v4504_v18, %v2056_v16  ;;  %v5026_v55 = vpop.permute.xlu1 %2432  ;;  %v5035_v11 = vpop.permute.xlu0 %2430 }
  0xb5   : > { %v2185_v39 = vadd.f32 %v4518_v23, %v2065_v8  ;;  %v2209_v22 = vmul.f32 %v3778_v6, %v4971_v1  ;;  %v2218_v15 = vmul.f32 %v3779_v44, %v4971_v1  ;;  %v2227_v19 = vmul.f32 %v3780_v5, %v4971_v1  ;;  %v3786_v23 = vld [vmem:[%s6390_s1 + $0xd5] ss:$0 sm:$0xff]  ;;  %v3787_v8 = vld [vmem:[%s6390_s1 + $0xd6] ss:$0 sm:$0xff] }
  0xb6   : > { %v2125_v18 = vadd.f32 %v2123_v24, %v2083_v57  ;;  %v2237_v16 = vmul.f32 %v3781_v60, %v4969_v0  ;;  %v2246_v7 = vmul.f32 %v3782_v61, %v4969_v0  ;;  %v2255_v14 = vmul.f32 %v3783_v63, %v4969_v0 }
  0xb7   : > { %v2211_v38 = vadd.f32 %v2209_v22, %v2167_v21  ;;  %v2220_v45 = vadd.f32 %v2218_v15, %v2176_v59  ;;  %v2229_v41 = vadd.f32 %v2227_v19, %v2185_v39  ;;  %v2264_v47 = vmul.f32 %v3784_v3, %v4969_v0  ;;  %v3793_v19 = vld [vmem:[%s6390_s1 + $0xb4] ss:$0 sm:$0xff] }
  0xb8   : > { %v2134_v51 = vadd.f32 %v2132_v46, %v2092_v35  ;;  %v2203_v12 = vadd.f32 %v2201_v42, %v2159_v4  ;;  %v2158_v34 = vadd.f32 %v4498_v2, %v2038_v50  ;;  %v2200_v40 = vmul.f32 %v3777_v31, %v4971_v1  ;;  %v5056_v5 = vpop.permute.xlu0 %2516  ;;  %v5062_v50 = vpop.permute.xlu1 %2518  ;;  %v6485_v42 = vld [vmem:[#allocation7_spill] sm:$0xff] }
  0xb9   : > { %v2279_v13 = vmul.f32 %v3785_v17, %v4973_v26  ;;  %v2288_v20 = vmul.f32 %v3786_v23, %v4973_v26  ;;  %v2297_v6 = vmul.f32 %v3787_v8, %v4973_v26  ;;  %v2306_v44 = vmul.f32 %v3788_v37, %v4973_v26 }
  0xba   : > { %v2239_v57 = vadd.f32 %v2237_v16, %v4980_v33  ;;  %v2248_v0 = vadd.f32 %v2246_v7, %v4982_v48  ;;  %v2236_v35 = vmul.f32 %v3781_v60, %v4971_v1  ;;  %v2245_v2 = vmul.f32 %v3782_v61, %v4971_v1  ;;  %v6487_v61 = vld [vmem:[#allocation9_spill] sm:$0xff] }
  0xbb   : > { %v2257_v24 = vadd.f32 %v2255_v14, %v4984_v29  ;;  %v2266_v31 = vadd.f32 %v2264_v47, %v4986_v10  ;;  %v2254_v46 = vmul.f32 %v3783_v63, %v4971_v1  ;;  %v2263_v26 = vmul.f32 %v3784_v3, %v4971_v1  ;;  %v3794_v29 = vld [vmem:[%s6390_s1 + $0xb5] ss:$0 sm:$0xff]  ;;  %v3795_v10 = vld [vmem:[%s6390_s1 + $0xb6] ss:$0 sm:$0xff]  ;;  %v3796_v1 = vld [vmem:[%s6390_s1 + $0xb7] ss:$0 sm:$0xff] }
  0xbc   : > { %v2143_v54 = vadd.f32 %v2141_v52, %v2101_v43  ;;  %v2202_v58 = vadd.f32 %v2200_v40, %v2158_v34  ;;  %v2281_v9 = vadd.f32 %v2279_v13, %v2239_v57  ;;  %v2290_v33 = vadd.f32 %v2288_v20, %v2248_v0  ;;  %v5081_v43 = vpop.permute.xlu0 %2594  ;;  %v6484_v52 = vld [vmem:[#allocation6_spill] sm:$0xff]  ;;  %v5096_v16 = vpop.permute.xlu1 %2596  ;;  %v6489_v14 = vld [vmem:[#allocation11_spill] sm:$0xff]  ;;  %v6490_v47 = vld [vmem:[#allocation12_spill] sm:$0xff] }
  0xbd   : > { %v5068_v28 = vadd.f32 %v2297_v6, %v2257_v24  ;;  %v5070_v48 = vadd.f32 %v2306_v44, %v2266_v31  ;;  %v2238_v27 = vadd.f32 %v2236_v35, %v2116_v36  ;;  %v2247_v30 = vadd.f32 %v2245_v2, %v2125_v18  ;;  %v6486_v36 = vld [vmem:[#allocation8_spill] sm:$0xff]  ;;  %v3798_v34 = vld [vmem:[%s6390_s1 + $0xe5] ss:$0 sm:$0xff]  ;;  %v3799_v57 = vld [vmem:[%s6390_s1 + $0xe6] ss:$0 sm:$0xff] }
  0xbe   : > { %v2317_v4 = vadd.f32 %v6484_v52, %v2203_v12  ;;  %v2326_v21 = vadd.f32 %v6485_v42, %v2212_v49  ;;  %v2335_v60 = vadd.f32 %v6486_v36, %v2221_v53  ;;  %v2344_v63 = vadd.f32 %v6487_v61, %v2230_v62  ;;  %v6488_v62 = vld [vmem:[#allocation10_spill] sm:$0xff]  ;;  %v3797_v12 = vld [vmem:[%s6390_s1 + $0xe4] ss:$0 sm:$0xff]  ;;  %v3801_v31 = vld [vmem:[%s6390_s1 + $0xf4] ss:$0 sm:$0xff] }
  0xbf   : > { %v2256_v59 = vadd.f32 %v2254_v46, %v2134_v51  ;;  %v2265_v3 = vadd.f32 %v2263_v26, %v2143_v54  ;;  %v2278_v39 = vmul.f32 %v3785_v17, %v4977_v25  ;;  %v2287_v22 = vmul.f32 %v3786_v23, %v4977_v25  ;;  %v6491_v51 = vld [vmem:[#allocation13_spill] sm:$0xff]  ;;  %v3802_v46 = vld [vmem:[%s6390_s1 + $0xf5] ss:$0 sm:$0xff]  ;;  %v3804_v42 = vld [vmem:[%s6390_s1 + $0xf7] ss:$0 sm:$0xff] }
  0xc0   : > { %v2296_v15 = vmul.f32 %v3787_v8, %v4977_v25  ;;  %v2368_v18 = vmul.f32 %v3794_v29, %v5000_v32  ;;  %v2377_v49 = vmul.f32 %v3795_v10, %v5000_v32  ;;  %v2386_v53 = vmul.f32 %v3796_v1, %v5000_v32 }
  0xc1   : > { %v2316_v7 = vadd.f32 %v6488_v62, %v2202_v58  ;;  %v2325_v17 = vadd.f32 %v6489_v14, %v2211_v38  ;;  %v2334_v23 = vadd.f32 %v6490_v47, %v2220_v45  ;;  %v2343_v8 = vadd.f32 %v6491_v51, %v2229_v41 }
  0xc2   : > { %v2305_v40 = vmul.f32 %v3788_v37, %v4977_v25  ;;  %v5109_v13 = vadd.f32 %v2368_v18, %v2326_v21  ;;  %v5111_v20 = vadd.f32 %v2377_v49, %v2335_v60  ;;  %v5113_v6 = vadd.f32 %v2386_v53, %v2344_v63  ;;  %v3800_v25 = vld [vmem:[%s6390_s1 + $0xe7] ss:$0 sm:$0xff]  ;;  %v5125_v37 = vpop.permute.xlu0 %2674  ;;  %v5150_v21 = vpop.permute.xlu1 %2676 }
  0xc3   : > { %v2359_v38 = vmul.f32 %v3793_v19, %v5000_v32  ;;  %v2367_v45 = vmul.f32 %v3794_v29, %v5004_v56  ;;  %v2376_v41 = vmul.f32 %v3795_v10, %v5004_v56  ;;  %v2385_v44 = vmul.f32 %v3796_v1, %v5004_v56  ;;  %6495 = vst [vmem:[#allocation9_spill] sm:$0xff] %v5125_v37 }
  0xc4   : > { %6492 = vst [vmem:[#allocation6_spill] sm:$0xff] %v5109_v13  ;;  %6493 = vst [vmem:[#allocation7_spill] sm:$0xff] %v5111_v20  ;;  %v2280_v0 = vadd.f32 %v2278_v39, %v2238_v27  ;;  %v2289_v35 = vadd.f32 %v2287_v22, %v2247_v30  ;;  %v2395_v2 = vmul.f32 %v3797_v12, %v5000_v32  ;;  %v3803_v30 = vld [vmem:[%s6390_s1 + $0xf6] ss:$0 sm:$0xff] }
  0xc5   : > { %6494 = vst [vmem:[#allocation8_spill] sm:$0xff] %v5113_v6  ;;  %v2404_v24 = vmul.f32 %v3798_v34, %v5000_v32  ;;  %v2358_v26 = vmul.f32 %v3793_v19, %v5004_v56  ;;  %v5136_v54 = vadd.f32 %v2367_v45, %v2325_v17  ;;  %v5138_v58 = vadd.f32 %v2376_v41, %v2334_v23  ;;  %v3814_v17 = vld [vmem:[%s6390_s1 + $0x99] ss:$0 sm:$0xff]  ;;  %v3816_v45 = vld [vmem:[%s6390_s1 + $0x9b] ss:$0 sm:$0xff]  ;;  %v6500_v41 = vld [vmem:[#allocation14_spill] sm:$0xff] }
  0xc6   : > { %v5140_v27 = vadd.f32 %v2385_v44, %v2343_v8  ;;  %v2298_v29 = vadd.f32 %v2296_v15, %v2256_v59  ;;  %v2307_v10 = vadd.f32 %v2305_v40, %v2265_v3  ;;  %v2413_v1 = vmul.f32 %v3799_v57, %v5000_v32  ;;  %6499 = vst [vmem:[#allocation13_spill] sm:$0xff] %v5150_v21  ;;  %v5165_v18 = vpop.permute.xlu0 %2752  ;;  %v3817_v8 = vld [vmem:[%s6390_s1 + $0xc8] ss:$0 sm:$0xff] }
  0xc7   : > { %6496 = vst [vmem:[#allocation10_spill] sm:$0xff] %v5136_v54  ;;  %6497 = vst [vmem:[#allocation11_spill] sm:$0xff] %v5138_v58  ;;  %v2422_v52 = vmul.f32 %v3800_v25, %v5000_v32  ;;  %v2361_v36 = vadd.f32 %v2359_v38, %v2317_v4  ;;  %v2397_v60 = vadd.f32 %v2395_v2, %v2281_v9  ;;  %v3813_v9 = vld [vmem:[%s6390_s1 + $0x98] ss:$0 sm:$0xff] }
  0xc8   : > { %6498 = vst [vmem:[#allocation12_spill] sm:$0xff] %v5140_v27  ;;  %v2437_v61 = vmul.f32 %v3801_v31, %v5026_v55  ;;  %v2446_v63 = vmul.f32 %v3802_v46, %v5026_v55  ;;  %v2406_v39 = vadd.f32 %v2404_v24, %v2290_v33  ;;  %v2455_v59 = vmul.f32 %v3803_v30, %v5026_v55 }
  0xc9   : > { %v2394_v3 = vmul.f32 %v3797_v12, %v5004_v56  ;;  %v2403_v22 = vmul.f32 %v3798_v34, %v5004_v56  ;;  %v5157_v32 = vadd.f32 %v2358_v26, %v2316_v7  ;;  %v2464_v15 = vmul.f32 %v3804_v42, %v5026_v55  ;;  %v5186_v12 = vpop.permute.xlu1 %2754 }
  0xca   : > { %v2412_v19 = vmul.f32 %v3799_v57, %v5004_v56  ;;  %v2421_v4 = vmul.f32 %v3800_v25, %v5004_v56  ;;  %v2415_v33 = vadd.f32 %v2413_v1, %v5068_v28  ;;  %v2424_v49 = vadd.f32 %v2422_v52, %v5070_v48  ;;  %v3815_v28 = vld [vmem:[%s6390_s1 + $0x9a] ss:$0 sm:$0xff]  ;;  %v3819_v57 = vld [vmem:[%s6390_s1 + $0xca] ss:$0 sm:$0xff]  ;;  %v3820_v25 = vld [vmem:[%s6390_s1 + $0xcb] ss:$0 sm:$0xff] }
  0xcb   : > { %v2439_v53 = vadd.f32 %v2437_v61, %v2397_v60  ;;  %v2448_v62 = vadd.f32 %v2446_v63, %v2406_v39  ;;  %v2436_v7 = vmul.f32 %v3801_v31, %v5035_v11  ;;  %v2445_v55 = vmul.f32 %v3802_v46, %v5035_v11  ;;  %v3821_v31 = vld [vmem:[%s6390_s1 + $0xd8] ss:$0 sm:$0xff]  ;;  %v3822_v46 = vld [vmem:[%s6390_s1 + $0xd9] ss:$0 sm:$0xff]  ;;  %v3823_v1 = vld [vmem:[%s6390_s1 + $0xda] ss:$0 sm:$0xff] }
  0xcc   : > { %v2454_v14 = vmul.f32 %v3803_v30, %v5035_v11  ;;  %v2463_v56 = vmul.f32 %v3804_v42, %v5035_v11  ;;  %v2457_v47 = vadd.f32 %v2455_v59, %v2415_v33  ;;  %v2396_v48 = vadd.f32 %v2394_v3, %v2280_v0  ;;  %v3818_v11 = vld [vmem:[%s6390_s1 + $0xc9] ss:$0 sm:$0xff]  ;;  %v3824_v52 = vld [vmem:[%s6390_s1 + $0xdb] ss:$0 sm:$0xff]  ;;  %v5218_v42 = vpop.permute.xlu0 %2838 }
  0xcd   : > { %v2405_v23 = vadd.f32 %v2403_v22, %v2289_v35  ;;  %v2523_v51 = vmul.f32 %v3813_v9, %v5062_v50  ;;  %v2466_v34 = vadd.f32 %v2464_v15, %v2424_v49  ;;  %v2414_v40 = vadd.f32 %v2412_v19, %v2298_v29  ;;  %6503 = vst [vmem:[#allocation84_spill] sm:$0xff] %v5218_v42 }
  0xce   : > { %v2423_v38 = vadd.f32 %v2421_v4, %v2307_v10  ;;  %v2481_v44 = vadd.f32 %v6500_v41, %v2361_v36  ;;  %v2438_v0 = vadd.f32 %v2436_v7, %v2396_v48  ;;  %v5199_v2 = vmul.f32 %v3814_v17, %v5062_v50  ;;  %v3838_v41 = vld [vmem:[%s6390_s1 + $0xf9] ss:$0 sm:$0xff] }
  0xcf   : > { %v2447_v35 = vadd.f32 %v2445_v55, %v2405_v23  ;;  %v5202_v24 = vmul.f32 %v3815_v28, %v5062_v50  ;;  %v2456_v26 = vadd.f32 %v2454_v14, %v2414_v40  ;;  %v2559_v29 = vmul.f32 %v3817_v8, %v5062_v50 }
  0xd0   : > { %6501 = vst [vmem:[#allocation14_spill] sm:$0xff] %v5199_v2  ;;  %v2465_v30 = vadd.f32 %v2463_v56, %v2423_v38  ;;  %v2568_v10 = vmul.f32 %v3818_v11, %v5062_v50  ;;  %v5220_v36 = vadd.f32 %v2523_v51, %v2481_v44  ;;  %v5223_v60 = vmul.f32 %v3816_v45, %v5062_v50 }
  0xd1   : > { %6502 = vst [vmem:[#allocation83_spill] sm:$0xff] %v5202_v24  ;;  %v2577_v61 = vmul.f32 %v3819_v57, %v5062_v50  ;;  %v2586_v63 = vmul.f32 %v3820_v25, %v5062_v50  ;;  %v5228_v39 = vmul.f32 %v3813_v9, %v5056_v5  ;;  %v5231_v59 = vmul.f32 %v3814_v17, %v5056_v5  ;;  %v5241_v50 = vpop.permute.xlu1 %2840 }
  0xd2   : > { %6504 = vst [vmem:[#allocation85_spill] sm:$0xff] %v5223_v60  ;;  %v2601_v3 = vmul.f32 %v3821_v31, %v5096_v16  ;;  %v2610_v22 = vmul.f32 %v3822_v46, %v5096_v16  ;;  %v5236_v15 = vmul.f32 %v3815_v28, %v5056_v5  ;;  %v2619_v19 = vmul.f32 %v3823_v1, %v5096_v16 }
  0xd3   : > { %6505 = vst [vmem:[#allocation86_spill] sm:$0xff] %v5228_v39  ;;  %6506 = vst [vmem:[#allocation87_spill] sm:$0xff] %v5231_v59  ;;  %v2628_v4 = vmul.f32 %v3824_v52, %v5096_v16  ;;  %v2558_v33 = vmul.f32 %v3817_v8, %v5056_v5  ;;  %v2561_v9 = vadd.f32 %v2559_v29, %v2439_v53  ;;  %v3833_v16 = vld [vmem:[%s6390_s1 + $0xe8] ss:$0 sm:$0xff]  ;;  %v3834_v53 = vld [vmem:[%s6390_s1 + $0xe9] ss:$0 sm:$0xff]  ;;  %v5263_v8 = vpop.permute.xlu0 %2916 }
  0xd4   : > { %6507 = vst [vmem:[#allocation88_spill] sm:$0xff] %v5236_v15  ;;  %6508 = vst [vmem:[#allocation89_spill] sm:$0xff] %v5241_v50  ;;  %v2570_v49 = vadd.f32 %v2568_v10, %v2448_v62  ;;  %v2567_v7 = vmul.f32 %v3818_v11, %v5056_v5  ;;  %v2576_v55 = vmul.f32 %v3819_v57, %v5056_v5  ;;  %v6512_v59 = vld [vmem:[#allocation30_spill] sm:$0xff] }
  0xd5   : > { %v5246_v14 = vmul.f32 %v3816_v45, %v5056_v5  ;;  %v2579_v56 = vadd.f32 %v2577_v61, %v2457_v47  ;;  %v2588_v17 = vadd.f32 %v2586_v63, %v2466_v34  ;;  %v2585_v28 = vmul.f32 %v3820_v25, %v5056_v5  ;;  %v3835_v47 = vld [vmem:[%s6390_s1 + $0xea] ss:$0 sm:$0xff]  ;;  %v3836_v5 = vld [vmem:[%s6390_s1 + $0xeb] ss:$0 sm:$0xff]  ;;  %v3837_v45 = vld [vmem:[%s6390_s1 + $0xf8] ss:$0 sm:$0xff] }
  0xd6   : > { %v2603_v62 = vadd.f32 %v2601_v3, %v2561_v9  ;;  %v2612_v48 = vadd.f32 %v2610_v22, %v2570_v49  ;;  %v2600_v23 = vmul.f32 %v3821_v31, %v5081_v43  ;;  %v2609_v51 = vmul.f32 %v3822_v46, %v5081_v43  ;;  %v3840_v46 = vld [vmem:[%s6390_s1 + $0xfb] ss:$0 sm:$0xff] }
  0xd7   : > { %6509 = vst [vmem:[#allocation90_spill] sm:$0xff] %v5246_v14  ;;  %v2621_v11 = vadd.f32 %v2619_v19, %v2579_v56  ;;  %v2630_v34 = vadd.f32 %v2628_v4, %v2588_v17  ;;  %v2560_v40 = vadd.f32 %v2558_v33, %v2438_v0  ;;  %v2618_v38 = vmul.f32 %v3823_v1, %v5081_v43  ;;  %v3839_v0 = vld [vmem:[%s6390_s1 + $0xfa] ss:$0 sm:$0xff] }
  0xd8   : > { %v2569_v44 = vadd.f32 %v2567_v7, %v2447_v35  ;;  %v2578_v57 = vadd.f32 %v2576_v55, %v2456_v26  ;;  %v2717_v25 = vmul.f32 %v3833_v16, %v5150_v21  ;;  %v2726_v31 = vmul.f32 %v3834_v53, %v5150_v21  ;;  %v2919_v26 = vpop.permute.xlu1 %2918  ;;  %v5293_v7 = vld [vmem:[%s6390_s1 + $0xcc] ss:$0 sm:$0xff]  ;;  %v5295_v55 = vpop.permute.xlu0 %2996 }
  0xd9   : > { %v2587_v29 = vadd.f32 %v2585_v28, %v2465_v30  ;;  %v2627_v10 = vmul.f32 %v3824_v52, %v5081_v43  ;;  %v2735_v1 = vmul.f32 %v3835_v47, %v5150_v21  ;;  %v2744_v35 = vmul.f32 %v3836_v5, %v5150_v21  ;;  %v6514_v21 = vld [vmem:[#allocation32_spill] sm:$0xff] }
  0xda   : > { %v2602_v61 = vadd.f32 %v2600_v23, %v2560_v40  ;;  %v2611_v63 = vadd.f32 %v2609_v51, %v2569_v44  ;;  %v2759_v3 = vmul.f32 %v3837_v45, %v5186_v12  ;;  %v2768_v22 = vmul.f32 %v3838_v41, %v5186_v12  ;;  %v3855_v51 = vld [vmem:[%s6390_s1 + $0xce] ss:$0 sm:$0xff] }
  0xdb   : > { %v2620_v19 = vadd.f32 %v2618_v38, %v2578_v57  ;;  %v2777_v4 = vmul.f32 %v3839_v0, %v5186_v12  ;;  %v2786_v33 = vmul.f32 %v3840_v46, %v5186_v12  ;;  %v2716_v30 = vmul.f32 %v3833_v16, %v5125_v37  ;;  %v3854_v16 = vld [vmem:[%s6390_s1 + $0xcd] ss:$0 sm:$0xff]  ;;  %v3857_v38 = vld [vmem:[%s6390_s1 + $0xdc] ss:$0 sm:$0xff] }
  0xdc   : > { %v2719_v9 = vadd.f32 %v2717_v25, %v2603_v62  ;;  %v2728_v43 = vadd.f32 %v2726_v31, %v2612_v48  ;;  %v2725_v52 = vmul.f32 %v3834_v53, %v5125_v37  ;;  %v2734_v49 = vmul.f32 %v3835_v47, %v5125_v37  ;;  %v3856_v47 = vld [vmem:[%s6390_s1 + $0xcf] ss:$0 sm:$0xff] }
  0xdd   : > { %v2629_v56 = vadd.f32 %v2627_v10, %v2587_v29  ;;  %v2737_v17 = vadd.f32 %v2735_v1, %v2621_v11  ;;  %v2746_v28 = vadd.f32 %v2744_v35, %v2630_v34  ;;  %v2743_v12 = vmul.f32 %v3836_v5, %v5125_v37  ;;  %v3859_v29 = vld [vmem:[%s6390_s1 + $0xde] ss:$0 sm:$0xff] }
  0xde   : > { %v2761_v62 = vadd.f32 %v2759_v3, %v2719_v9  ;;  %v2770_v53 = vadd.f32 %v2768_v22, %v2728_v43  ;;  %v2758_v48 = vmul.f32 %v3837_v45, %v5165_v18  ;;  %v2767_v23 = vmul.f32 %v3838_v41, %v5165_v18  ;;  %v3858_v45 = vld [vmem:[%s6390_s1 + $0xdd] ss:$0 sm:$0xff]  ;;  %v5317_v41 = vpop.permute.xlu1 %2998 }
  0xdf   : > { %v2779_v11 = vadd.f32 %v2777_v4, %v2737_v17  ;;  %v2788_v5 = vadd.f32 %v2786_v33, %v2746_v28  ;;  %v2718_v34 = vadd.f32 %v2716_v30, %v2602_v61  ;;  %v2881_v40 = vmul.f32 %v5293_v7, %v5241_v50  ;;  %v5330_v4 = vpop.permute.xlu0 %3074 }
  0xe0   : > { %v2727_v44 = vadd.f32 %v2725_v52, %v2611_v63  ;;  %v2736_v57 = vadd.f32 %v2734_v49, %v2620_v19  ;;  %v2776_v25 = vmul.f32 %v3839_v0, %v5165_v18  ;;  %v2890_v31 = vmul.f32 %v3854_v16, %v5241_v50  ;;  %v3860_v63 = vld [vmem:[%s6390_s1 + $0xdf] ss:$0 sm:$0xff] }
  0xe1   : > { %v2745_v10 = vadd.f32 %v2743_v12, %v2629_v56  ;;  %v2785_v1 = vmul.f32 %v3840_v46, %v5165_v18  ;;  %v2899_v35 = vmul.f32 %v3855_v51, %v5241_v50  ;;  %v2908_v61 = vmul.f32 %v3856_v47, %v5241_v50  ;;  %v6513_v50 = vld [vmem:[#allocation31_spill] sm:$0xff] }
  0xe2   : > { %v2760_v3 = vadd.f32 %v2758_v48, %v2718_v34  ;;  %v2769_v22 = vadd.f32 %v2767_v23, %v2727_v44  ;;  %v2923_v0 = vmul.f32 %v3857_v38, %v2919_v26  ;;  %v2932_v19 = vmul.f32 %v3858_v45, %v2919_v26  ;;  %v3874_v48 = vld [vmem:[%s6390_s1 + $0xfd] ss:$0 sm:$0xff]  ;;  %v3572_v44 = vld [vmem:[%s6390_s1 + $0x10] ss:$0 sm:$0xff] }
  0xe3   : > { %v2883_v33 = vadd.f32 %v2881_v40, %v2761_v62  ;;  %v2941_v30 = vmul.f32 %v3859_v29, %v2919_v26  ;;  %v2889_v9 = vmul.f32 %v3854_v16, %v5218_v42  ;;  %v2898_v18 = vmul.f32 %v3855_v51, %v5218_v42  ;;  %v3875_v62 = vld [vmem:[%s6390_s1 + $0xfe] ss:$0 sm:$0xff]  ;;  %v3077_v16 = vpop.permute.xlu1 %3076 }
  0xe4   : > { %v2778_v46 = vadd.f32 %v2776_v25, %v2736_v57  ;;  %v2892_v43 = vadd.f32 %v2890_v31, %v2770_v53  ;;  %v2950_v52 = vmul.f32 %v3860_v63, %v2919_v26  ;;  %v2907_v49 = vmul.f32 %v3856_v47, %v5218_v42  ;;  %v3876_v47 = vld [vmem:[%s6390_s1 + $0xff] ss:$0 sm:$0xff] }
  0xe5   : > { %v2787_v56 = vadd.f32 %v2785_v1, %v2745_v10  ;;  %v2901_v17 = vadd.f32 %v2899_v35, %v2779_v11  ;;  %v2910_v28 = vadd.f32 %v2908_v61, %v2788_v5  ;;  %v2925_v12 = vadd.f32 %v2923_v0, %v2883_v33  ;;  %v3574_v10 = vld [vmem:[%s6390_s1 + $0x12] ss:$0 sm:$0xff]  ;;  %v3869_v1 = vld [vmem:[%s6390_s1 + $0xec] ss:$0 sm:$0xff]  ;;  %v3873_v0 = vld [vmem:[%s6390_s1 + $0xfc] ss:$0 sm:$0xff] }
  0xe6   : > { %v5341_v23 = vadd.f32 %v2932_v19, %v2892_v43  ;;  %v2931_v53 = vmul.f32 %v3858_v45, %v5263_v8  ;;  %v2940_v26 = vmul.f32 %v3859_v29, %v5263_v8  ;;  %v2949_v51 = vmul.f32 %v3860_v63, %v5263_v8  ;;  %v3573_v45 = vld [vmem:[%s6390_s1 + $0x11] ss:$0 sm:$0xff]  ;;  %v3576_v19 = vld [vmem:[%s6390_s1 + $0x40] ss:$0 sm:$0xff]  ;;  %v3578_v43 = vld [vmem:[%s6390_s1 + $0x42] ss:$0 sm:$0xff] }
  0xe7   : > { %v5349_v11 = vadd.f32 %v2941_v30, %v2901_v17  ;;  %v2891_v5 = vadd.f32 %v2889_v9, %v2769_v22  ;;  %v2900_v34 = vadd.f32 %v2898_v18, %v2778_v46  ;;  %v2922_v40 = vmul.f32 %v3857_v38, %v5263_v8  ;;  %v5370_v8 = vld [vmem:[%s6390_s1 + $0x13] ss:$0 sm:$0xff]  ;;  %v292_v38 = vpop.permute.xlu0 %291  ;;  %v3577_v46 = vld [vmem:[%s6390_s1 + $0x41] ss:$0 sm:$0xff]  ;;  %v370_v60 = vpop.permute.xlu1 %369 }
  0xe8   : > { %v5358_v57 = vadd.f32 %v2950_v52, %v2910_v28  ;;  %v2909_v25 = vadd.f32 %v2907_v49, %v2787_v56  ;;  %v5360_v31 = vmul.f32 %v3874_v48, %v3077_v16  ;;  %v5362_v29 = vmul.f32 %v3875_v62, %v3077_v16  ;;  %v5402_v52 = vld [vmem:[%s6390_s1 + $0x43] ss:$0 sm:$0xff] }
  0xe9   : > { %v2933_v35 = vadd.f32 %v2931_v53, %v2891_v5  ;;  %v5375_v61 = vadd.f32 %v2940_v26, %v2900_v34  ;;  %v5377_v63 = vmul.f32 %v3876_v47, %v3077_v16  ;;  %v3089_v22 = vmul.f32 %v3874_v48, %v5330_v4  ;;  %v3581_v48 = vld [vmem:[%s6390_s1 + $0x51] ss:$0 sm:$0xff]  ;;  %v3583_v34 = vld [vmem:[%s6390_s1 + $0x53] ss:$0 sm:$0xff] }
  0xea   : > { %6510 = vst [vmem:[#allocation91_spill] sm:$0xff] %v5358_v57  ;;  %v5386_v33 = vadd.f32 %v2949_v51, %v2909_v25  ;;  %v5389_v30 = vmul.f32 %v3875_v62, %v5330_v4  ;;  %v297_v9 = vmul.f32 %v3572_v44, %v292_v38  ;;  %v2880_v18 = vmul.f32 %v5293_v7, %v5218_v42  ;;  %v3580_v7 = vld [vmem:[%s6390_s1 + $0x50] ss:$0 sm:$0xff]  ;;  %v3582_v62 = vld [vmem:[%s6390_s1 + $0x52] ss:$0 sm:$0xff] }
  0xeb   : > { %6511 = vst [vmem:[#allocation92_spill] sm:$0xff] %v5377_v63  ;;  %v306_v49 = vmul.f32 %v3573_v45, %v292_v38  ;;  %v315_v56 = vmul.f32 %v3574_v10, %v292_v38  ;;  %v324_v17 = vmul.f32 %v5370_v8, %v292_v38  ;;  %v3039_v28 = vmul.f32 %v3869_v1, %v5317_v41  ;;  %v3870_v25 = vld [vmem:[%s6390_s1 + $0xed] ss:$0 sm:$0xff]  ;;  %v294_v15 = vpop.permute.xlu0 %293 }
  0xec   : > { %v2882_v53 = vadd.f32 %v2880_v18, %v2760_v3  ;;  %v3038_v26 = vmul.f32 %v3869_v1, %v5295_v55  ;;  %v3080_v51 = vmul.f32 %v3873_v0, %v5330_v4  ;;  %v3081_v5 = vmul.f32 %v3873_v0, %v3077_v16 }
  0xed   : > { %v333_v6 = vmul.f32 %v3576_v19, %v292_v38  ;;  %v342_v14 = vmul.f32 %v3577_v46, %v292_v38  ;;  %v351_v27 = vmul.f32 %v3578_v43, %v292_v38  ;;  %v360_v24 = vmul.f32 %v5402_v52, %v292_v38 }
  0xee   : > { %v2924_v3 = vadd.f32 %v2922_v40, %v2882_v53  ;;  %v375_v18 = vmul.f32 %v3580_v7, %v370_v60  ;;  %v384_v1 = vmul.f32 %v3581_v48, %v370_v60  ;;  %v393_v20 = vmul.f32 %v3582_v62, %v370_v60  ;;  %v6515_v40 = vld [vmem:[#allocation33_spill] sm:$0xff] }
  0xef   : > { %v402_v16 = vmul.f32 %v3583_v34, %v370_v60  ;;  %v3041_v0 = vadd.f32 %v3039_v28, %v2925_v12  ;;  %v3047_v58 = vmul.f32 %v3870_v25, %v5295_v55  ;;  %v298_v2 = vmul.f32 %v3572_v44, %v294_v15 }
  0xf0   : > { %v5426_v13 = vmul.f32 %v3876_v47, %v5330_v4  ;;  %v299_v54 = vadd.f32 %v297_v9, %v6512_v59  ;;  %v308_v63 = vadd.f32 %v306_v49, %v6513_v50  ;;  %v3040_v42 = vadd.f32 %v3038_v26, %v2924_v3  ;;  %v6516_v59 = vld [vmem:[#allocation34_spill] sm:$0xff]  ;;  %v6519_v9 = vld [vmem:[#allocation5_spill] sm:$0xff]  ;;  %v6522_v3 = vld [vmem:[#allocation40_spill] sm:$0xff] }
  0xf1   : > { %v317_v38 = vadd.f32 %v315_v56, %v6514_v21  ;;  %v326_v53 = vadd.f32 %v324_v17, %v6515_v40  ;;  %v3083_v37 = vadd.f32 %v3081_v5, %v3041_v0  ;;  %v307_v39 = vmul.f32 %v3573_v45, %v294_v15  ;;  %v3871_v21 = vld [vmem:[%s6390_s1 + $0xee] ss:$0 sm:$0xff]  ;;  %v6521_v5 = vld [vmem:[#allocation39_spill] sm:$0xff] }
  0xf2   : > { %v3082_v57 = vadd.f32 %v3080_v51, %v3040_v42  ;;  %v5432_v60 = vadd.f32 %v375_v18, %v333_v6  ;;  %v3049_v12 = vadd.f32 %v3047_v58, %v2933_v35  ;;  %v316_v28 = vmul.f32 %v3574_v10, %v294_v15  ;;  %v6517_v42 = vld [vmem:[#allocation35_spill] sm:$0xff]  ;;  %v6520_v26 = vld [vmem:[#allocation38_spill] sm:$0xff] }
  0xf3   : > { %v5434_v44 = vadd.f32 %v384_v1, %v342_v14  ;;  %v5436_v4 = vadd.f32 %v393_v20, %v351_v27  ;;  %v5438_v47 = vadd.f32 %v402_v16, %v360_v24  ;;  %v300_v50 = vadd.f32 %v298_v2, %v6516_v59  ;;  %v6518_v20 = vld [vmem:[#allocation36_spill] sm:$0xff]  ;;  %v372_v24 = vpop.permute.xlu1 %371 }
  0xf4   : > { %3981 = vmatprep.mubr.msk.f32.mxu1 %vm1536_vm0, %v3082_v57  ;;  %v3091_v45 = vadd.f32 %v3089_v22, %v3049_v12  ;;  %v309_v6 = vadd.f32 %v307_v39, %v6517_v42  ;;  %v325_v58 = vmul.f32 %v5370_v8, %v294_v15  ;;  %v334_v10 = vmul.f32 %v3576_v19, %v294_v15  ;;  %v3588_v8 = vld [vmem:[%s6390_s1 + $0x30] ss:$0 sm:$0xff]  ;;  %v3590_v19 = vld [vmem:[%s6390_s1 + $0x32] ss:$0 sm:$0xff]  ;;  %v6525_v42 = vld [vmem:[#allocation42_spill] sm:$0xff] }
  0xf5   : > { %3982 = vmatmul.mubr.msk.f32.vlgmr.msra.gmra.mrb[0].mxu1 %vm1536_vm0, %v3083_v37  ;;  %v318_v27 = vadd.f32 %v316_v28, %v6518_v20  ;;  %v343_v14 = vmul.f32 %v3577_v46, %v294_v15  ;;  %v352_v35 = vmul.f32 %v3578_v43, %v294_v15  ;;  %v3048_v2 = vmul.f32 %v3870_v25, %v5317_v41  ;;  %v3589_v37 = vld [vmem:[%s6390_s1 + $0x31] ss:$0 sm:$0xff]  ;;  %v3592_v28 = vld [vmem:[%s6390_s1 + $0x60] ss:$0 sm:$0xff] }
  0xf6   : > { %4024 = vmatpush3.bf16.msra.mxu1 %v6519_v9  ;;  %3984 = vmatprep.mubr.msk.f32.mxu1 %vm1536_vm0, %v3091_v45  ;;  %v376_v57 = vmul.f32 %v3580_v7, %v372_v24  ;;  %v385_v22 = vmul.f32 %v3581_v48, %v372_v24  ;;  %v3056_v39 = vmul.f32 %v3871_v21, %v5295_v55  ;;  %v3591_v7 = vld [vmem:[%s6390_s1 + $0x33] ss:$0 sm:$0xff]  ;;  %v450_v48 = vpop.permute.xlu0 %449 }
  0xf7   : > { %v361_v46 = vmul.f32 %v5402_v52, %v294_v15  ;;  %v394_v43 = vmul.f32 %v3582_v62, %v372_v24  ;;  %v403_v49 = vmul.f32 %v3583_v34, %v372_v24  ;;  %v3050_v56 = vadd.f32 %v3048_v2, %v5341_v23  ;;  %v6523_v34 = vld [vmem:[#allocation37_spill] sm:$0xff]  ;;  %v452_v24 = vpop.permute.xlu1 %451 }
  0xf8   : > { %v3058_v17 = vadd.f32 %v3056_v39, %v5375_v61  ;;  %v413_v51 = vadd.f32 %v6520_v26, %v299_v54  ;;  %v422_v25 = vadd.f32 %v6521_v5, %v308_v63  ;;  %v431_v18 = vadd.f32 %v6522_v3, %v317_v38  ;;  %v5481_v54 = vld [vmem:[%s6390_s1 + $0xef] ss:$0 sm:$0xff]  ;;  %v6528_v39 = vld [vmem:[#allocation45_spill] sm:$0xff] }
  0xf9   : > { %v3092_v1 = vadd.f32 %v5360_v31, %v3050_v56  ;;  %v455_v15 = vmul.f32 %v3588_v8, %v450_v48  ;;  %v464_v52 = vmul.f32 %v3589_v37, %v450_v48  ;;  %v473_v62 = vmul.f32 %v3590_v19, %v450_v48  ;;  %v6524_v31 = vld [vmem:[#allocation41_spill] sm:$0xff] }
  0xfa   : > { %v327_v23 = vadd.f32 %v325_v58, %v6523_v34  ;;  %v5473_v16 = vadd.f32 %v376_v57, %v334_v10  ;;  %v5475_v61 = vadd.f32 %v385_v22, %v343_v14  ;;  %v3100_v0 = vadd.f32 %v5389_v30, %v3058_v17  ;;  %v3593_v30 = vld [vmem:[%s6390_s1 + $0x61] ss:$0 sm:$0xff]  ;;  %v6526_v10 = vld [vmem:[#allocation43_spill] sm:$0xff]  ;;  %v6527_v14 = vld [vmem:[#allocation44_spill] sm:$0xff] }
  0xfb   : > { %v5483_v63 = vadd.f32 %v394_v43, %v352_v35  ;;  %v5485_v38 = vadd.f32 %v403_v49, %v361_v46  ;;  %3985 = vmatmul.mubr.msk.f32.gmra.mrb[2].mxu1 %vm1536_vm0, %v3092_v1  ;;  %v440_v40 = vadd.f32 %v6524_v31, %v326_v53  ;;  %v482_v12 = vmul.f32 %v3591_v7, %v450_v48  ;;  %v3594_v22 = vld [vmem:[%s6390_s1 + $0x62] ss:$0 sm:$0xff]  ;;  %v3599_v1 = vld [vmem:[%s6390_s1 + $0x73] ss:$0 sm:$0xff] }
  0xfc   : > { %3987 = vmatprep.mubr.msk.f32.mxu1 %vm1536_vm0, %v3100_v0  ;;  %v5496_v59 = vadd.f32 %v455_v15, %v413_v51  ;;  %v5498_v45 = vadd.f32 %v464_v52, %v422_v25  ;;  %v414_v58 = vadd.f32 %v6525_v42, %v300_v50  ;;  %v423_v20 = vadd.f32 %v6526_v10, %v309_v6  ;;  %v3595_v50 = vld [vmem:[%s6390_s1 + $0x63] ss:$0 sm:$0xff]  ;;  %v528_v15 = vpop.permute.xlu0 %527 }
  0xfd   : > { %v5502_v53 = vadd.f32 %v473_v62, %v431_v18  ;;  %v432_v35 = vadd.f32 %v6527_v14, %v318_v27  ;;  %v3057_v2 = vmul.f32 %v3871_v21, %v5317_v41  ;;  %v3065_v57 = vmul.f32 %v5481_v54, %v5295_v55  ;;  %v3596_v21 = vld [vmem:[%s6390_s1 + $0x70] ss:$0 sm:$0xff]  ;;  %v3597_v27 = vld [vmem:[%s6390_s1 + $0x71] ss:$0 sm:$0xff]  ;;  %v3598_v18 = vld [vmem:[%s6390_s1 + $0x72] ss:$0 sm:$0xff] }
  0xfe   : > { %v441_v6 = vadd.f32 %v6528_v39, %v327_v23  ;;  %v456_v46 = vmul.f32 %v3588_v8, %v452_v24  ;;  %v491_v43 = vmul.f32 %v3592_v28, %v450_v48  ;;  %v500_v49 = vmul.f32 %v3593_v30, %v450_v48  ;;  %v6530_v39 = vld [vmem:[#allocation22_spill] sm:$0xff] }
  0xff   : > { %v465_v56 = vmul.f32 %v3589_v37, %v452_v24  ;;  %v474_v17 = vmul.f32 %v3590_v19, %v452_v24  ;;  %v483_v26 = vmul.f32 %v3591_v7, %v452_v24  ;;  %v3059_v51 = vadd.f32 %v3057_v2, %v5349_v11  ;;  %v6529_v2 = vld [vmem:[#allocation18_spill] sm:$0xff] }
 0x100   : > { %v3067_v5 = vadd.f32 %v3065_v57, %v5386_v33  ;;  %v493_v25 = vadd.f32 %v491_v43, %v5432_v60  ;;  %v509_v8 = vmul.f32 %v3594_v22, %v450_v48  ;;  %v518_v3 = vmul.f32 %v3595_v50, %v450_v48 }
 0x101   : > { %v3101_v37 = vadd.f32 %v5362_v29, %v3059_v51  ;;  %v502_v19 = vadd.f32 %v500_v49, %v5434_v44  ;;  %v533_v11 = vmul.f32 %v3596_v21, %v528_v15  ;;  %v542_v7 = vmul.f32 %v3597_v27, %v528_v15  ;;  %v6532_v49 = vld [vmem:[#allocation86_spill] sm:$0xff]  ;;  %v6535_v51 = vld [vmem:[#allocation84_spill] sm:$0xff] }
 0x102   : > { %v484_v33 = vadd.f32 %v482_v12, %v440_v40  ;;  %v3109_v60 = vadd.f32 %v5426_v13, %v3067_v5  ;;  %v511_v48 = vadd.f32 %v509_v8, %v5436_v4  ;;  %v520_v52 = vadd.f32 %v518_v3, %v5438_v47  ;;  %v530_v47 = vpop.permute.xlu1 %529  ;;  %v6536_v8 = vld [vmem:[#allocation92_spill] sm:$0xff] }
 0x103   : > { %3988 = vmatmul.mubr.msk.f32.gmra.mrb[4].mxu1 %vm1536_vm0, %v3101_v37  ;;  %v551_v62 = vmul.f32 %v3598_v18, %v528_v15  ;;  %v560_v34 = vmul.f32 %v3599_v1, %v528_v15  ;;  %v492_v23 = vmul.f32 %v3592_v28, %v452_v24  ;;  %v501_v0 = vmul.f32 %v3593_v30, %v452_v24 }
 0x104   : > { %v458_v31 = vadd.f32 %v456_v46, %v414_v58  ;;  %v467_v42 = vadd.f32 %v465_v56, %v423_v20  ;;  %3990 = vmatprep.mubr.msk.f32.mxu1 %vm1536_vm0, %v3109_v60  ;;  %v510_v29 = vmul.f32 %v3594_v22, %v452_v24  ;;  %v519_v44 = vmul.f32 %v3595_v50, %v452_v24  ;;  %v3829_v20 = vld [vmem:[%s6390_s1 + $0xb8] ss:$0 sm:$0xff]  ;;  %v6531_v46 = vld [vmem:[#allocation91_spill] sm:$0xff]  ;;  %v6534_v56 = vld [vmem:[#allocation13_spill] sm:$0xff] }
 0x105   : > { %v5537_v10 = vadd.f32 %v474_v17, %v432_v35  ;;  %v5539_v40 = vadd.f32 %v483_v26, %v441_v6  ;;  %v5541_v13 = vadd.f32 %v533_v11, %v493_v25  ;;  %v5543_v4 = vadd.f32 %v542_v7, %v502_v19  ;;  %v3608_v17 = vld [vmem:[%s6390_s1 + $0x14] ss:$0 sm:$0xff]  ;;  %v3610_v25 = vld [vmem:[%s6390_s1 + $0x16] ss:$0 sm:$0xff]  ;;  %v6538_v19 = vld [vmem:[#allocation89_spill] sm:$0xff]  ;;  %v616_v7 = vpop.permute.xlu0 %615 }
 0x106   : > { %v494_v12 = vadd.f32 %v492_v23, %v5473_v16  ;;  %v503_v28 = vadd.f32 %v501_v0, %v5475_v61  ;;  %v534_v30 = vmul.f32 %v3596_v21, %v530_v47  ;;  %v543_v58 = vmul.f32 %v3597_v27, %v530_v47  ;;  %v3849_v16 = vld [vmem:[%s6390_s1 + $0x9c] ss:$0 sm:$0xff] }
 0x107   : > { %v5550_v24 = vadd.f32 %v551_v62, %v511_v48  ;;  %v5552_v14 = vadd.f32 %v560_v34, %v520_v52  ;;  %v3066_v35 = vmul.f32 %v5481_v54, %v5317_v41  ;;  %v2480_v57 = vadd.f32 %v6529_v2, %v5157_v32  ;;  %v6533_v54 = vld [vmem:[#allocation9_spill] sm:$0xff]  ;;  %v3865_v60 = vld [vmem:[%s6390_s1 + $0xbc] ss:$0 sm:$0xff]  ;;  %v6539_v48 = vld [vmem:[#allocation46_spill] sm:$0xff] }
 0x108   : > { %v512_v61 = vadd.f32 %v510_v29, %v5483_v63  ;;  %v521_v22 = vadd.f32 %v519_v44, %v5485_v38  ;;  %v552_v50 = vmul.f32 %v3598_v18, %v530_v47  ;;  %v2639_v6 = vadd.f32 %v6530_v39, %v5220_v36  ;;  %v3609_v36 = vld [vmem:[%s6390_s1 + $0x15] ss:$0 sm:$0xff]  ;;  %v6537_v18 = vld [vmem:[#allocation26_spill] sm:$0xff]  ;;  %v6541_v23 = vld [vmem:[#allocation48_spill] sm:$0xff] }
 0x109   : > { %v3068_v43 = vadd.f32 %v3066_v35, %v6531_v46  ;;  %v2524_v21 = vadd.f32 %v6532_v49, %v2480_v57  ;;  %v2680_v27 = vmul.f32 %v3829_v20, %v6533_v54  ;;  %v2681_v32 = vmul.f32 %v3829_v20, %v6534_v56  ;;  %v6540_v62 = vld [vmem:[#allocation47_spill] sm:$0xff]  ;;  %v6543_v35 = vld [vmem:[#allocation49_spill] sm:$0xff]  ;;  %v6544_v57 = vld [vmem:[#allocation78_spill] sm:$0xff] }
 0x10a   : > { %v5572_v26 = vadd.f32 %v534_v30, %v494_v12  ;;  %v5574_v63 = vadd.f32 %v543_v58, %v503_v28  ;;  %v561_v38 = vmul.f32 %v3599_v1, %v530_v47  ;;  %v2844_v5 = vmul.f32 %v3849_v16, %v6535_v51  ;;  %v3611_v1 = vld [vmem:[%s6390_s1 + $0x17] ss:$0 sm:$0xff]  ;;  %v6545_v46 = vld [vmem:[#allocation50_spill] sm:$0xff] }
 0x10b   : > { %v3110_v3 = vadd.f32 %v6536_v8, %v3068_v43  ;;  %v2638_v15 = vadd.f32 %v6537_v18, %v2524_v21  ;;  %v2683_v37 = vadd.f32 %v2681_v32, %v2639_v6  ;;  %v2845_v11 = vmul.f32 %v3849_v16, %v6538_v19  ;;  %v6542_v47 = vld [vmem:[#allocation79_spill] sm:$0xff]  ;;  %v618_v6 = vpop.permute.xlu1 %617  ;;  %v3612_v18 = vld [vmem:[%s6390_s1 + $0x44] ss:$0 sm:$0xff] }
 0x10c   : > { %v579_v52 = vadd.f32 %v6539_v48, %v5496_v59  ;;  %v588_v34 = vadd.f32 %v6540_v62, %v5498_v45  ;;  %v597_v0 = vadd.f32 %v6541_v23, %v5502_v53  ;;  %v621_v29 = vmul.f32 %v3608_v17, %v616_v7  ;;  %v6546_v49 = vld [vmem:[#allocation51_spill] sm:$0xff]  ;;  %v6551_v48 = vld [vmem:[#allocation81_spill] sm:$0xff] }
 0x10d   : > { %3991 = vmatmul.mubr.msk.f32.gmra.mrb[6].mxu1 %vm1536_vm0, %v3110_v3  ;;  %v2682_v44 = vadd.f32 %v2680_v27, %v2638_v15  ;;  %v2803_v12 = vadd.f32 %v6542_v47, %v2683_v37  ;;  %v630_v28 = vmul.f32 %v3609_v36, %v616_v7  ;;  %v639_v30 = vmul.f32 %v3610_v25, %v616_v7  ;;  %v3613_v15 = vld [vmem:[%s6390_s1 + $0x45] ss:$0 sm:$0xff]  ;;  %v3614_v37 = vld [vmem:[%s6390_s1 + $0x46] ss:$0 sm:$0xff]  ;;  %v3615_v23 = vld [vmem:[%s6390_s1 + $0x47] ss:$0 sm:$0xff] }
 0x10e   : > { %v5600_v58 = vadd.f32 %v552_v50, %v512_v61  ;;  %v5602_v20 = vadd.f32 %v561_v38, %v521_v22  ;;  %v606_v59 = vadd.f32 %v6543_v35, %v484_v33  ;;  %v648_v2 = vmul.f32 %v3611_v1, %v616_v7  ;;  %v5619_v38 = vld [vmem:[%s6390_s1 + $0xb9] ss:$0 sm:$0xff] }
 0x10f   : > { %v2802_v45 = vadd.f32 %v6544_v57, %v2682_v44  ;;  %v2847_v16 = vadd.f32 %v2845_v11, %v2803_v12  ;;  %v3002_v53 = vmul.f32 %v3865_v60, %v5295_v55  ;;  %v3003_v39 = vmul.f32 %v3865_v60, %v5317_v41  ;;  %v6550_v11 = vld [vmem:[#allocation80_spill] sm:$0xff]  ;;  %v6553_v44 = vld [vmem:[#allocation87_spill] sm:$0xff] }
 0x110   : > { %v580_v43 = vadd.f32 %v6545_v46, %v458_v31  ;;  %v589_v21 = vadd.f32 %v6546_v49, %v467_v42  ;;  %v622_v27 = vmul.f32 %v3608_v17, %v618_v6  ;;  %v631_v61 = vmul.f32 %v3609_v36, %v618_v6  ;;  %v6547_v31 = vld [vmem:[#allocation52_spill] sm:$0xff]  ;;  %v6548_v17 = vld [vmem:[#allocation10_spill] sm:$0xff]  ;;  %v6549_v36 = vld [vmem:[#allocation19_spill] sm:$0xff] }
 0x111   : > { %v2846_v50 = vadd.f32 %v2844_v5, %v2802_v45  ;;  %v5610_v22 = vadd.f32 %v621_v29, %v579_v52  ;;  %v5612_v32 = vadd.f32 %v630_v28, %v588_v34  ;;  %v5614_v33 = vadd.f32 %v639_v30, %v597_v0  ;;  %v5643_v34 = vld [vmem:[%s6390_s1 + $0x9d] ss:$0 sm:$0xff]  ;;  %v3616_v28 = vld [vmem:[%s6390_s1 + $0x54] ss:$0 sm:$0xff]  ;;  %v3617_v57 = vld [vmem:[%s6390_s1 + $0x55] ss:$0 sm:$0xff] }
 0x112   : > { %v5621_v8 = vadd.f32 %v648_v2, %v606_v59  ;;  %v598_v3 = vadd.f32 %v6547_v31, %v5537_v10  ;;  %v640_v42 = vmul.f32 %v3610_v25, %v618_v6  ;;  %v2489_v5 = vadd.f32 %v6549_v36, %v6548_v17  ;;  %v6552_v25 = vld [vmem:[#allocation53_spill] sm:$0xff]  ;;  %v6554_v46 = vld [vmem:[#allocation27_spill] sm:$0xff] }
 0x113   : > { %v2960_v60 = vadd.f32 %v6550_v11, %v2846_v50  ;;  %v2961_v10 = vadd.f32 %v6551_v48, %v2847_v16  ;;  %v607_v52 = vadd.f32 %v6552_v25, %v5539_v40  ;;  %v649_v62 = vmul.f32 %v3611_v1, %v618_v6  ;;  %v5658_v40 = vld [vmem:[%s6390_s1 + $0xad] ss:$0 sm:$0xff]  ;;  %v5663_v1 = vld [vmem:[%s6390_s1 + $0xbd] ss:$0 sm:$0xff] }
 0x114   : > { %v5648_v0 = vadd.f32 %v622_v27, %v580_v43  ;;  %v5650_v29 = vadd.f32 %v631_v61, %v589_v21  ;;  %v2533_v47 = vadd.f32 %v6553_v44, %v2489_v5  ;;  %v2689_v12 = vmul.f32 %v5619_v38, %v6533_v54  ;;  %v3618_v21 = vld [vmem:[%s6390_s1 + $0x56] ss:$0 sm:$0xff]  ;;  %v694_v27 = vpop.permute.xlu0 %693  ;;  %v5681_v61 = vld [vmem:[%s4209_s30 + $0x4a] sm:$0xff] }
 0x115   : > { %v3004_v30 = vadd.f32 %v3002_v53, %v2960_v60  ;;  %v657_v35 = vmul.f32 %v3612_v18, %v616_v7  ;;  %v666_v59 = vmul.f32 %v3613_v15, %v616_v7  ;;  %v675_v2 = vmul.f32 %v3614_v37, %v616_v7 }
 0x116   : > { %v3005_v45 = vadd.f32 %v3003_v39, %v2961_v10  ;;  %v5671_v16 = vadd.f32 %v640_v42, %v598_v3  ;;  %v2647_v43 = vadd.f32 %v6554_v46, %v2533_v47  ;;  %v684_v49 = vmul.f32 %v3615_v23, %v616_v7  ;;  %v3619_v42 = vld [vmem:[%s6390_s1 + $0x57] ss:$0 sm:$0xff]  ;;  %v6555_v10 = vld [vmem:[#allocation82_spill] sm:$0xff] }
 0x117   : > { %3997 = vmatprep.mubr.msk.f32.mxu1 %vm1536_vm0, %v3004_v30  ;;  %v2853_v53 = vmul.f32 %v5643_v34, %v6535_v51  ;;  %v2967_v39 = vmul.f32 %v5681_v61, %v5658_v40  ;;  %v3011_v50 = vmul.f32 %v5663_v1, %v5295_v55  ;;  %v699_v31 = vmul.f32 %v3616_v28, %v694_v27  ;;  %v696_v30 = vpop.permute.xlu1 %695 }
 0x118   : > { %3998 = vmatmul.mubr.msk.f32.vlgmr.msra.gmra.mrb[0].mxu1 %vm1536_vm0, %v3005_v45  ;;  %v2691_v7 = vadd.f32 %v2689_v12, %v2647_v43  ;;  %v659_v3 = vadd.f32 %v657_v35, %v5541_v13  ;;  %v708_v17 = vmul.f32 %v3617_v57, %v694_v27  ;;  %v658_v36 = vmul.f32 %v3612_v18, %v618_v6 }
 0x119   : > { %v668_v5 = vadd.f32 %v666_v59, %v5543_v4  ;;  %v677_v11 = vadd.f32 %v675_v2, %v5550_v24  ;;  %v717_v60 = vmul.f32 %v3618_v21, %v694_v27  ;;  %v667_v48 = vmul.f32 %v3613_v15, %v618_v6 }
 0x11a   : > { %v2811_v25 = vadd.f32 %v6555_v10, %v2691_v7  ;;  %v686_v44 = vadd.f32 %v684_v49, %v5552_v14  ;;  %v676_v47 = vmul.f32 %v3614_v37, %v618_v6  ;;  %v685_v12 = vmul.f32 %v3615_v23, %v618_v6  ;;  %v6556_v14 = vld [vmem:[#allocation6_spill] sm:$0xff]  ;;  %v6557_v37 = vld [vmem:[#allocation15_spill] sm:$0xff] }
 0x11b   : > { %v726_v13 = vmul.f32 %v3619_v42, %v694_v27  ;;  %v660_v35 = vadd.f32 %v658_v36, %v5572_v26  ;;  %v669_v45 = vadd.f32 %v667_v48, %v5574_v63  ;;  %v700_v46 = vmul.f32 %v3616_v28, %v696_v30  ;;  %v6562_v36 = vld [vmem:[#allocation23_spill] sm:$0xff] }
 0x11c   : > { %v2855_v18 = vadd.f32 %v2853_v53, %v2811_v25  ;;  %v678_v4 = vadd.f32 %v676_v47, %v5600_v58  ;;  %v709_v59 = vmul.f32 %v3617_v57, %v696_v30  ;;  %v718_v24 = vmul.f32 %v3618_v21, %v696_v30  ;;  %v5720_v57 = vld [vmem:[%s6390_s1 + $0xba] ss:$0 sm:$0xff]  ;;  %v3625_v25 = vld [vmem:[%s6390_s1 + $0x35] ss:$0 sm:$0xff] }
 0x11d   : > { %v5699_v2 = vadd.f32 %v649_v62, %v607_v52  ;;  %v687_v15 = vadd.f32 %v685_v12, %v5602_v20  ;;  %v727_v43 = vmul.f32 %v3619_v42, %v696_v30  ;;  %v2490_v6 = vadd.f32 %v6557_v37, %v6556_v14  ;;  %v6558_v52 = vld [vmem:[#allocation14_spill] sm:$0xff]  ;;  %v5736_v42 = vpop.permute.xlu0 %773  ;;  %v6563_v30 = vld [vmem:[#allocation88_spill] sm:$0xff] }
 0x11e   : > { %v2969_v23 = vadd.f32 %v2967_v39, %v2855_v18  ;;  %v5704_v49 = vadd.f32 %v699_v31, %v659_v3  ;;  %v5706_v26 = vadd.f32 %v708_v17, %v668_v5  ;;  %v5708_v63 = vadd.f32 %v717_v60, %v677_v11  ;;  %v6559_v39 = vld [vmem:[#allocation11_spill] sm:$0xff]  ;;  %v6560_v31 = vld [vmem:[#allocation20_spill] sm:$0xff]  ;;  %v5731_v3 = vld [vmem:[%s6390_s1 + $0x8e] ss:$0 sm:$0xff] }
 0x11f   : > { %v5710_v28 = vadd.f32 %v726_v13, %v686_v44  ;;  %v5712_v58 = vadd.f32 %v700_v46, %v660_v35  ;;  %v2534_v62 = vadd.f32 %v6558_v52, %v2490_v6  ;;  %v2690_v20 = vmul.f32 %v5619_v38, %v6534_v56  ;;  %v3624_v38 = vld [vmem:[%s6390_s1 + $0x34] ss:$0 sm:$0xff]  ;;  %v4082_v60 = vld [vmem:[%s6390_s1 + $0x8d] ss:$0 sm:$0xff]  ;;  %v6565_v14 = vld [vmem:[#allocation28_spill] sm:$0xff] }
 0x120   : > { %v3013_v21 = vadd.f32 %v3011_v50, %v2969_v23  ;;  %v5722_v27 = vadd.f32 %v709_v59, %v669_v45  ;;  %v5724_v53 = vadd.f32 %v718_v24, %v678_v4  ;;  %v2498_v7 = vadd.f32 %v6560_v31, %v6559_v39  ;;  %v5738_v50 = vpop.permute.xlu1 %775  ;;  %v5744_v11 = vld [vmem:[%s4209_s30 + $0x51] sm:$0xff]  ;;  %v5773_v18 = vld [vmem:[%s4209_s30 + $0x49] sm:$0xff]  ;;  %v3867_v59 = vld [vmem:[%s6390_s1 + $0xbe] ss:$0 sm:$0xff] }
 0x121   : > { %v5740_v17 = vadd.f32 %v727_v43, %v687_v15  ;;  %v2648_v5 = vadd.f32 %v6562_v36, %v2534_v62  ;;  %v2810_v48 = vmul.f32 %v4082_v60, %v5744_v11  ;;  %v2854_v10 = vmul.f32 %v5643_v34, %v6538_v19  ;;  %v5757_v44 = vld [vmem:[%s4209_s30 + $0x52] sm:$0xff]  ;;  %v3863_v4 = vld [vmem:[%s6390_s1 + $0xae] ss:$0 sm:$0xff]  ;;  %v6568_v39 = vld [vmem:[#allocation57_spill] sm:$0xff] }
 0x122   : > { %4000 = vmatprep.mubr.msk.f32.mxu1 %vm1536_vm0, %v3013_v21  ;;  %v2968_v47 = vmul.f32 %v5757_v44, %v5658_v40  ;;  %v3012_v12 = vmul.f32 %v5663_v1, %v5317_v41  ;;  %v2542_v13 = vadd.f32 %v6563_v30, %v2498_v7  ;;  %v2698_v35 = vmul.f32 %v5720_v57, %v6533_v54  ;;  %v3626_v34 = vld [vmem:[%s6390_s1 + $0x36] ss:$0 sm:$0xff]  ;;  %v3627_v45 = vld [vmem:[%s6390_s1 + $0x37] ss:$0 sm:$0xff]  ;;  %v3851_v1 = vld [vmem:[%s6390_s1 + $0x9e] ss:$0 sm:$0xff]  ;;  %v5802_v30 = vpop.permute.xlu0 %851 }
 0x123   : > { %6561 = vst [vmem:[#allocation30_spill] sm:$0xff] %v5740_v17  ;;  %v2692_v46 = vadd.f32 %v2690_v20, %v2648_v5  ;;  %v2818_v40 = vmul.f32 %v5773_v18, %v5731_v3  ;;  %v6564_v24 = vld [vmem:[#allocation54_spill] sm:$0xff]  ;;  %v779_v43 = vmul.f32 %v3624_v38, %v5736_v42  ;;  %v6566_v6 = vld [vmem:[#allocation55_spill] sm:$0xff]  ;;  %v6567_v52 = vld [vmem:[#allocation56_spill] sm:$0xff]  ;;  %v788_v20 = vmul.f32 %v3625_v25, %v5736_v42 }
 0x124   : > { %v737_v15 = vadd.f32 %v6564_v24, %v5610_v22  ;;  %v2656_v37 = vadd.f32 %v6565_v14, %v2542_v13  ;;  %v746_v23 = vadd.f32 %v6566_v6, %v5612_v32  ;;  %v755_v62 = vadd.f32 %v6567_v52, %v5614_v33  ;;  %v5804_v33 = vpop.permute.xlu1 %853  ;;  %v6570_v24 = vld [vmem:[#allocation59_spill] sm:$0xff] }
 0x125   : > { %v2812_v21 = vadd.f32 %v2810_v48, %v2692_v46  ;;  %v764_v31 = vadd.f32 %v6568_v39, %v5621_v8  ;;  %v797_v7 = vmul.f32 %v3626_v34, %v5736_v42  ;;  %v806_v22 = vmul.f32 %v3627_v45, %v5736_v42  ;;  %v6569_v8 = vld [vmem:[#allocation58_spill] sm:$0xff] }
 0x126   : > { %v2700_v36 = vadd.f32 %v2698_v35, %v2656_v37  ;;  %v2862_v5 = vmul.f32 %v3851_v1, %v6535_v51  ;;  %v2976_v60 = vmul.f32 %v5681_v61, %v3863_v4  ;;  %v3020_v32 = vmul.f32 %v3867_v59, %v5295_v55 }
 0x127   : > { %v2856_v13 = vadd.f32 %v2854_v10, %v2812_v21  ;;  %v5806_v48 = vadd.f32 %v779_v43, %v737_v15  ;;  %v738_v46 = vadd.f32 %v6569_v8, %v5648_v0  ;;  %v747_v14 = vadd.f32 %v6570_v24, %v5650_v29  ;;  %v6573_v10 = vld [vmem:[#allocation7_spill] sm:$0xff]  ;;  %v6574_v15 = vld [vmem:[#allocation16_spill] sm:$0xff]  ;;  %v6576_v29 = vld [vmem:[#allocation61_spill] sm:$0xff] }
 0x128   : > { %v2820_v35 = vadd.f32 %v2818_v40, %v2700_v36  ;;  %v5812_v37 = vadd.f32 %v788_v20, %v746_v23  ;;  %v780_v6 = vmul.f32 %v3624_v38, %v5738_v50  ;;  %v789_v52 = vmul.f32 %v3625_v25, %v5738_v50  ;;  %v6575_v0 = vld [vmem:[#allocation60_spill] sm:$0xff]  ;;  %v6577_v23 = vld [vmem:[#allocation83_spill] sm:$0xff]  ;;  %v3630_v36 = vld [vmem:[%s6390_s1 + $0x66] ss:$0 sm:$0xff] }
 0x129   : > { %v2970_v39 = vadd.f32 %v2968_v47, %v2856_v13  ;;  %v5816_v9 = vadd.f32 %v797_v7, %v755_v62  ;;  %v5818_v17 = vadd.f32 %v806_v22, %v764_v31  ;;  %v2499_v43 = vadd.f32 %v6574_v15, %v6573_v10  ;;  %v6581_v13 = vld [vmem:[#allocation24_spill] sm:$0xff] }
 0x12a   : > { %v2864_v21 = vadd.f32 %v2862_v5, %v2820_v35  ;;  %v5824_v8 = vadd.f32 %v6575_v0, %v5671_v16  ;;  %v5828_v40 = vadd.f32 %v6576_v29, %v5699_v2  ;;  %v5831_v38 = vmul.f32 %v3626_v34, %v5738_v50  ;;  %v5842_v16 = vld [vmem:[%s6390_s1 + $0xbb] ss:$0 sm:$0xff]  ;;  %v5859_v5 = vpop.permute.xlu0 %939 }
 0x12b   : > { %6571 = vst [vmem:[#allocation31_spill] sm:$0xff] %v5816_v9  ;;  %6572 = vst [vmem:[#allocation32_spill] sm:$0xff] %v5818_v17  ;;  %v3014_v25 = vadd.f32 %v3012_v12, %v2970_v39  ;;  %v5834_v47 = vmul.f32 %v3627_v45, %v5738_v50  ;;  %v2543_v62 = vadd.f32 %v6577_v23, %v2499_v43  ;;  %v6579_v34 = vld [vmem:[#allocation12_spill] sm:$0xff]  ;;  %v6580_v12 = vld [vmem:[#allocation21_spill] sm:$0xff] }
 0x12c   : > { %v2699_v20 = vmul.f32 %v5720_v57, %v6534_v56  ;;  %v2978_v31 = vadd.f32 %v2976_v60, %v2864_v21  ;;  %v5844_v2 = vadd.f32 %v780_v6, %v738_v46  ;;  %v5846_v7 = vadd.f32 %v789_v52, %v747_v14  ;;  %v3628_v45 = vld [vmem:[%s6390_s1 + $0x64] ss:$0 sm:$0xff]  ;;  %v3629_v57 = vld [vmem:[%s6390_s1 + $0x65] ss:$0 sm:$0xff]  ;;  %v5861_v60 = vpop.permute.xlu1 %941  ;;  %v5872_v6 = vld [vmem:[%s6390_s1 + $0x8f] ss:$0 sm:$0xff] }
 0x12d   : > { %v2507_v22 = vadd.f32 %v6580_v12, %v6579_v34  ;;  %4001 = vmatmul.mubr.msk.f32.gmra.mrb[2].mxu1 %vm1536_vm0, %v3014_v25  ;;  %v2657_v46 = vadd.f32 %v6581_v13, %v2543_v62  ;;  %v2819_v24 = vmul.f32 %v5744_v11, %v5731_v3  ;;  %v2863_v14 = vmul.f32 %v3851_v1, %v6538_v19  ;;  %v5877_v52 = vld [vmem:[%s6390_s1 + $0x9f] ss:$0 sm:$0xff]  ;;  %v3631_v39 = vld [vmem:[%s6390_s1 + $0x67] ss:$0 sm:$0xff]  ;;  %v6582_v1 = vld [vmem:[#allocation90_spill] sm:$0xff] }
 0x12e   : > { %6578 = vst [vmem:[#allocation33_spill] sm:$0xff] %v5846_v7  ;;  %v2977_v35 = vmul.f32 %v5757_v44, %v3863_v4  ;;  %v3022_v10 = vadd.f32 %v3020_v32, %v2978_v31  ;;  %v3021_v3 = vmul.f32 %v3867_v59, %v5317_v41  ;;  %v2707_v4 = vmul.f32 %v5842_v16, %v6533_v54  ;;  %v5889_v43 = vld [vmem:[%s6390_s1 + $0xaf] ss:$0 sm:$0xff]  ;;  %v5894_v21 = vld [vmem:[%s6390_s1 + $0xbf] ss:$0 sm:$0xff]  ;;  %v6583_v23 = vld [vmem:[#allocation29_spill] sm:$0xff] }
 0x12f   : > { %v2551_v15 = vadd.f32 %v6582_v1, %v2507_v22  ;;  %v3632_v32 = vld [vmem:[%s6390_s1 + $0x74] ss:$0 sm:$0xff]  ;;  %v2701_v59 = vadd.f32 %v2699_v20, %v2657_v46  ;;  %v815_v0 = vmul.f32 %v3628_v45, %v5736_v42  ;;  %v824_v29 = vmul.f32 %v3629_v57, %v5736_v42  ;;  %v3633_v25 = vld [vmem:[%s6390_s1 + $0x75] ss:$0 sm:$0xff]  ;;  %v3634_v46 = vld [vmem:[%s6390_s1 + $0x76] ss:$0 sm:$0xff] }
 0x130   : > { %v833_v54 = vmul.f32 %v3630_v36, %v5736_v42  ;;  %4003 = vmatprep.mubr.msk.f32.mxu1 %vm1536_vm0, %v3022_v10  ;;  %v2827_v31 = vmul.f32 %v5773_v18, %v5872_v6  ;;  %v2871_v20 = vmul.f32 %v5877_v52, %v6535_v51  ;;  %v842_v34 = vmul.f32 %v3631_v39, %v5736_v42  ;;  %v3635_v10 = vld [vmem:[%s6390_s1 + $0x77] ss:$0 sm:$0xff] }
 0x131   : > { %v2665_v62 = vadd.f32 %v6583_v23, %v2551_v15  ;;  %v2821_v12 = vadd.f32 %v2819_v24, %v2701_v59  ;;  %v2985_v22 = vmul.f32 %v5681_v61, %v5889_v43  ;;  %v3029_v13 = vmul.f32 %v5894_v21, %v5295_v55  ;;  %v5926_v15 = vpop.permute.xlu0 %1017  ;;  %v5928_v55 = vpop.permute.xlu1 %1019 }
 0x132   : > { %v857_v1 = vmul.f32 %v3632_v32, %v5802_v30  ;;  %v817_v42 = vadd.f32 %v815_v0, %v5704_v49  ;;  %v826_v24 = vadd.f32 %v824_v29, %v5706_v26  ;;  %v866_v61 = vmul.f32 %v3633_v25, %v5802_v30 }
 0x133   : > { %v2709_v51 = vadd.f32 %v2707_v4, %v2665_v62  ;;  %v2865_v59 = vadd.f32 %v2863_v14, %v2821_v12  ;;  %v835_v23 = vadd.f32 %v833_v54, %v5708_v63  ;;  %v844_v17 = vadd.f32 %v842_v34, %v5710_v28  ;;  %v3645_v34 = vld [vmem:[%s6390_s1 + $0x19] ss:$0 sm:$0xff] }
 0x134   : > { %v816_v9 = vmul.f32 %v3628_v45, %v5738_v50  ;;  %v875_v4 = vmul.f32 %v3634_v46, %v5802_v30  ;;  %v884_v49 = vmul.f32 %v3635_v10, %v5802_v30  ;;  %v825_v26 = vmul.f32 %v3629_v57, %v5738_v50 }
 0x135   : > { %v2829_v7 = vadd.f32 %v2827_v31, %v2709_v51  ;;  %v2979_v0 = vadd.f32 %v2977_v35, %v2865_v59  ;;  %v834_v29 = vmul.f32 %v3630_v36, %v5738_v50  ;;  %v843_v62 = vmul.f32 %v3631_v39, %v5738_v50  ;;  %v5954_v35 = vpop.permute.xlu0 %1097  ;;  %v5956_v39 = vpop.permute.xlu1 %1099 }
 0x136   : > { %v818_v14 = vadd.f32 %v816_v9, %v5712_v58  ;;  %v827_v63 = vadd.f32 %v825_v26, %v5722_v27  ;;  %v858_v28 = vmul.f32 %v3632_v32, %v5804_v33  ;;  %v867_v45 = vmul.f32 %v3633_v25, %v5804_v33  ;;  %v6584_v58 = vld [vmem:[#allocation30_spill] sm:$0xff]  ;;  %v6586_v32 = vld [vmem:[#allocation17_spill] sm:$0xff] }
 0x137   : > { %v2873_v12 = vadd.f32 %v2871_v20, %v2829_v7  ;;  %v5944_v54 = vadd.f32 %v5831_v38, %v5824_v8  ;;  %v3023_v30 = vadd.f32 %v3021_v3, %v2979_v0  ;;  %v836_v57 = vadd.f32 %v834_v29, %v5724_v53  ;;  %v6585_v3 = vld [vmem:[#allocation8_spill] sm:$0xff] }
 0x138   : > { %v876_v36 = vmul.f32 %v3634_v46, %v5804_v33  ;;  %v5950_v50 = vadd.f32 %v5834_v47, %v5828_v40  ;;  %v845_v27 = vadd.f32 %v843_v62, %v6584_v58  ;;  %v885_v7 = vmul.f32 %v3635_v10, %v5804_v33  ;;  %v3644_v40 = vld [vmem:[%s6390_s1 + $0x18] ss:$0 sm:$0xff]  ;;  %v5975_v46 = vld [vmem:[%s6390_s1 + $0x1b] ss:$0 sm:$0xff]  ;;  %v3654_v62 = vld [vmem:[%s6390_s1 + $0x5a] ss:$0 sm:$0xff] }
 0x139   : > { %v2987_v9 = vadd.f32 %v2985_v22, %v2873_v12  ;;  %4004 = vmatmul.mubr.msk.f32.gmra.mrb[4].mxu1 %vm1536_vm0, %v3023_v30  ;;  %v859_v8 = vadd.f32 %v857_v1, %v817_v42  ;;  %v868_v38 = vadd.f32 %v866_v61, %v826_v24  ;;  %v877_v53 = vadd.f32 %v875_v4, %v835_v23  ;;  %v5970_v22 = vld [vmem:[%s6390_s1 + $0x1a] ss:$0 sm:$0xff]  ;;  %v6587_v1 = vld [vmem:[#allocation85_spill] sm:$0xff]  ;;  %v3648_v42 = vld [vmem:[%s6390_s1 + $0x48] ss:$0 sm:$0xff]  ;;  %v6030_v12 = vpop.permute.xlu1 %1177 }
 0x13a   : > { %v2508_v25 = vadd.f32 %v6586_v32, %v6585_v3  ;;  %v886_v31 = vadd.f32 %v884_v49, %v844_v17  ;;  %v860_v20 = vadd.f32 %v858_v28, %v818_v14  ;;  %v869_v33 = vadd.f32 %v867_v45, %v827_v63  ;;  %v3649_v24 = vld [vmem:[%s6390_s1 + $0x49] ss:$0 sm:$0xff]  ;;  %v3650_v61 = vld [vmem:[%s6390_s1 + $0x4a] ss:$0 sm:$0xff]  ;;  %v3651_v23 = vld [vmem:[%s6390_s1 + $0x4b] ss:$0 sm:$0xff]  ;;  %v6028_v14 = vpop.permute.xlu0 %1175 }
 0x13b   : > { %v3031_v47 = vadd.f32 %v3029_v13, %v2987_v9  ;;  %v878_v10 = vadd.f32 %v876_v36, %v836_v57  ;;  %v2708_v17 = vmul.f32 %v5842_v16, %v6534_v56  ;;  %v2828_v51 = vmul.f32 %v5744_v11, %v5872_v6  ;;  %v3653_v4 = vld [vmem:[%s6390_s1 + $0x59] ss:$0 sm:$0xff]  ;;  %v6588_v49 = vld [vmem:[#allocation25_spill] sm:$0xff]  ;;  %v6589_v28 = vld [vmem:[#allocation66_spill] sm:$0xff] }
 0x13c   : > { %v2552_v13 = vadd.f32 %v6587_v1, %v2508_v25  ;;  %v887_v59 = vadd.f32 %v885_v7, %v845_v27  ;;  %v2872_v56 = vmul.f32 %v5877_v52, %v6538_v19  ;;  %v2986_v16 = vmul.f32 %v5757_v44, %v5889_v43  ;;  %v3655_v57 = vld [vmem:[%s6390_s1 + $0x5b] ss:$0 sm:$0xff] }
 0x13d   : > { %4006 = vmatprep.mubr.msk.f32.mxu1 %vm1536_vm0, %v3031_v47  ;;  %v3030_v6 = vmul.f32 %v5894_v21, %v5317_v41  ;;  %v6006_v0 = vmul.f32 %v3644_v40, %v5859_v5  ;;  %v6009_v19 = vmul.f32 %v3645_v34, %v5859_v5  ;;  %v6013_v44 = vmul.f32 %v5970_v22, %v5859_v5  ;;  %v3652_v41 = vld [vmem:[%s6390_s1 + $0x58] ss:$0 sm:$0xff] }
 0x13e   : > { %v2666_v26 = vadd.f32 %v6588_v49, %v2552_v13  ;;  %v6020_v52 = vmul.f32 %v5975_v46, %v5859_v5  ;;  %v981_v43 = vmul.f32 %v3648_v42, %v5859_v5  ;;  %v990_v21 = vmul.f32 %v3649_v24, %v5859_v5 }
 0x13f   : > { %v999_v29 = vmul.f32 %v3650_v61, %v5859_v5  ;;  %v6034_v45 = vadd.f32 %v6589_v28, %v5844_v2  ;;  %v1008_v30 = vmul.f32 %v3651_v23, %v5859_v5  ;;  %v1032_v36 = vmul.f32 %v3653_v4, %v5926_v15 }
 0x140   : > { %v2710_v63 = vadd.f32 %v2708_v17, %v2666_v26  ;;  %v6042_v9 = vmul.f32 %v3644_v40, %v5861_v60  ;;  %v6045_v58 = vmul.f32 %v3645_v34, %v5861_v60  ;;  %v992_v27 = vadd.f32 %v990_v21, %v868_v38 }
 0x141   : > { %v1023_v7 = vmul.f32 %v3652_v41, %v5926_v15  ;;  %v1001_v2 = vadd.f32 %v999_v29, %v877_v53  ;;  %v1041_v32 = vmul.f32 %v3654_v62, %v5926_v15  ;;  %v982_v5 = vmul.f32 %v3648_v42, %v5861_v60  ;;  %v6064_v42 = vpop.permute.xlu1 %1265 }
 0x142   : > { %v2830_v3 = vadd.f32 %v2828_v51, %v2710_v63  ;;  %v983_v25 = vadd.f32 %v981_v43, %v859_v8  ;;  %v1010_v47 = vadd.f32 %v1008_v30, %v886_v31  ;;  %v1050_v1 = vmul.f32 %v3655_v57, %v5926_v15  ;;  %v3665_v8 = vld [vmem:[%s6390_s1 + $0x69] ss:$0 sm:$0xff]  ;;  %v3666_v15 = vld [vmem:[%s6390_s1 + $0x6a] ss:$0 sm:$0xff]  ;;  %v6062_v31 = vpop.permute.xlu0 %1263 }
 0x143   : > { %v991_v13 = vmul.f32 %v3649_v24, %v5861_v60  ;;  %v1034_v17 = vadd.f32 %v1032_v36, %v992_v27  ;;  %v1000_v34 = vmul.f32 %v3650_v61, %v5861_v60  ;;  %v1009_v38 = vmul.f32 %v3651_v23, %v5861_v60  ;;  %v3667_v23 = vld [vmem:[%s6390_s1 + $0x6b] ss:$0 sm:$0xff] }
 0x144   : > { %v2874_v40 = vadd.f32 %v2872_v56, %v2830_v3  ;;  %v984_v49 = vadd.f32 %v982_v5, %v860_v20  ;;  %v1024_v53 = vmul.f32 %v3652_v41, %v5928_v55  ;;  %v1033_v51 = vmul.f32 %v3653_v4, %v5928_v55  ;;  %v3664_v56 = vld [vmem:[%s6390_s1 + $0x68] ss:$0 sm:$0xff] }
 0x145   : > { %v993_v26 = vadd.f32 %v991_v13, %v869_v33  ;;  %v1043_v61 = vadd.f32 %v1041_v32, %v1001_v2  ;;  %v1002_v20 = vadd.f32 %v1000_v34, %v878_v10  ;;  %v1042_v33 = vmul.f32 %v3654_v62, %v5928_v55  ;;  %v3670_v10 = vld [vmem:[%s6390_s1 + $0x7a] ss:$0 sm:$0xff]  ;;  %v6095_v13 = vpop.permute.xlu1 %1343 }
 0x146   : > { %v2988_v24 = vadd.f32 %v2986_v16, %v2874_v40  ;;  %v1025_v4 = vadd.f32 %v1023_v7, %v983_v25  ;;  %v1052_v41 = vadd.f32 %v1050_v1, %v1010_v47  ;;  %v1011_v43 = vadd.f32 %v1009_v38, %v887_v59  ;;  %v3669_v16 = vld [vmem:[%s6390_s1 + $0x79] ss:$0 sm:$0xff]  ;;  %v3671_v59 = vld [vmem:[%s6390_s1 + $0x7b] ss:$0 sm:$0xff]  ;;  %v1342_v1 = vpop.permute.xlu0 %1341 }
 0x147   : > { %v1051_v21 = vmul.f32 %v3655_v57, %v5928_v55  ;;  %v1026_v62 = vadd.f32 %v1024_v53, %v984_v49  ;;  %v1148_v63 = vmul.f32 %v3665_v8, %v5954_v35  ;;  %v1157_v28 = vmul.f32 %v3666_v15, %v5954_v35  ;;  %v3685_v49 = vld [vmem:[%s6390_s1 + $0x4d] ss:$0 sm:$0xff] }
 0x148   : > { %v3032_v29 = vadd.f32 %v3030_v6, %v2988_v24  ;;  %v1035_v30 = vadd.f32 %v1033_v51, %v993_v26  ;;  %v1044_v55 = vadd.f32 %v1042_v33, %v1002_v20  ;;  %v1139_v57 = vmul.f32 %v3664_v56, %v5954_v35  ;;  %v3668_v6 = vld [vmem:[%s6390_s1 + $0x78] ss:$0 sm:$0xff] }
 0x149   : > { %v1166_v36 = vmul.f32 %v3667_v23, %v5954_v35  ;;  %v1150_v27 = vadd.f32 %v1148_v63, %v1034_v17  ;;  %v1159_v7 = vadd.f32 %v1157_v28, %v1043_v61  ;;  %v1190_v3 = vmul.f32 %v3669_v16, %v6028_v14  ;;  %v3686_v61 = vld [vmem:[%s6390_s1 + $0x4e] ss:$0 sm:$0xff] }
 0x14a   : > { %4007 = vmatmul.mubr.msk.f32.gmra.mrb[6].mxu1 %vm1536_vm0, %v3032_v29  ;;  %v1199_v2 = vmul.f32 %v3670_v10, %v6028_v14  ;;  %v1053_v32 = vadd.f32 %v1051_v21, %v1011_v43  ;;  %v1208_v25 = vmul.f32 %v3671_v59, %v6028_v14  ;;  %v1140_v47 = vmul.f32 %v3664_v56, %v5956_v39  ;;  %v3689_v29 = vld [vmem:[%s6390_s1 + $0x5d] ss:$0 sm:$0xff] }
 0x14b   : > { %v1168_v5 = vadd.f32 %v1166_v36, %v1052_v41  ;;  %v1192_v40 = vadd.f32 %v1190_v3, %v1150_v27  ;;  %v1149_v34 = vmul.f32 %v3665_v8, %v5956_v39  ;;  %v1158_v38 = vmul.f32 %v3666_v15, %v5956_v39  ;;  %v3687_v8 = vld [vmem:[%s6390_s1 + $0x4f] ss:$0 sm:$0xff]  ;;  %v6138_v36 = vpop.permute.xlu1 %1423 }
 0x14c   : > { %v1201_v17 = vadd.f32 %v1199_v2, %v1159_v7  ;;  %v1167_v53 = vmul.f32 %v3667_v23, %v5956_v39  ;;  %v1142_v51 = vadd.f32 %v1140_v47, %v1026_v62  ;;  %v1182_v24 = vmul.f32 %v3668_v6, %v6030_v12  ;;  %v3690_v62 = vld [vmem:[%s6390_s1 + $0x5e] ss:$0 sm:$0xff] }
 0x14d   : > { %v1210_v26 = vadd.f32 %v1208_v25, %v1168_v5  ;;  %v1151_v20 = vadd.f32 %v1149_v34, %v1035_v30  ;;  %v1160_v15 = vadd.f32 %v1158_v38, %v1044_v55  ;;  %v1191_v33 = vmul.f32 %v3669_v16, %v6030_v12 }
 0x14e   : > { %v1200_v56 = vmul.f32 %v3670_v10, %v6030_v12  ;;  %v6114_v23 = vmul.f32 %v5970_v22, %v5861_v60  ;;  %v1141_v41 = vadd.f32 %v1139_v57, %v1025_v4  ;;  %v1181_v43 = vmul.f32 %v3668_v6, %v6028_v14  ;;  %v3691_v14 = vld [vmem:[%s6390_s1 + $0x5f] ss:$0 sm:$0xff]  ;;  %v3684_v4 = vld [vmem:[%s6390_s1 + $0x4c] ss:$0 sm:$0xff] }
 0x14f   : > { %v1314_v21 = vmul.f32 %v3685_v49, %v6062_v31  ;;  %v1169_v16 = vadd.f32 %v1167_v53, %v1053_v32  ;;  %v1209_v10 = vmul.f32 %v3671_v59, %v6030_v12  ;;  %v1323_v63 = vmul.f32 %v3686_v61, %v6062_v31  ;;  %v3688_v12 = vld [vmem:[%s6390_s1 + $0x5c] ss:$0 sm:$0xff]  ;;  %v6136_v59 = vpop.permute.xlu0 %1421 }
 0x150   : > { %v1332_v22 = vmul.f32 %v3687_v8, %v6062_v31  ;;  %v1184_v28 = vadd.f32 %v1182_v24, %v1142_v51  ;;  %v1193_v30 = vadd.f32 %v1191_v33, %v1151_v20  ;;  %v1202_v55 = vadd.f32 %v1200_v56, %v1160_v15  ;;  %v3700_v20 = vld [vmem:[%s6390_s1 + $0x6c] ss:$0 sm:$0xff] }
 0x151   : > { %v1316_v57 = vadd.f32 %v1314_v21, %v1192_v40  ;;  %v1325_v27 = vadd.f32 %v1323_v63, %v1201_v17  ;;  %v1356_v6 = vmul.f32 %v3689_v29, %v1342_v1  ;;  %v1365_v3 = vmul.f32 %v3690_v62, %v1342_v1 }
 0x152   : > { %v1334_v7 = vadd.f32 %v1332_v22, %v1210_v26  ;;  %v1374_v2 = vmul.f32 %v3691_v14, %v1342_v1  ;;  %v1306_v32 = vmul.f32 %v3684_v4, %v6064_v42  ;;  %v1315_v5 = vmul.f32 %v3685_v49, %v6064_v42  ;;  %v3705_v49 = vld [vmem:[%s6390_s1 + $0x7d] ss:$0 sm:$0xff] }
 0x153   : > { %v1324_v25 = vmul.f32 %v3686_v61, %v6064_v42  ;;  %v6145_v47 = vmul.f32 %v5975_v46, %v5861_v60  ;;  %v1211_v40 = vadd.f32 %v1209_v10, %v1169_v16  ;;  %v1333_v34 = vmul.f32 %v3687_v8, %v6064_v42  ;;  %v3706_v8 = vld [vmem:[%s6390_s1 + $0x7e] ss:$0 sm:$0xff]  ;;  %v1502_v16 = vpop.permute.xlu1 %1501  ;;  %v3702_v10 = vld [vmem:[%s6390_s1 + $0x6e] ss:$0 sm:$0xff] }
 0x154   : > { %v1348_v38 = vmul.f32 %v3688_v12, %v6095_v13  ;;  %v1308_v17 = vadd.f32 %v1306_v32, %v1184_v28  ;;  %v1317_v26 = vadd.f32 %v1315_v5, %v1193_v30  ;;  %v1357_v51 = vmul.f32 %v3689_v29, %v6095_v13  ;;  %v1500_v29 = vpop.permute.xlu0 %1499 }
 0x155   : > { %v1326_v53 = vadd.f32 %v1324_v25, %v1202_v55  ;;  %v948_v24 = vadd.f32 %v6042_v9, %v6034_v45  ;;  %v1183_v61 = vadd.f32 %v1181_v43, %v1141_v41  ;;  %v1347_v60 = vmul.f32 %v3688_v12, %v1342_v1  ;;  %v3704_v45 = vld [vmem:[%s6390_s1 + $0x7c] ss:$0 sm:$0xff]  ;;  %v3701_v9 = vld [vmem:[%s6390_s1 + $0x6d] ss:$0 sm:$0xff]  ;;  %v3703_v55 = vld [vmem:[%s6390_s1 + $0x6f] ss:$0 sm:$0xff] }
 0x156   : > { %v1366_v46 = vmul.f32 %v3690_v62, %v6095_v13  ;;  %v1358_v15 = vadd.f32 %v1356_v6, %v1316_v57  ;;  %v1367_v33 = vadd.f32 %v1365_v3, %v1325_v27  ;;  %v1376_v56 = vadd.f32 %v1374_v2, %v1334_v7  ;;  %v3707_v57 = vld [vmem:[%s6390_s1 + $0x7f] ss:$0 sm:$0xff] }
 0x157   : > { %v1350_v21 = vadd.f32 %v1348_v38, %v1308_v17  ;;  %v1335_v1 = vadd.f32 %v1333_v34, %v1211_v40  ;;  %v1359_v41 = vadd.f32 %v1357_v51, %v1317_v26  ;;  %v1375_v43 = vmul.f32 %v3691_v14, %v6095_v13 }
 0x158   : > { %v1514_v62 = vmul.f32 %v3705_v49, %v1500_v29  ;;  %v1368_v63 = vadd.f32 %v1366_v46, %v1326_v53  ;;  %v1523_v22 = vmul.f32 %v3706_v8, %v1500_v29  ;;  %v1305_v28 = vmul.f32 %v3684_v4, %v6062_v31 }
 0x159   : > { %v1464_v30 = vmul.f32 %v3700_v20, %v6138_v36  ;;  %v1463_v13 = vmul.f32 %v3700_v20, %v6136_v59  ;;  %v1506_v14 = vmul.f32 %v3704_v45, %v1502_v16  ;;  %v1472_v12 = vmul.f32 %v3701_v9, %v6136_v59 }
 0x15a   : > { %v1473_v27 = vmul.f32 %v3701_v9, %v6138_v36  ;;  %v1307_v7 = vadd.f32 %v1305_v28, %v1183_v61  ;;  %v1481_v4 = vmul.f32 %v3702_v10, %v6136_v59  ;;  %v1482_v3 = vmul.f32 %v3702_v10, %v6138_v36  ;;  %v3660_v61 = vld [vmem:[%s6390_s1 + $0x38] ss:$0 sm:$0xff]  ;;  %v6590_v9 = vld [vmem:[#allocation62_spill] sm:$0xff] }
 0x15b   : > { %v1466_v6 = vadd.f32 %v1464_v30, %v1350_v21  ;;  %v1377_v2 = vadd.f32 %v1375_v43, %v1335_v1  ;;  %v1474_v32 = vadd.f32 %v1472_v12, %v1358_v15  ;;  %v1490_v5 = vmul.f32 %v3703_v55, %v6136_v59  ;;  %v3661_v12 = vld [vmem:[%s6390_s1 + $0x39] ss:$0 sm:$0xff] }
 0x15c   : > { %v1491_v25 = vmul.f32 %v3703_v55, %v6138_v36  ;;  %v1532_v40 = vmul.f32 %v3707_v57, %v1500_v29  ;;  %v1515_v34 = vmul.f32 %v3705_v49, %v1502_v16  ;;  %v1349_v38 = vadd.f32 %v1347_v60, %v1307_v7  ;;  %v3676_v49 = vld [vmem:[%s6390_s1 + $0xc] ss:$0 sm:$0xff] }
 0x15d   : > { %v1505_v17 = vmul.f32 %v3704_v45, %v1500_v29  ;;  %v1524_v26 = vmul.f32 %v3706_v8, %v1502_v16  ;;  %v1475_v53 = vadd.f32 %v1473_v27, %v1359_v41  ;;  %v1483_v51 = vadd.f32 %v1481_v4, %v1367_v33  ;;  %v6591_v33 = vld [vmem:[#allocation74_spill] sm:$0xff]  ;;  %v3696_v4 = vld [vmem:[%s6390_s1 + $0x3c] ss:$0 sm:$0xff] }
 0x15e   : > { %v1484_v46 = vadd.f32 %v1482_v3, %v1368_v63  ;;  %v1533_v20 = vmul.f32 %v3707_v57, %v1502_v16  ;;  %v1465_v21 = vadd.f32 %v1463_v13, %v1349_v38  ;;  %v1508_v15 = vadd.f32 %v1506_v14, %v1466_v6  ;;  %v3680_v16 = vld [vmem:[%s6390_s1 + $0x1c] ss:$0 sm:$0xff]  ;;  %v6592_v55 = vld [vmem:[#allocation70_spill] sm:$0xff]  ;;  %v6593_v3 = vld [vmem:[#allocation63_spill] sm:$0xff] }
 0x15f   : > { %v903_v1 = vadd.f32 %v6590_v9, %v5806_v48  ;;  %v1516_v60 = vadd.f32 %v1514_v62, %v1474_v32  ;;  %v1492_v8 = vadd.f32 %v1490_v5, %v1376_v56  ;;  %v1493_v29 = vadd.f32 %v1491_v25, %v1377_v2  ;;  %v6203_v62 = vld [vmem:[%s4209_s30 + $0x50] sm:$0xff]  ;;  %v6212_v13 = vld [vmem:[%s4209_s30 + $0x48] sm:$0xff]  ;;  %v6594_v32 = vld [vmem:[#allocation5_spill] sm:$0xff] }
 0x160   : > { %v1062_v45 = vadd.f32 %v6591_v33, %v948_v24  ;;  %v1507_v41 = vadd.f32 %v1505_v17, %v1465_v21  ;;  %v1103_v10 = vmul.f32 %v3660_v61, %v5954_v35  ;;  %v1104_v48 = vmul.f32 %v3660_v61, %v5956_v39  ;;  %v3692_v24 = vld [vmem:[%s6390_s1 + $0x2c] ss:$0 sm:$0xff]  ;;  %v3662_v33 = vld [vmem:[%s6390_s1 + $0x3a] ss:$0 sm:$0xff] }
 0x161   : > { %v947_v43 = vadd.f32 %v6006_v0, %v903_v1  ;;  %v1517_v63 = vadd.f32 %v1515_v34, %v1475_v53  ;;  %v1525_v28 = vadd.f32 %v1523_v22, %v1483_v51  ;;  %v1526_v30 = vadd.f32 %v1524_v26, %v1484_v46  ;;  %v3693_v53 = vld [vmem:[%s6390_s1 + $0x2d] ss:$0 sm:$0xff]  ;;  %v6595_v51 = vld [vmem:[#allocation33_spill] sm:$0xff]  ;;  %v6596_v46 = vld [vmem:[#allocation67_spill] sm:$0xff] }
 0x162   : > { %v1226_v56 = vmul.f32 %v6203_v62, %v3676_v49  ;;  %3949 = vmatprep.mubr.msk.f32.mxu0 %vm1536_vm0, %v1507_v41  ;;  %v1106_v0 = vadd.f32 %v1104_v48, %v1062_v45  ;;  %v1225_v14 = vmul.f32 %v6212_v13, %v3676_v49  ;;  %v1270_v22 = vmul.f32 %v3680_v16, %v6064_v42 }
 0x163   : > { %v1061_v57 = vadd.f32 %v6592_v55, %v947_v43  ;;  %3950 = vmatmul.mubr.msk.f32.vlgmr.msra.gmra.mrb[0].mxu0 %vm1536_vm0, %v1508_v15  ;;  %v1534_v27 = vadd.f32 %v1532_v40, %v1492_v8  ;;  %v6220_v7 = vadd.f32 %v1533_v20, %v1493_v29  ;;  %v1269_v6 = vmul.f32 %v3680_v16, %v6062_v31  ;;  %v3677_v40 = vld [vmem:[%s6390_s1 + $0xd] ss:$0 sm:$0xff]  ;;  %v6598_v43 = vld [vmem:[#allocation31_spill] sm:$0xff] }
 0x164   : > { %v912_v2 = vadd.f32 %v6593_v3, %v5812_v37  ;;  %3952 = vmatprep.mubr.msk.f32.mxu0 %vm1536_vm0, %v1516_v60  ;;  %4016 = vmatpush3.bf16.msra.mxu0 %v6594_v32  ;;  %v1228_v25 = vadd.f32 %v1226_v56, %v1106_v0  ;;  %v1383_v34 = vmul.f32 %v5773_v18, %v3692_v24  ;;  %v3681_v37 = vld [vmem:[%s6390_s1 + $0x1d] ss:$0 sm:$0xff] }
 0x165   : > { %v1105_v5 = vadd.f32 %v1103_v10, %v1061_v57  ;;  %v1384_v38 = vmul.f32 %v5744_v11, %v3692_v24  ;;  %v1112_v26 = vmul.f32 %v3661_v12, %v5954_v35  ;;  %v913_v61 = vadd.f32 %v6596_v46, %v6595_v51  ;;  %v3697_v60 = vld [vmem:[%s6390_s1 + $0x3d] ss:$0 sm:$0xff]  ;;  %v6600_v24 = vld [vmem:[#allocation75_spill] sm:$0xff]  ;;  %v3678_v57 = vld [vmem:[%s6390_s1 + $0xe] ss:$0 sm:$0xff] }
 0x166   : > { %v956_v17 = vadd.f32 %v6009_v19, %v912_v2  ;;  %v1272_v21 = vadd.f32 %v1270_v22, %v1228_v25  ;;  %v1427_v15 = vmul.f32 %v3696_v4, %v6136_v59  ;;  %v1428_v9 = vmul.f32 %v3696_v4, %v6138_v36  ;;  %v6597_v19 = vld [vmem:[#allocation71_spill] sm:$0xff]  ;;  %v6599_v10 = vld [vmem:[#allocation64_spill] sm:$0xff] }
 0x167   : > { %v1227_v20 = vadd.f32 %v1225_v14, %v1105_v5  ;;  %3953 = vmatmul.mubr.msk.f32.gmra.mrb[2].mxu0 %vm1536_vm0, %v1517_v63  ;;  %v1234_v49 = vmul.f32 %v6212_v13, %v3677_v40  ;;  %v957_v8 = vadd.f32 %v6045_v58, %v913_v61  ;;  %v1113_v29 = vmul.f32 %v3661_v12, %v5956_v39  ;;  %v3682_v2 = vld [vmem:[%s6390_s1 + $0x1e] ss:$0 sm:$0xff] }
 0x168   : > { %v1070_v1 = vadd.f32 %v6597_v19, %v956_v17  ;;  %3955 = vmatprep.mubr.msk.f32.mxu0 %vm1536_vm0, %v1525_v28  ;;  %v1278_v16 = vmul.f32 %v3681_v37, %v6062_v31  ;;  %v1392_v41 = vmul.f32 %v5773_v18, %v3693_v53  ;;  %v921_v48 = vadd.f32 %v6599_v10, %v6598_v43  ;;  %v6601_v5 = vld [vmem:[#allocation72_spill] sm:$0xff]  ;;  %v6604_v19 = vld [vmem:[#allocation65_spill] sm:$0xff] }
 0x169   : > { %v1271_v45 = vadd.f32 %v1269_v6, %v1227_v20  ;;  %v1386_v63 = vadd.f32 %v1384_v38, %v1272_v21  ;;  %v1071_v58 = vadd.f32 %v6600_v24, %v957_v8  ;;  %v1235_v55 = vmul.f32 %v6203_v62, %v3677_v40 }
 0x16a   : > { %v1114_v56 = vadd.f32 %v1112_v26, %v1070_v1  ;;  %v1436_v28 = vmul.f32 %v3697_v60, %v6136_v59  ;;  %v965_v14 = vadd.f32 %v6013_v44, %v921_v48  ;;  %v1121_v22 = vmul.f32 %v3662_v33, %v5954_v35 }
 0x16b   : > { %v1385_v0 = vadd.f32 %v1383_v34, %v1271_v45  ;;  %3956 = vmatmul.mubr.msk.f32.gmra.mrb[4].mxu0 %vm1536_vm0, %v1526_v30  ;;  %v1115_v6 = vadd.f32 %v1113_v29, %v1071_v58  ;;  %v1279_v4 = vmul.f32 %v3681_v37, %v6064_v42  ;;  %v1393_v3 = vmul.f32 %v5744_v11, %v3693_v53  ;;  %v3694_v30 = vld [vmem:[%s6390_s1 + $0x2e] ss:$0 sm:$0xff]  ;;  %v6602_v34 = vld [vmem:[#allocation68_spill] sm:$0xff] }
 0x16c   : > { %v1236_v12 = vadd.f32 %v1234_v49, %v1114_v56  ;;  %3958 = vmatprep.mubr.msk.f32.mxu0 %vm1536_vm0, %v1534_v27  ;;  %v1079_v25 = vadd.f32 %v6601_v5, %v965_v14  ;;  %v1243_v44 = vmul.f32 %v6212_v13, %v3678_v57  ;;  %v922_v40 = vadd.f32 %v6602_v34, %v5944_v54  ;;  %v3698_v27 = vld [vmem:[%s6390_s1 + $0x3e] ss:$0 sm:$0xff]  ;;  %v3663_v54 = vld [vmem:[%s6390_s1 + $0x3b] ss:$0 sm:$0xff]  ;;  %v6606_v56 = vld [vmem:[#allocation69_spill] sm:$0xff] }
 0x16d   : > { %v1429_v32 = vadd.f32 %v1427_v15, %v1385_v0  ;;  %v1430_v38 = vadd.f32 %v1428_v9, %v1386_v63  ;;  %v1237_v26 = vadd.f32 %v1235_v55, %v1115_v6  ;;  %v1437_v37 = vmul.f32 %v3697_v60, %v6138_v36  ;;  %v6603_v9 = vld [vmem:[#allocation32_spill] sm:$0xff]  ;;  %v3695_v14 = vld [vmem:[%s6390_s1 + $0x2f] ss:$0 sm:$0xff] }
 0x16e   : > { %v1280_v17 = vadd.f32 %v1278_v16, %v1236_v12  ;;  %v1123_v53 = vadd.f32 %v1121_v22, %v1079_v25  ;;  %v1287_v51 = vmul.f32 %v3682_v2, %v6062_v31  ;;  %v966_v46 = vadd.f32 %v6114_v23, %v922_v40  ;;  %v6605_v60 = vld [vmem:[#allocation76_spill] sm:$0xff] }
 0x16f   : > { %v1122_v61 = vmul.f32 %v3662_v33, %v5956_v39  ;;  %3959 = vmatmul.mubr.msk.f32.gmra.mrb[6].mxu0 %vm1536_vm0, %v6220_v7  ;;  %v1281_v21 = vadd.f32 %v1279_v4, %v1237_v26  ;;  %v1401_v15 = vmul.f32 %v5773_v18, %v3694_v30  ;;  %v930_v1 = vadd.f32 %v6604_v19, %v6603_v9  ;;  %v3679_v7 = vld [vmem:[%s6390_s1 + $0xf] ss:$0 sm:$0xff]  ;;  %v3683_v63 = vld [vmem:[%s6390_s1 + $0x1f] ss:$0 sm:$0xff] }
 0x170   : > { %v1394_v20 = vadd.f32 %v1392_v41, %v1280_v17  ;;  %3965 = vmatprep.mubr.msk.f32.mxu0 %vm1536_vm0, %v1429_v32  ;;  %v1245_v49 = vadd.f32 %v1243_v44, %v1123_v53  ;;  %v1445_v23 = vmul.f32 %v3698_v27, %v6136_v59  ;;  %v1080_v8 = vadd.f32 %v6605_v60, %v966_v46  ;;  %v6608_v32 = vld [vmem:[#allocation77_spill] sm:$0xff] }
 0x171   : > { %v1244_v29 = vmul.f32 %v6203_v62, %v3678_v57  ;;  %v1395_v45 = vadd.f32 %v1393_v3, %v1281_v21  ;;  %v974_v16 = vadd.f32 %v6020_v52, %v930_v1  ;;  %v1130_v41 = vmul.f32 %v3663_v54, %v5954_v35  ;;  %v6607_v57 = vld [vmem:[#allocation73_spill] sm:$0xff] }
 0x172   : > { %v1438_v33 = vadd.f32 %v1436_v28, %v1394_v20  ;;  %v1289_v43 = vadd.f32 %v1287_v51, %v1245_v49  ;;  %v1124_v10 = vadd.f32 %v1122_v61, %v1080_v8  ;;  %v1288_v48 = vmul.f32 %v3682_v2, %v6064_v42 }
 0x173   : > { %v931_v24 = vadd.f32 %v6606_v56, %v5950_v50  ;;  %3966 = vmatmul.mubr.msk.f32.vlgmr.msra.gmra.mrb[0].mxu0 %vm1536_vm0, %v1430_v38  ;;  %v1439_v58 = vadd.f32 %v1437_v37, %v1395_v45  ;;  %v1402_v55 = vmul.f32 %v5744_v11, %v3694_v30  ;;  %v1088_v52 = vadd.f32 %v6607_v57, %v974_v16 }
 0x174   : > { %v1252_v35 = vmul.f32 %v6212_v13, %v3679_v7  ;;  %3968 = vmatprep.mubr.msk.f32.mxu0 %vm1536_vm0, %v1438_v33  ;;  %v1403_v0 = vadd.f32 %v1401_v15, %v1289_v43  ;;  %v1246_v28 = vadd.f32 %v1244_v29, %v1124_v10  ;;  %v1131_v50 = vmul.f32 %v3663_v54, %v5956_v39  ;;  %v3699_v13 = vld [vmem:[%s6390_s1 + $0x3f] ss:$0 sm:$0xff] }
 0x175   : > { %v975_v22 = vadd.f32 %v6145_v47, %v931_v24  ;;  %v1446_v12 = vmul.f32 %v3698_v27, %v6138_v36  ;;  %v1132_v6 = vadd.f32 %v1130_v41, %v1088_v52  ;;  %v1296_v4 = vmul.f32 %v3683_v63, %v6062_v31 }
 0x176   : > { %v1447_v3 = vadd.f32 %v1445_v23, %v1403_v0  ;;  %v1290_v2 = vadd.f32 %v1288_v48, %v1246_v28  ;;  %v1253_v25 = vmul.f32 %v6203_v62, %v3679_v7  ;;  %v1410_v39 = vmul.f32 %v5773_v18, %v3695_v14 }
 0x177   : > { %v1089_v5 = vadd.f32 %v6608_v32, %v975_v22  ;;  %3969 = vmatmul.mubr.msk.f32.gmra.mrb[2].mxu0 %vm1536_vm0, %v1439_v58  ;;  %v1254_v47 = vadd.f32 %v1252_v35, %v1132_v6  ;;  %v1297_v31 = vmul.f32 %v3683_v63, %v6064_v42  ;;  %v1454_v40 = vmul.f32 %v3699_v13, %v6136_v59 }
 0x178   : > { %3971 = vmatprep.mubr.msk.f32.mxu0 %vm1536_vm0, %v1447_v3  ;;  %v1404_v44 = vadd.f32 %v1402_v55, %v1290_v2  ;;  %v1411_v26 = vmul.f32 %v5744_v11, %v3695_v14  ;;  %v1455_v27 = vmul.f32 %v3699_v13, %v6138_v36  ;;  %v3370_v42 = vstv %s3369_s18 }
 0x179   : > { %v1133_v30 = vadd.f32 %v1131_v50, %v1089_v5  ;;  %v1298_v34 = vadd.f32 %v1296_v4, %v1254_v47  ;;  %v3385_v11 = vstv %s3893_s6  ;;  %v3399_v9 = vstv %s3896_s21 }
 0x17a   : > { %v1448_v38 = vadd.f32 %v1446_v12, %v1404_v44  ;;  %v3413_v60 = vstv %s3899_s22 }
 0x17b   : > { %v1255_v17 = vadd.f32 %v1253_v25, %v1133_v30  ;;  %v1412_v37 = vadd.f32 %v1410_v39, %v1298_v34 }
 0x17c   : > { %3972 = vmatmul.mubr.msk.f32.gmra.mrb[4].mxu0 %vm1536_vm0, %v1448_v38 }
 0x17d   : > { %v1299_v62 = vadd.f32 %v1297_v31, %v1255_v17  ;;  %v1456_v18 = vadd.f32 %v1454_v40, %v1412_v37 }
 0x17f   : > { %v1413_v53 = vadd.f32 %v1411_v26, %v1299_v62  ;;  %3974 = vmatprep.mubr.msk.f32.mxu0 %vm1536_vm0, %v1456_v18 }
 0x181   : > { %v1457_v51 = vadd.f32 %v1455_v27, %v1413_v53 }
 0x183   : > { %3975 = vmatmul.mubr.msk.f32.gmra.mrb[6].mxu0 %vm1536_vm0, %v1457_v51 }
 0x1eb   : > { %v3999_v59 = vpop.f32.mrb[0].mxu1 }
 0x1ec   : > { %v3372_v46 = vadd.f32 %v3999_v59, %v3370_v42  ;;  %v3330_v61 = vpop.f32.mrb[1].mxu1 }
 0x1ed   : > { %v3371_v54 = vadd.f32 %v3370_v42, %v3330_v61 }
 0x1ee   : > { %3377 = vrot.lane.b32.xlu1 %v3372_v46, %s4133_s20 }
 0x1ef   : > { %3375 = vrot.lane.b32.xlu0 %v3371_v54, %s4133_s20 }
 0x200   : > { %v4002_v20 = vpop.f32.mrb[2].mxu1 }
 0x201   : > { %v3387_v36 = vadd.f32 %v4002_v20, %v3385_v11  ;;  %v3340_v21 = vpop.f32.mrb[3].mxu1 }
 0x202   : > { %v3386_v15 = vadd.f32 %v3385_v11, %v3340_v21 }
 0x203   : > { %3392 = vrot.lane.b32.xlu1 %v3387_v36, %s4133_s20 }
 0x204   : > { %3390 = vrot.lane.b32.xlu0 %v3386_v15, %s4133_s20 }
 0x20c   : > { %v4005_v19 = vpop.f32.mrb[4].mxu1 }
 0x20d   : > { %v3401_v1 = vadd.f32 %v4005_v19, %v3399_v9  ;;  %v3350_v49 = vpop.f32.mrb[5].mxu1 }
 0x20e   : > { %v3400_v23 = vadd.f32 %v3399_v9, %v3350_v49 }
 0x20f   : > { %3406 = vrot.lane.b32.xlu1 %v3401_v1, %s4133_s20 }
 0x210   : > { %3404 = vrot.lane.b32.xlu0 %v3400_v23, %s4133_s20 }
 0x21d   : > { %v4008_v8 = vpop.f32.mrb[6].mxu1 }
 0x21e   : > { %v3415_v29 = vadd.f32 %v4008_v8, %v3413_v60  ;;  %v3360_v7 = vpop.f32.mrb[7].mxu1 }
 0x21f   : > { %v3414_v33 = vadd.f32 %v3413_v60, %v3360_v7 }
 0x220   : > { %3420 = vrot.lane.b32.xlu1 %v3415_v29, %s4133_s20 }
 0x221   : > { %3418 = vrot.lane.b32.xlu0 %v3414_v33, %s4133_s20 }
 0x246   : > { %v3967_v45 = vpop.f32.mrb[0].mxu0 }
 0x247   : > { %v1798_v16 = vadd.f32 %v3967_v45, %v3370_v42  ;;  %v1756_v41 = vpop.f32.mrb[1].mxu0 }
 0x248   : > { %v1797_v43 = vadd.f32 %v3370_v42, %v1756_v41 }
 0x249   : > { %1801 = vst.msk [vmem:[%s6346_s26 + $0x8] sm:$0xff] %vm1799_vm1, %v1798_v16 }
 0x24a   : > { %1800 = vst.msk [vmem:[%s6346_s26] sm:$0xff] %vm1799_vm1, %v1797_v43  ;;  %v3970_v10 = vpop.f32.mrb[2].mxu0 }
 0x24b   : > { %v1805_v48 = vadd.f32 %v3970_v10, %v3385_v11  ;;  %v1766_v63 = vpop.f32.mrb[3].mxu0 }
 0x24c   : > { %v1804_v56 = vadd.f32 %v3385_v11, %v1766_v63 }
 0x24d   : > { %3726 = vst.msk [vmem:[%s6346_s26 + $0x18] sm:$0xff] %vm1799_vm1, %v1805_v48 }
 0x24e   : > { %3725 = vst.msk [vmem:[%s6346_s26 + $0x10] sm:$0xff] %vm1799_vm1, %v1804_v56 }
 0x24f   : > { %v3973_v24 = vpop.f32.mrb[4].mxu0 }
 0x250   : > { %v1812_v58 = vadd.f32 %v3973_v24, %v3399_v9  ;;  %v1776_v55 = vpop.f32.mrb[5].mxu0 }
 0x251   : > { %v1811_v57 = vadd.f32 %v3399_v9, %v1776_v55 }
 0x252   : > { %3729 = vst.msk [vmem:[%s6346_s26 + $0x28] sm:$0xff] %vm1799_vm1, %v1812_v58 }
 0x253   : > { %3728 = vst.msk [vmem:[%s6346_s26 + $0x20] sm:$0xff] %vm1799_vm1, %v1811_v57 }
 0x256   : > { %v3976_v52 = vpop.f32.mrb[6].mxu0 }
 0x257   : > { %v1819_v35 = vadd.f32 %v3976_v52, %v3413_v60  ;;  %v1786_v0 = vpop.f32.mrb[7].mxu0 }
 0x258   : > { %v1818_v28 = vadd.f32 %v3413_v60, %v1786_v0 }
 0x259   : > { %3732 = vst.msk [vmem:[%s6346_s26 + $0x38] sm:$0xff] %vm1799_vm1, %v1819_v35 }
 0x25a   : > { %3731 = vst.msk [vmem:[%s6346_s26 + $0x30] sm:$0xff] %vm1799_vm1, %v1818_v28 }
 0x260   : > { %v3378_v14 = vpop.permute.xlu1 %3377 }
 0x261   : > { %3383 = vst.msk [vmem:[%s6346_s26 + $0x8] sm:$0xff] %vm3381_vm2, %v3378_v14  ;;  %v3376_v22 = vpop.permute.xlu0 %3375 }
 0x262   : > { %3382 = vst.msk [vmem:[%s6346_s26] sm:$0xff] %vm3381_vm2, %v3376_v22 }
 0x275   : > { %v3393_v50 = vpop.permute.xlu1 %3392 }
 0x276   : > { %3895 = vst.msk [vmem:[%s6346_s26 + $0x18] sm:$0xff] %vm3381_vm2, %v3393_v50  ;;  %v3391_v12 = vpop.permute.xlu0 %3390 }
 0x277   : > { %3894 = vst.msk [vmem:[%s6346_s26 + $0x10] sm:$0xff] %vm3381_vm2, %v3391_v12 }
 0x281   : > { %v3407_v6 = vpop.permute.xlu1 %3406 }
 0x282   : > { %3898 = vst.msk [vmem:[%s6346_s26 + $0x28] sm:$0xff] %vm3381_vm2, %v3407_v6  ;;  %v3405_v4 = vpop.permute.xlu0 %3404 }
 0x283   : > { %3897 = vst.msk [vmem:[%s6346_s26 + $0x20] sm:$0xff] %vm3381_vm2, %v3405_v4 }
 0x292   : > { %v3421_v3 = vpop.permute.xlu1 %3420 }
 0x293   : > { %3901 = vst.msk [vmem:[%s6346_s26 + $0x38] sm:$0xff] %vm3381_vm2, %v3421_v3  ;;  %v3419_v2 = vpop.permute.xlu0 %3418 }
 0x294   : > { %3900 = vst.msk [vmem:[%s6346_s26 + $0x30] sm:$0xff] %vm3381_vm2, %v3419_v2 }
 0x295 PF: > { %s15_s17 = sadd.s32 1, %s4128_s17   ;;  %s6609_s15 = smov %s4124_s16 }
 0x296   : > { %p12_p2 = scmp.ge.s32.totalorder %s15_s17, 4   ;;  %s6610_s16 = smov %s6612_s19 }
 0x298   :  { %14 = sbr.rel (!%p12_p2) target bundleno = 2 (0x2), region = 87 }
 0x29f   :  { %3456 = vsyncpa [#allocation3], 1 }
 0x2a0   :  { %3458 = vsyncpa [#allocation3 + $0x1], 1 }

</bundles_post_ra>
